<compile_context>
chip_gen: v6e
topology: v6e:2x2x1
jax: 0.10.0
libtpu: 0.0.40
codegen_flags: <defaults>
</compile_context>

<pallas_src>
import math

import jax
import jax.numpy as jnp
from jax.experimental import pallas as pl
from jax.experimental.pallas import tpu as pltpu


def _gnn_kernel(x_ref, edge_ref, wn1_ref, we1_ref, wn2_ref, we2_ref,
                x_out_ref, edge_out_ref):
    """Two fused GNN layers.

    x_ref    : (B, N, C)    f32 node features (node index on sublanes).
    edge_ref : (B, N, N, C) f32 edge features, natural (b, i, j, c) layout.
    wn*_ref  : (C, 4C)      packed [A | B | V | U] node weights (W.T), bf16.
    we*_ref  : (C, C)       edge weight E (W.T), bf16.
    """
    x = x_ref[...]
    edge = edge_ref[...]
    B, N, C = x.shape
    inv_n = 1.0 / N

    # Hoist every weight load once; both layers reuse the loaded values.
    wn1 = wn1_ref[...]
    we1 = we1_ref[...]
    wn2 = wn2_ref[...]
    we2 = we2_ref[...]

    relu = lambda t: jnp.maximum(t, 0.0)

    def bn(t, lane_axis, eps=1e-5):
        # nn.BatchNorm1d training-mode forward, weight=1 / bias=0 (bn_init):
        # per-channel statistics over (batch, feature) dims, biased variance.
        # One-pass stats (E[x], E[x^2]); each mean is two single-axis reduces
        # (lane reduce, then the tiny leading batch reduce).
        def full_mean(u):
            u = jnp.mean(u, axis=lane_axis, keepdims=True)
            return jnp.mean(u, axis=0, keepdims=True)
        mean = full_mean(t)
        var = full_mean(t * t) - mean * mean
        return (t - mean) * jax.lax.rsqrt(var + eps)

    def layer(x, edge, w_node, w_edge):
        res = x

        # --- four node projections as ONE (B*N, C) @ (C, 4C) MXU matmul -----
        # bf16 operands, f32 accumulation.
        proj = jnp.dot(x.reshape(B * N, C).astype(w_node.dtype), w_node,
                       preferred_element_type=jnp.float32)
        proj = proj.reshape(B, N, 4 * C)
        Aix = proj[:, :, 0 * C:1 * C]      # A(x), indexed by i
        Bjx = proj[:, :, 1 * C:2 * C]      # B(x), indexed by j
        Vjx = proj[:, :, 2 * C:3 * C]      # V(x), indexed by j
        Uix = proj[:, :, 3 * C:4 * C]      # U(x), indexed by i

        # --- edge projection as ONE (B*N*N, C) @ (C, C) MXU matmul ----------
        # (the reshapes are pure (8,128)-tile relabellings).
        e_lin = jnp.dot(edge.reshape(B * N * N, C).astype(w_edge.dtype), w_edge,
                        preferred_element_type=jnp.float32).reshape(B, N, N, C)

        # msg[b,i,j,c] = A(x)[b,i,c] + B(x)[b,j,c] + E(edge)[b,i,j,c]
        #   einsum('ev,bvc->bec', end,   A(x)) == broadcast A(x)[b,i] over j
        #   einsum('ev,bvc->bec', start, B(x)) == broadcast B(x)[b,j] over i
        # Built per-i from single-sublane slices of A(x); B(x) needs no
        # broadcast at all in this layout (j is already the sublane axis).
        msg = jnp.stack(
            [jnp.broadcast_to(Aix[:, i:i + 1, :], (B, N, C)) + Bjx + e_lin[:, i]
             for i in range(N)],
            axis=1)
        edge = edge + relu(bn(msg, lane_axis=3))    # bne: per (i,j) over (b,c)

        # Softmax over j of sigmoid(edge).  exp needs no max-shift because the
        # sigmoid bounds its input to (0, 1).  The 1/sum_j normalization is
        # factored out of the j-aggregation, so the normalized softmax tensor
        # is never materialized.
        sig = 1.0 / (1.0 + jnp.exp(-edge))
        ex = jnp.exp(sig)                                        # (B, N, N, C)
        den = jnp.sum(ex, axis=2)                                # (B, N, C)
        # Ujx = einsum('ev,bvc->bec', start, V(x));
        # x   = U(x) + einsum('ve,bec->bvc', end.T, softmax(e)*Ujx) / N
        num = jnp.sum(ex * Vjx[:, None, :, :], axis=2)           # (B, N, C)
        agg = num * pl.reciprocal(den, approx=True)
        x_new = Uix + agg * inv_n
        x_new = relu(res + bn(x_new, lane_axis=2))  # bnv: per node over (b,c)
        return x_new, edge

    x, edge = layer(x, edge, wn1, we1)
    x, edge = layer(x, edge, wn2, we2)

    x_out_ref[...] = x
    edge_out_ref[...] = edge


def gnn_forward(x, edge, w_node1, w_e1, w_node2, w_e2):
    """GNN.forward(x, edge).

    x       : (B, N, C) float32
    edge    : (B, N*N, C) float32, edge index e = i*N + j
    w_node* : (C, 4C) packed [A | B | V | U], each block stored as W.T of the
              corresponding PyTorch nn.Linear weight (bf16 recommended).
    w_e*    : (C, C) edge weight, stored as W.T (bf16 recommended).
    Returns (x_out, edge_out) with the same shapes as (x, edge).
    """
    B, N, C = x.shape
    E = N * N
    assert edge.shape == (B, E, C)
    # (B, N*N, C) -> (B, N, N, C) is a row-major relabel (free); there are no
    # host-side transposes around the kernel.
    edge4 = edge.reshape(B, N, N, C)

    vmem = pl.BlockSpec(memory_space=pltpu.MemorySpace.VMEM)
    # NOTE: gridless single-core launch -- the whole working set is < 1 MiB and
    # fits VMEM on v5e/v6e/v7x.  If scaled up (bigger B/N/C), add a grid axis
    # over the node/edge index i marked 'parallel' (bne stats and the softmax
    # over j are independent per i) to engage both v7x TensorCores, and budget
    # tiles against v7x's 64 MiB physical / 32 MiB default scoped VMEM.
    x_out, edge_out = pl.pallas_call(
        _gnn_kernel,
        out_shape=(jax.ShapeDtypeStruct((B, N, C), jnp.float32),
                   jax.ShapeDtypeStruct((B, N, N, C), jnp.float32)),
        in_specs=[vmem] * 6,
        out_specs=(vmem, vmem),
        # Reuse the edge input's HBM buffer for the edge output (same shape &
        # dtype).  x could also be aliased if the caller donates it.
        input_output_aliases={1: 1},
    )(x, edge4, w_node1, w_e1, w_node2, w_e2)

    return x_out, edge_out.reshape(B, E, C)


if __name__ == "__main__":
    key = jax.random.PRNGKey(0)
    B, num_classes, in_channels = 2, 8, 128      # small DISFA-like configuration
    E = num_classes * num_classes

    kx, ke, kw = jax.random.split(key, 3)
    x = jax.random.normal(kx, (B, num_classes, in_channels), jnp.float32)
    edge = jax.random.normal(ke, (B, E, in_channels), jnp.float32)

    # init_weights_linear(dim_in, gain=1): normal(0, gain * sqrt(2 / dim_in)).
    scale = math.sqrt(2.0 / in_channels)
    wkeys = jax.random.split(kw, 10)
    w = [scale * jax.random.normal(k, (in_channels, in_channels), jnp.float32)
         for k in wkeys]                          # U1,V1,A1,B1,E1,U2,V2,A2,B2,E2
    u1, v1, a1, b1, e1, u2, v2, a2, b2, e2 = w
    # Packed [A|B|V|U] node weights (stored as W.T), cast to bf16 host-side to
    # halve weight DMA and run the MXU at native bf16 rate (f32 accumulation).
    w_node1 = jnp.concatenate([a1, b1, v1, u1], axis=1).astype(jnp.bfloat16)
    w_node2 = jnp.concatenate([a2, b2, v2, u2], axis=1).astype(jnp.bfloat16)
    w_e1 = e1.astype(jnp.bfloat16)
    w_e2 = e2.astype(jnp.bfloat16)

    fwd = jax.jit(gnn_forward)
    out_x, out_edge = fwd(x, edge, w_node1, w_e1, w_node2, w_e2)
    jax.block_until_ready((out_x, out_edge))
    assert out_x.shape == (B, num_classes, in_channels)
    assert out_edge.shape == (B, E, in_channels)
    print("KERNEL_OK")
</pallas_src>

<mosaic_0001>
module attributes {stable_mosaic.version = 11 : i64} {
  func.func @_gnn_kernel(%arg0: memref<2x8x128xf32, #tpu.memory_space<vmem>>, %arg1: memref<2x8x8x128xf32, #tpu.memory_space<vmem>>, %arg2: memref<128x512xbf16, #tpu.memory_space<vmem>>, %arg3: memref<128x128xbf16, #tpu.memory_space<vmem>>, %arg4: memref<128x512xbf16, #tpu.memory_space<vmem>>, %arg5: memref<128x128xbf16, #tpu.memory_space<vmem>>, %arg6: memref<2x8x128xf32, #tpu.memory_space<vmem>>, %arg7: memref<2x8x8x128xf32, #tpu.memory_space<vmem>>) attributes {dimension_semantics = [], scalar_prefetch = 0 : i64, scratch_operands = 0 : i64, tpu.core_type = #tpu.core_type<tc>} {
    %c0 = arith.constant 0 : index
    %c0_0 = arith.constant 0 : index
    %c0_1 = arith.constant 0 : index
    %0 = vector.load %arg0[%c0, %c0_0, %c0_1] : memref<2x8x128xf32, #tpu.memory_space<vmem>>, vector<2x8x128xf32>
    %c0_2 = arith.constant 0 : index
    %c0_3 = arith.constant 0 : index
    %c0_4 = arith.constant 0 : index
    %c0_5 = arith.constant 0 : index
    %1 = vector.load %arg1[%c0_2, %c0_3, %c0_4, %c0_5] : memref<2x8x8x128xf32, #tpu.memory_space<vmem>>, vector<2x8x8x128xf32>
    %c0_6 = arith.constant 0 : index
    %c0_7 = arith.constant 0 : index
    %2 = vector.load %arg2[%c0_6, %c0_7] : memref<128x512xbf16, #tpu.memory_space<vmem>>, vector<128x512xbf16>
    %c0_8 = arith.constant 0 : index
    %c0_9 = arith.constant 0 : index
    %3 = vector.load %arg3[%c0_8, %c0_9] : memref<128x128xbf16, #tpu.memory_space<vmem>>, vector<128x128xbf16>
    %c0_10 = arith.constant 0 : index
    %c0_11 = arith.constant 0 : index
    %4 = vector.load %arg4[%c0_10, %c0_11] : memref<128x512xbf16, #tpu.memory_space<vmem>>, vector<128x512xbf16>
    %c0_12 = arith.constant 0 : index
    %c0_13 = arith.constant 0 : index
    %5 = vector.load %arg5[%c0_12, %c0_13] : memref<128x128xbf16, #tpu.memory_space<vmem>>, vector<128x128xbf16>
    %6 = vector.shape_cast %0 : vector<2x8x128xf32> to vector<16x128xf32>
    %7 = arith.truncf %6 : vector<16x128xf32> to vector<16x128xbf16>
    %cst = arith.constant dense<0.000000e+00> : vector<16x512xf32>
    %8 = tpu.matmul %7, %2, %cst {dimension_numbers = #tpu.dot_dimension_numbers<[1], [0], [0], [1], [0, 0, 1, 1], [], []>} : vector<16x128xbf16>, vector<128x512xbf16>, vector<16x512xf32> -> vector<16x512xf32>
    %9 = vector.shape_cast %8 : vector<16x512xf32> to vector<2x8x512xf32>
    %10 = vector.extract_strided_slice %9 {offsets = [0, 0, 0], sizes = [2, 8, 128], strides = [1, 1, 1]} : vector<2x8x512xf32> to vector<2x8x128xf32>
    %11 = vector.extract_strided_slice %9 {offsets = [0, 0, 128], sizes = [2, 8, 128], strides = [1, 1, 1]} : vector<2x8x512xf32> to vector<2x8x128xf32>
    %12 = vector.extract_strided_slice %9 {offsets = [0, 0, 256], sizes = [2, 8, 128], strides = [1, 1, 1]} : vector<2x8x512xf32> to vector<2x8x128xf32>
    %13 = vector.extract_strided_slice %9 {offsets = [0, 0, 384], sizes = [2, 8, 128], strides = [1, 1, 1]} : vector<2x8x512xf32> to vector<2x8x128xf32>
    %14 = vector.shape_cast %1 : vector<2x8x8x128xf32> to vector<128x128xf32>
    %15 = arith.truncf %14 : vector<128x128xf32> to vector<128x128xbf16>
    %cst_14 = arith.constant dense<0.000000e+00> : vector<128x128xf32>
    %16 = tpu.matmul %15, %3, %cst_14 {dimension_numbers = #tpu.dot_dimension_numbers<[1], [0], [0], [1], [0, 0, 1, 1], [], []>} : vector<128x128xbf16>, vector<128x128xbf16>, vector<128x128xf32> -> vector<128x128xf32>
    %17 = vector.shape_cast %16 : vector<128x128xf32> to vector<2x8x8x128xf32>
    %18 = vector.extract_strided_slice %10 {offsets = [0, 0, 0], sizes = [2, 1, 128], strides = [1, 1, 1]} : vector<2x8x128xf32> to vector<2x1x128xf32>
    %19 = vector.shape_cast %18 : vector<2x1x128xf32> to vector<2x1x128xf32>
    %20 = vector.broadcast %19 : vector<2x1x128xf32> to vector<2x8x128xf32>
    %21 = arith.addf %20, %11 : vector<2x8x128xf32>
    %22 = vector.extract_strided_slice %17 {offsets = [0, 0, 0, 0], sizes = [2, 1, 8, 128], strides = [1, 1, 1, 1]} : vector<2x8x8x128xf32> to vector<2x1x8x128xf32>
    %23 = vector.shape_cast %22 : vector<2x1x8x128xf32> to vector<2x8x128xf32>
    %24 = arith.addf %21, %23 : vector<2x8x128xf32>
    %25 = vector.extract_strided_slice %10 {offsets = [0, 1, 0], sizes = [2, 1, 128], strides = [1, 1, 1]} : vector<2x8x128xf32> to vector<2x1x128xf32>
    %26 = vector.shape_cast %25 : vector<2x1x128xf32> to vector<2x1x128xf32>
    %27 = vector.broadcast %26 : vector<2x1x128xf32> to vector<2x8x128xf32>
    %28 = arith.addf %27, %11 : vector<2x8x128xf32>
    %29 = vector.extract_strided_slice %17 {offsets = [0, 1, 0, 0], sizes = [2, 1, 8, 128], strides = [1, 1, 1, 1]} : vector<2x8x8x128xf32> to vector<2x1x8x128xf32>
    %30 = vector.shape_cast %29 : vector<2x1x8x128xf32> to vector<2x8x128xf32>
    %31 = arith.addf %28, %30 : vector<2x8x128xf32>
    %32 = vector.extract_strided_slice %10 {offsets = [0, 2, 0], sizes = [2, 1, 128], strides = [1, 1, 1]} : vector<2x8x128xf32> to vector<2x1x128xf32>
    %33 = vector.shape_cast %32 : vector<2x1x128xf32> to vector<2x1x128xf32>
    %34 = vector.broadcast %33 : vector<2x1x128xf32> to vector<2x8x128xf32>
    %35 = arith.addf %34, %11 : vector<2x8x128xf32>
    %36 = vector.extract_strided_slice %17 {offsets = [0, 2, 0, 0], sizes = [2, 1, 8, 128], strides = [1, 1, 1, 1]} : vector<2x8x8x128xf32> to vector<2x1x8x128xf32>
    %37 = vector.shape_cast %36 : vector<2x1x8x128xf32> to vector<2x8x128xf32>
    %38 = arith.addf %35, %37 : vector<2x8x128xf32>
    %39 = vector.extract_strided_slice %10 {offsets = [0, 3, 0], sizes = [2, 1, 128], strides = [1, 1, 1]} : vector<2x8x128xf32> to vector<2x1x128xf32>
    %40 = vector.shape_cast %39 : vector<2x1x128xf32> to vector<2x1x128xf32>
    %41 = vector.broadcast %40 : vector<2x1x128xf32> to vector<2x8x128xf32>
    %42 = arith.addf %41, %11 : vector<2x8x128xf32>
    %43 = vector.extract_strided_slice %17 {offsets = [0, 3, 0, 0], sizes = [2, 1, 8, 128], strides = [1, 1, 1, 1]} : vector<2x8x8x128xf32> to vector<2x1x8x128xf32>
    %44 = vector.shape_cast %43 : vector<2x1x8x128xf32> to vector<2x8x128xf32>
    %45 = arith.addf %42, %44 : vector<2x8x128xf32>
    %46 = vector.extract_strided_slice %10 {offsets = [0, 4, 0], sizes = [2, 1, 128], strides = [1, 1, 1]} : vector<2x8x128xf32> to vector<2x1x128xf32>
    %47 = vector.shape_cast %46 : vector<2x1x128xf32> to vector<2x1x128xf32>
    %48 = vector.broadcast %47 : vector<2x1x128xf32> to vector<2x8x128xf32>
    %49 = arith.addf %48, %11 : vector<2x8x128xf32>
    %50 = vector.extract_strided_slice %17 {offsets = [0, 4, 0, 0], sizes = [2, 1, 8, 128], strides = [1, 1, 1, 1]} : vector<2x8x8x128xf32> to vector<2x1x8x128xf32>
    %51 = vector.shape_cast %50 : vector<2x1x8x128xf32> to vector<2x8x128xf32>
    %52 = arith.addf %49, %51 : vector<2x8x128xf32>
    %53 = vector.extract_strided_slice %10 {offsets = [0, 5, 0], sizes = [2, 1, 128], strides = [1, 1, 1]} : vector<2x8x128xf32> to vector<2x1x128xf32>
    %54 = vector.shape_cast %53 : vector<2x1x128xf32> to vector<2x1x128xf32>
    %55 = vector.broadcast %54 : vector<2x1x128xf32> to vector<2x8x128xf32>
    %56 = arith.addf %55, %11 : vector<2x8x128xf32>
    %57 = vector.extract_strided_slice %17 {offsets = [0, 5, 0, 0], sizes = [2, 1, 8, 128], strides = [1, 1, 1, 1]} : vector<2x8x8x128xf32> to vector<2x1x8x128xf32>
    %58 = vector.shape_cast %57 : vector<2x1x8x128xf32> to vector<2x8x128xf32>
    %59 = arith.addf %56, %58 : vector<2x8x128xf32>
    %60 = vector.extract_strided_slice %10 {offsets = [0, 6, 0], sizes = [2, 1, 128], strides = [1, 1, 1]} : vector<2x8x128xf32> to vector<2x1x128xf32>
    %61 = vector.shape_cast %60 : vector<2x1x128xf32> to vector<2x1x128xf32>
    %62 = vector.broadcast %61 : vector<2x1x128xf32> to vector<2x8x128xf32>
    %63 = arith.addf %62, %11 : vector<2x8x128xf32>
    %64 = vector.extract_strided_slice %17 {offsets = [0, 6, 0, 0], sizes = [2, 1, 8, 128], strides = [1, 1, 1, 1]} : vector<2x8x8x128xf32> to vector<2x1x8x128xf32>
    %65 = vector.shape_cast %64 : vector<2x1x8x128xf32> to vector<2x8x128xf32>
    %66 = arith.addf %63, %65 : vector<2x8x128xf32>
    %67 = vector.extract_strided_slice %10 {offsets = [0, 7, 0], sizes = [2, 1, 128], strides = [1, 1, 1]} : vector<2x8x128xf32> to vector<2x1x128xf32>
    %68 = vector.shape_cast %67 : vector<2x1x128xf32> to vector<2x1x128xf32>
    %69 = vector.broadcast %68 : vector<2x1x128xf32> to vector<2x8x128xf32>
    %70 = arith.addf %69, %11 : vector<2x8x128xf32>
    %71 = vector.extract_strided_slice %17 {offsets = [0, 7, 0, 0], sizes = [2, 1, 8, 128], strides = [1, 1, 1, 1]} : vector<2x8x8x128xf32> to vector<2x1x8x128xf32>
    %72 = vector.shape_cast %71 : vector<2x1x8x128xf32> to vector<2x8x128xf32>
    %73 = arith.addf %70, %72 : vector<2x8x128xf32>
    %74 = vector.shape_cast %24 : vector<2x8x128xf32> to vector<2x1x8x128xf32>
    %75 = vector.shape_cast %31 : vector<2x8x128xf32> to vector<2x1x8x128xf32>
    %76 = vector.shape_cast %38 : vector<2x8x128xf32> to vector<2x1x8x128xf32>
    %77 = vector.shape_cast %45 : vector<2x8x128xf32> to vector<2x1x8x128xf32>
    %78 = vector.shape_cast %52 : vector<2x8x128xf32> to vector<2x1x8x128xf32>
    %79 = vector.shape_cast %59 : vector<2x8x128xf32> to vector<2x1x8x128xf32>
    %80 = vector.shape_cast %66 : vector<2x8x128xf32> to vector<2x1x8x128xf32>
    %81 = vector.shape_cast %73 : vector<2x8x128xf32> to vector<2x1x8x128xf32>
    %82 = tpu.concatenate %74, %75, %76, %77, %78, %79, %80, %81 in 1 : vector<2x1x8x128xf32>, vector<2x1x8x128xf32>, vector<2x1x8x128xf32>, vector<2x1x8x128xf32>, vector<2x1x8x128xf32>, vector<2x1x8x128xf32>, vector<2x1x8x128xf32>, vector<2x1x8x128xf32> -> vector<2x8x8x128xf32>
    %cst_15 = arith.constant dense<0.000000e+00> : vector<2x8x8xf32>
    %83 = vector.multi_reduction <add>, %82, %cst_15 [3] : vector<2x8x8x128xf32> to vector<2x8x8xf32>
    %84 = vector.shape_cast %83 : vector<2x8x8xf32> to vector<2x8x8x1xf32>
    %cst_16 = arith.constant 1.280000e+02 : f32
    %85 = vector.broadcast %cst_16 : f32 to vector<2x8x8x1xf32>
    %86 = arith.divf %84, %85 : vector<2x8x8x1xf32>
    %cst_17 = arith.constant dense<0.000000e+00> : vector<8x8x1xf32>
    %87 = vector.multi_reduction <add>, %86, %cst_17 [0] : vector<2x8x8x1xf32> to vector<8x8x1xf32>
    %88 = vector.shape_cast %87 : vector<8x8x1xf32> to vector<1x8x8x1xf32>
    %cst_18 = arith.constant 2.000000e+00 : f32
    %89 = vector.broadcast %cst_18 : f32 to vector<1x8x8x1xf32>
    %90 = arith.divf %88, %89 : vector<1x8x8x1xf32>
    %91 = arith.mulf %82, %82 : vector<2x8x8x128xf32>
    %cst_19 = arith.constant dense<0.000000e+00> : vector<2x8x8xf32>
    %92 = vector.multi_reduction <add>, %91, %cst_19 [3] : vector<2x8x8x128xf32> to vector<2x8x8xf32>
    %93 = vector.shape_cast %92 : vector<2x8x8xf32> to vector<2x8x8x1xf32>
    %cst_20 = arith.constant 1.280000e+02 : f32
    %94 = vector.broadcast %cst_20 : f32 to vector<2x8x8x1xf32>
    %95 = arith.divf %93, %94 : vector<2x8x8x1xf32>
    %cst_21 = arith.constant dense<0.000000e+00> : vector<8x8x1xf32>
    %96 = vector.multi_reduction <add>, %95, %cst_21 [0] : vector<2x8x8x1xf32> to vector<8x8x1xf32>
    %97 = vector.shape_cast %96 : vector<8x8x1xf32> to vector<1x8x8x1xf32>
    %cst_22 = arith.constant 2.000000e+00 : f32
    %98 = vector.broadcast %cst_22 : f32 to vector<1x8x8x1xf32>
    %99 = arith.divf %97, %98 : vector<1x8x8x1xf32>
    %100 = arith.mulf %90, %90 : vector<1x8x8x1xf32>
    %101 = arith.subf %99, %100 : vector<1x8x8x1xf32>
    %102 = vector.broadcast %90 : vector<1x8x8x1xf32> to vector<2x8x8x128xf32>
    %103 = arith.subf %82, %102 : vector<2x8x8x128xf32>
    %cst_23 = arith.constant 9.99999974E-6 : f32
    %104 = vector.broadcast %cst_23 : f32 to vector<1x8x8x1xf32>
    %105 = arith.addf %101, %104 : vector<1x8x8x1xf32>
    %106 = math.rsqrt %105 : vector<1x8x8x1xf32>
    %107 = vector.broadcast %106 : vector<1x8x8x1xf32> to vector<2x8x8x128xf32>
    %108 = arith.mulf %103, %107 : vector<2x8x8x128xf32>
    %cst_24 = arith.constant 0.000000e+00 : f32
    %109 = vector.broadcast %cst_24 : f32 to vector<2x8x8x128xf32>
    %110 = arith.maximumf %108, %109 : vector<2x8x8x128xf32>
    %111 = arith.addf %1, %110 : vector<2x8x8x128xf32>
    %cst_25 = arith.constant 0.000000e+00 : f32
    %112 = vector.broadcast %cst_25 : f32 to vector<2x8x8x128xf32>
    %113 = arith.subf %112, %111 : vector<2x8x8x128xf32>
    %114 = math.exp %113 : vector<2x8x8x128xf32>
    %cst_26 = arith.constant 1.000000e+00 : f32
    %115 = vector.broadcast %cst_26 : f32 to vector<2x8x8x128xf32>
    %116 = arith.addf %115, %114 : vector<2x8x8x128xf32>
    %cst_27 = arith.constant 1.000000e+00 : f32
    %117 = vector.broadcast %cst_27 : f32 to vector<2x8x8x128xf32>
    %118 = arith.divf %117, %116 : vector<2x8x8x128xf32>
    %119 = math.exp %118 : vector<2x8x8x128xf32>
    %cst_28 = arith.constant dense<0.000000e+00> : vector<2x8x128xf32>
    %120 = vector.multi_reduction <add>, %119, %cst_28 [2] : vector<2x8x8x128xf32> to vector<2x8x128xf32>
    %121 = vector.shape_cast %12 : vector<2x8x128xf32> to vector<2x1x8x128xf32>
    %122 = vector.broadcast %121 : vector<2x1x8x128xf32> to vector<2x8x8x128xf32>
    %123 = arith.mulf %119, %122 : vector<2x8x8x128xf32>
    %cst_29 = arith.constant dense<0.000000e+00> : vector<2x8x128xf32>
    %124 = vector.multi_reduction <add>, %123, %cst_29 [2] : vector<2x8x8x128xf32> to vector<2x8x128xf32>
    %125 = tpu.reciprocal %120 {approx = true} : vector<2x8x128xf32> -> vector<2x8x128xf32>
    %126 = arith.mulf %124, %125 : vector<2x8x128xf32>
    %cst_30 = arith.constant 1.250000e-01 : f32
    %127 = vector.broadcast %cst_30 : f32 to vector<2x8x128xf32>
    %128 = arith.mulf %126, %127 : vector<2x8x128xf32>
    %129 = arith.addf %13, %128 : vector<2x8x128xf32>
    %cst_31 = arith.constant dense<0.000000e+00> : vector<2x8xf32>
    %130 = vector.multi_reduction <add>, %129, %cst_31 [2] : vector<2x8x128xf32> to vector<2x8xf32>
    %131 = vector.shape_cast %130 : vector<2x8xf32> to vector<2x8x1xf32>
    %cst_32 = arith.constant 1.280000e+02 : f32
    %132 = vector.broadcast %cst_32 : f32 to vector<2x8x1xf32>
    %133 = arith.divf %131, %132 : vector<2x8x1xf32>
    %cst_33 = arith.constant dense<0.000000e+00> : vector<8x1xf32>
    %134 = vector.multi_reduction <add>, %133, %cst_33 [0] : vector<2x8x1xf32> to vector<8x1xf32>
    %135 = vector.shape_cast %134 : vector<8x1xf32> to vector<1x8x1xf32>
    %cst_34 = arith.constant 2.000000e+00 : f32
    %136 = vector.broadcast %cst_34 : f32 to vector<1x8x1xf32>
    %137 = arith.divf %135, %136 : vector<1x8x1xf32>
    %138 = arith.mulf %129, %129 : vector<2x8x128xf32>
    %cst_35 = arith.constant dense<0.000000e+00> : vector<2x8xf32>
    %139 = vector.multi_reduction <add>, %138, %cst_35 [2] : vector<2x8x128xf32> to vector<2x8xf32>
    %140 = vector.shape_cast %139 : vector<2x8xf32> to vector<2x8x1xf32>
    %cst_36 = arith.constant 1.280000e+02 : f32
    %141 = vector.broadcast %cst_36 : f32 to vector<2x8x1xf32>
    %142 = arith.divf %140, %141 : vector<2x8x1xf32>
    %cst_37 = arith.constant dense<0.000000e+00> : vector<8x1xf32>
    %143 = vector.multi_reduction <add>, %142, %cst_37 [0] : vector<2x8x1xf32> to vector<8x1xf32>
    %144 = vector.shape_cast %143 : vector<8x1xf32> to vector<1x8x1xf32>
    %cst_38 = arith.constant 2.000000e+00 : f32
    %145 = vector.broadcast %cst_38 : f32 to vector<1x8x1xf32>
    %146 = arith.divf %144, %145 : vector<1x8x1xf32>
    %147 = arith.mulf %137, %137 : vector<1x8x1xf32>
    %148 = arith.subf %146, %147 : vector<1x8x1xf32>
    %149 = vector.broadcast %137 : vector<1x8x1xf32> to vector<2x8x128xf32>
    %150 = arith.subf %129, %149 : vector<2x8x128xf32>
    %cst_39 = arith.constant 9.99999974E-6 : f32
    %151 = vector.broadcast %cst_39 : f32 to vector<1x8x1xf32>
    %152 = arith.addf %148, %151 : vector<1x8x1xf32>
    %153 = math.rsqrt %152 : vector<1x8x1xf32>
    %154 = vector.broadcast %153 : vector<1x8x1xf32> to vector<2x8x128xf32>
    %155 = arith.mulf %150, %154 : vector<2x8x128xf32>
    %156 = arith.addf %0, %155 : vector<2x8x128xf32>
    %cst_40 = arith.constant 0.000000e+00 : f32
    %157 = vector.broadcast %cst_40 : f32 to vector<2x8x128xf32>
    %158 = arith.maximumf %156, %157 : vector<2x8x128xf32>
    %159 = vector.shape_cast %158 : vector<2x8x128xf32> to vector<16x128xf32>
    %160 = arith.truncf %159 : vector<16x128xf32> to vector<16x128xbf16>
    %cst_41 = arith.constant dense<0.000000e+00> : vector<16x512xf32>
    %161 = tpu.matmul %160, %4, %cst_41 {dimension_numbers = #tpu.dot_dimension_numbers<[1], [0], [0], [1], [0, 0, 1, 1], [], []>} : vector<16x128xbf16>, vector<128x512xbf16>, vector<16x512xf32> -> vector<16x512xf32>
    %162 = vector.shape_cast %161 : vector<16x512xf32> to vector<2x8x512xf32>
    %163 = vector.extract_strided_slice %162 {offsets = [0, 0, 0], sizes = [2, 8, 128], strides = [1, 1, 1]} : vector<2x8x512xf32> to vector<2x8x128xf32>
    %164 = vector.extract_strided_slice %162 {offsets = [0, 0, 128], sizes = [2, 8, 128], strides = [1, 1, 1]} : vector<2x8x512xf32> to vector<2x8x128xf32>
    %165 = vector.extract_strided_slice %162 {offsets = [0, 0, 256], sizes = [2, 8, 128], strides = [1, 1, 1]} : vector<2x8x512xf32> to vector<2x8x128xf32>
    %166 = vector.extract_strided_slice %162 {offsets = [0, 0, 384], sizes = [2, 8, 128], strides = [1, 1, 1]} : vector<2x8x512xf32> to vector<2x8x128xf32>
    %167 = vector.shape_cast %111 : vector<2x8x8x128xf32> to vector<128x128xf32>
    %168 = arith.truncf %167 : vector<128x128xf32> to vector<128x128xbf16>
    %cst_42 = arith.constant dense<0.000000e+00> : vector<128x128xf32>
    %169 = tpu.matmul %168, %5, %cst_42 {dimension_numbers = #tpu.dot_dimension_numbers<[1], [0], [0], [1], [0, 0, 1, 1], [], []>} : vector<128x128xbf16>, vector<128x128xbf16>, vector<128x128xf32> -> vector<128x128xf32>
    %170 = vector.shape_cast %169 : vector<128x128xf32> to vector<2x8x8x128xf32>
    %171 = vector.extract_strided_slice %163 {offsets = [0, 0, 0], sizes = [2, 1, 128], strides = [1, 1, 1]} : vector<2x8x128xf32> to vector<2x1x128xf32>
    %172 = vector.shape_cast %171 : vector<2x1x128xf32> to vector<2x1x128xf32>
    %173 = vector.broadcast %172 : vector<2x1x128xf32> to vector<2x8x128xf32>
    %174 = arith.addf %173, %164 : vector<2x8x128xf32>
    %175 = vector.extract_strided_slice %170 {offsets = [0, 0, 0, 0], sizes = [2, 1, 8, 128], strides = [1, 1, 1, 1]} : vector<2x8x8x128xf32> to vector<2x1x8x128xf32>
    %176 = vector.shape_cast %175 : vector<2x1x8x128xf32> to vector<2x8x128xf32>
    %177 = arith.addf %174, %176 : vector<2x8x128xf32>
    %178 = vector.extract_strided_slice %163 {offsets = [0, 1, 0], sizes = [2, 1, 128], strides = [1, 1, 1]} : vector<2x8x128xf32> to vector<2x1x128xf32>
    %179 = vector.shape_cast %178 : vector<2x1x128xf32> to vector<2x1x128xf32>
    %180 = vector.broadcast %179 : vector<2x1x128xf32> to vector<2x8x128xf32>
    %181 = arith.addf %180, %164 : vector<2x8x128xf32>
    %182 = vector.extract_strided_slice %170 {offsets = [0, 1, 0, 0], sizes = [2, 1, 8, 128], strides = [1, 1, 1, 1]} : vector<2x8x8x128xf32> to vector<2x1x8x128xf32>
    %183 = vector.shape_cast %182 : vector<2x1x8x128xf32> to vector<2x8x128xf32>
    %184 = arith.addf %181, %183 : vector<2x8x128xf32>
    %185 = vector.extract_strided_slice %163 {offsets = [0, 2, 0], sizes = [2, 1, 128], strides = [1, 1, 1]} : vector<2x8x128xf32> to vector<2x1x128xf32>
    %186 = vector.shape_cast %185 : vector<2x1x128xf32> to vector<2x1x128xf32>
    %187 = vector.broadcast %186 : vector<2x1x128xf32> to vector<2x8x128xf32>
    %188 = arith.addf %187, %164 : vector<2x8x128xf32>
    %189 = vector.extract_strided_slice %170 {offsets = [0, 2, 0, 0], sizes = [2, 1, 8, 128], strides = [1, 1, 1, 1]} : vector<2x8x8x128xf32> to vector<2x1x8x128xf32>
    %190 = vector.shape_cast %189 : vector<2x1x8x128xf32> to vector<2x8x128xf32>
    %191 = arith.addf %188, %190 : vector<2x8x128xf32>
    %192 = vector.extract_strided_slice %163 {offsets = [0, 3, 0], sizes = [2, 1, 128], strides = [1, 1, 1]} : vector<2x8x128xf32> to vector<2x1x128xf32>
    %193 = vector.shape_cast %192 : vector<2x1x128xf32> to vector<2x1x128xf32>
    %194 = vector.broadcast %193 : vector<2x1x128xf32> to vector<2x8x128xf32>
    %195 = arith.addf %194, %164 : vector<2x8x128xf32>
    %196 = vector.extract_strided_slice %170 {offsets = [0, 3, 0, 0], sizes = [2, 1, 8, 128], strides = [1, 1, 1, 1]} : vector<2x8x8x128xf32> to vector<2x1x8x128xf32>
    %197 = vector.shape_cast %196 : vector<2x1x8x128xf32> to vector<2x8x128xf32>
    %198 = arith.addf %195, %197 : vector<2x8x128xf32>
    %199 = vector.extract_strided_slice %163 {offsets = [0, 4, 0], sizes = [2, 1, 128], strides = [1, 1, 1]} : vector<2x8x128xf32> to vector<2x1x128xf32>
    %200 = vector.shape_cast %199 : vector<2x1x128xf32> to vector<2x1x128xf32>
    %201 = vector.broadcast %200 : vector<2x1x128xf32> to vector<2x8x128xf32>
    %202 = arith.addf %201, %164 : vector<2x8x128xf32>
    %203 = vector.extract_strided_slice %170 {offsets = [0, 4, 0, 0], sizes = [2, 1, 8, 128], strides = [1, 1, 1, 1]} : vector<2x8x8x128xf32> to vector<2x1x8x128xf32>
    %204 = vector.shape_cast %203 : vector<2x1x8x128xf32> to vector<2x8x128xf32>
    %205 = arith.addf %202, %204 : vector<2x8x128xf32>
    %206 = vector.extract_strided_slice %163 {offsets = [0, 5, 0], sizes = [2, 1, 128], strides = [1, 1, 1]} : vector<2x8x128xf32> to vector<2x1x128xf32>
    %207 = vector.shape_cast %206 : vector<2x1x128xf32> to vector<2x1x128xf32>
    %208 = vector.broadcast %207 : vector<2x1x128xf32> to vector<2x8x128xf32>
    %209 = arith.addf %208, %164 : vector<2x8x128xf32>
    %210 = vector.extract_strided_slice %170 {offsets = [0, 5, 0, 0], sizes = [2, 1, 8, 128], strides = [1, 1, 1, 1]} : vector<2x8x8x128xf32> to vector<2x1x8x128xf32>
    %211 = vector.shape_cast %210 : vector<2x1x8x128xf32> to vector<2x8x128xf32>
    %212 = arith.addf %209, %211 : vector<2x8x128xf32>
    %213 = vector.extract_strided_slice %163 {offsets = [0, 6, 0], sizes = [2, 1, 128], strides = [1, 1, 1]} : vector<2x8x128xf32> to vector<2x1x128xf32>
    %214 = vector.shape_cast %213 : vector<2x1x128xf32> to vector<2x1x128xf32>
    %215 = vector.broadcast %214 : vector<2x1x128xf32> to vector<2x8x128xf32>
    %216 = arith.addf %215, %164 : vector<2x8x128xf32>
    %217 = vector.extract_strided_slice %170 {offsets = [0, 6, 0, 0], sizes = [2, 1, 8, 128], strides = [1, 1, 1, 1]} : vector<2x8x8x128xf32> to vector<2x1x8x128xf32>
    %218 = vector.shape_cast %217 : vector<2x1x8x128xf32> to vector<2x8x128xf32>
    %219 = arith.addf %216, %218 : vector<2x8x128xf32>
    %220 = vector.extract_strided_slice %163 {offsets = [0, 7, 0], sizes = [2, 1, 128], strides = [1, 1, 1]} : vector<2x8x128xf32> to vector<2x1x128xf32>
    %221 = vector.shape_cast %220 : vector<2x1x128xf32> to vector<2x1x128xf32>
    %222 = vector.broadcast %221 : vector<2x1x128xf32> to vector<2x8x128xf32>
    %223 = arith.addf %222, %164 : vector<2x8x128xf32>
    %224 = vector.extract_strided_slice %170 {offsets = [0, 7, 0, 0], sizes = [2, 1, 8, 128], strides = [1, 1, 1, 1]} : vector<2x8x8x128xf32> to vector<2x1x8x128xf32>
    %225 = vector.shape_cast %224 : vector<2x1x8x128xf32> to vector<2x8x128xf32>
    %226 = arith.addf %223, %225 : vector<2x8x128xf32>
    %227 = vector.shape_cast %177 : vector<2x8x128xf32> to vector<2x1x8x128xf32>
    %228 = vector.shape_cast %184 : vector<2x8x128xf32> to vector<2x1x8x128xf32>
    %229 = vector.shape_cast %191 : vector<2x8x128xf32> to vector<2x1x8x128xf32>
    %230 = vector.shape_cast %198 : vector<2x8x128xf32> to vector<2x1x8x128xf32>
    %231 = vector.shape_cast %205 : vector<2x8x128xf32> to vector<2x1x8x128xf32>
    %232 = vector.shape_cast %212 : vector<2x8x128xf32> to vector<2x1x8x128xf32>
    %233 = vector.shape_cast %219 : vector<2x8x128xf32> to vector<2x1x8x128xf32>
    %234 = vector.shape_cast %226 : vector<2x8x128xf32> to vector<2x1x8x128xf32>
    %235 = tpu.concatenate %227, %228, %229, %230, %231, %232, %233, %234 in 1 : vector<2x1x8x128xf32>, vector<2x1x8x128xf32>, vector<2x1x8x128xf32>, vector<2x1x8x128xf32>, vector<2x1x8x128xf32>, vector<2x1x8x128xf32>, vector<2x1x8x128xf32>, vector<2x1x8x128xf32> -> vector<2x8x8x128xf32>
    %cst_43 = arith.constant dense<0.000000e+00> : vector<2x8x8xf32>
    %236 = vector.multi_reduction <add>, %235, %cst_43 [3] : vector<2x8x8x128xf32> to vector<2x8x8xf32>
    %237 = vector.shape_cast %236 : vector<2x8x8xf32> to vector<2x8x8x1xf32>
    %cst_44 = arith.constant 1.280000e+02 : f32
    %238 = vector.broadcast %cst_44 : f32 to vector<2x8x8x1xf32>
    %239 = arith.divf %237, %238 : vector<2x8x8x1xf32>
    %cst_45 = arith.constant dense<0.000000e+00> : vector<8x8x1xf32>
    %240 = vector.multi_reduction <add>, %239, %cst_45 [0] : vector<2x8x8x1xf32> to vector<8x8x1xf32>
    %241 = vector.shape_cast %240 : vector<8x8x1xf32> to vector<1x8x8x1xf32>
    %cst_46 = arith.constant 2.000000e+00 : f32
    %242 = vector.broadcast %cst_46 : f32 to vector<1x8x8x1xf32>
    %243 = arith.divf %241, %242 : vector<1x8x8x1xf32>
    %244 = arith.mulf %235, %235 : vector<2x8x8x128xf32>
    %cst_47 = arith.constant dense<0.000000e+00> : vector<2x8x8xf32>
    %245 = vector.multi_reduction <add>, %244, %cst_47 [3] : vector<2x8x8x128xf32> to vector<2x8x8xf32>
    %246 = vector.shape_cast %245 : vector<2x8x8xf32> to vector<2x8x8x1xf32>
    %cst_48 = arith.constant 1.280000e+02 : f32
    %247 = vector.broadcast %cst_48 : f32 to vector<2x8x8x1xf32>
    %248 = arith.divf %246, %247 : vector<2x8x8x1xf32>
    %cst_49 = arith.constant dense<0.000000e+00> : vector<8x8x1xf32>
    %249 = vector.multi_reduction <add>, %248, %cst_49 [0] : vector<2x8x8x1xf32> to vector<8x8x1xf32>
    %250 = vector.shape_cast %249 : vector<8x8x1xf32> to vector<1x8x8x1xf32>
    %cst_50 = arith.constant 2.000000e+00 : f32
    %251 = vector.broadcast %cst_50 : f32 to vector<1x8x8x1xf32>
    %252 = arith.divf %250, %251 : vector<1x8x8x1xf32>
    %253 = arith.mulf %243, %243 : vector<1x8x8x1xf32>
    %254 = arith.subf %252, %253 : vector<1x8x8x1xf32>
    %255 = vector.broadcast %243 : vector<1x8x8x1xf32> to vector<2x8x8x128xf32>
    %256 = arith.subf %235, %255 : vector<2x8x8x128xf32>
    %cst_51 = arith.constant 9.99999974E-6 : f32
    %257 = vector.broadcast %cst_51 : f32 to vector<1x8x8x1xf32>
    %258 = arith.addf %254, %257 : vector<1x8x8x1xf32>
    %259 = math.rsqrt %258 : vector<1x8x8x1xf32>
    %260 = vector.broadcast %259 : vector<1x8x8x1xf32> to vector<2x8x8x128xf32>
    %261 = arith.mulf %256, %260 : vector<2x8x8x128xf32>
    %cst_52 = arith.constant 0.000000e+00 : f32
    %262 = vector.broadcast %cst_52 : f32 to vector<2x8x8x128xf32>
    %263 = arith.maximumf %261, %262 : vector<2x8x8x128xf32>
    %264 = arith.addf %111, %263 : vector<2x8x8x128xf32>
    %cst_53 = arith.constant 0.000000e+00 : f32
    %265 = vector.broadcast %cst_53 : f32 to vector<2x8x8x128xf32>
    %266 = arith.subf %265, %264 : vector<2x8x8x128xf32>
    %267 = math.exp %266 : vector<2x8x8x128xf32>
    %cst_54 = arith.constant 1.000000e+00 : f32
    %268 = vector.broadcast %cst_54 : f32 to vector<2x8x8x128xf32>
    %269 = arith.addf %268, %267 : vector<2x8x8x128xf32>
    %cst_55 = arith.constant 1.000000e+00 : f32
    %270 = vector.broadcast %cst_55 : f32 to vector<2x8x8x128xf32>
    %271 = arith.divf %270, %269 : vector<2x8x8x128xf32>
    %272 = math.exp %271 : vector<2x8x8x128xf32>
    %cst_56 = arith.constant dense<0.000000e+00> : vector<2x8x128xf32>
    %273 = vector.multi_reduction <add>, %272, %cst_56 [2] : vector<2x8x8x128xf32> to vector<2x8x128xf32>
    %274 = vector.shape_cast %165 : vector<2x8x128xf32> to vector<2x1x8x128xf32>
    %275 = vector.broadcast %274 : vector<2x1x8x128xf32> to vector<2x8x8x128xf32>
    %276 = arith.mulf %272, %275 : vector<2x8x8x128xf32>
    %cst_57 = arith.constant dense<0.000000e+00> : vector<2x8x128xf32>
    %277 = vector.multi_reduction <add>, %276, %cst_57 [2] : vector<2x8x8x128xf32> to vector<2x8x128xf32>
    %278 = tpu.reciprocal %273 {approx = true} : vector<2x8x128xf32> -> vector<2x8x128xf32>
    %279 = arith.mulf %277, %278 : vector<2x8x128xf32>
    %cst_58 = arith.constant 1.250000e-01 : f32
    %280 = vector.broadcast %cst_58 : f32 to vector<2x8x128xf32>
    %281 = arith.mulf %279, %280 : vector<2x8x128xf32>
    %282 = arith.addf %166, %281 : vector<2x8x128xf32>
    %cst_59 = arith.constant dense<0.000000e+00> : vector<2x8xf32>
    %283 = vector.multi_reduction <add>, %282, %cst_59 [2] : vector<2x8x128xf32> to vector<2x8xf32>
    %284 = vector.shape_cast %283 : vector<2x8xf32> to vector<2x8x1xf32>
    %cst_60 = arith.constant 1.280000e+02 : f32
    %285 = vector.broadcast %cst_60 : f32 to vector<2x8x1xf32>
    %286 = arith.divf %284, %285 : vector<2x8x1xf32>
    %cst_61 = arith.constant dense<0.000000e+00> : vector<8x1xf32>
    %287 = vector.multi_reduction <add>, %286, %cst_61 [0] : vector<2x8x1xf32> to vector<8x1xf32>
    %288 = vector.shape_cast %287 : vector<8x1xf32> to vector<1x8x1xf32>
    %cst_62 = arith.constant 2.000000e+00 : f32
    %289 = vector.broadcast %cst_62 : f32 to vector<1x8x1xf32>
    %290 = arith.divf %288, %289 : vector<1x8x1xf32>
    %291 = arith.mulf %282, %282 : vector<2x8x128xf32>
    %cst_63 = arith.constant dense<0.000000e+00> : vector<2x8xf32>
    %292 = vector.multi_reduction <add>, %291, %cst_63 [2] : vector<2x8x128xf32> to vector<2x8xf32>
    %293 = vector.shape_cast %292 : vector<2x8xf32> to vector<2x8x1xf32>
    %cst_64 = arith.constant 1.280000e+02 : f32
    %294 = vector.broadcast %cst_64 : f32 to vector<2x8x1xf32>
    %295 = arith.divf %293, %294 : vector<2x8x1xf32>
    %cst_65 = arith.constant dense<0.000000e+00> : vector<8x1xf32>
    %296 = vector.multi_reduction <add>, %295, %cst_65 [0] : vector<2x8x1xf32> to vector<8x1xf32>
    %297 = vector.shape_cast %296 : vector<8x1xf32> to vector<1x8x1xf32>
    %cst_66 = arith.constant 2.000000e+00 : f32
    %298 = vector.broadcast %cst_66 : f32 to vector<1x8x1xf32>
    %299 = arith.divf %297, %298 : vector<1x8x1xf32>
    %300 = arith.mulf %290, %290 : vector<1x8x1xf32>
    %301 = arith.subf %299, %300 : vector<1x8x1xf32>
    %302 = vector.broadcast %290 : vector<1x8x1xf32> to vector<2x8x128xf32>
    %303 = arith.subf %282, %302 : vector<2x8x128xf32>
    %cst_67 = arith.constant 9.99999974E-6 : f32
    %304 = vector.broadcast %cst_67 : f32 to vector<1x8x1xf32>
    %305 = arith.addf %301, %304 : vector<1x8x1xf32>
    %306 = math.rsqrt %305 : vector<1x8x1xf32>
    %307 = vector.broadcast %306 : vector<1x8x1xf32> to vector<2x8x128xf32>
    %308 = arith.mulf %303, %307 : vector<2x8x128xf32>
    %309 = arith.addf %158, %308 : vector<2x8x128xf32>
    %cst_68 = arith.constant 0.000000e+00 : f32
    %310 = vector.broadcast %cst_68 : f32 to vector<2x8x128xf32>
    %311 = arith.maximumf %309, %310 : vector<2x8x128xf32>
    %c0_69 = arith.constant 0 : index
    %c0_70 = arith.constant 0 : index
    %c0_71 = arith.constant 0 : index
    %312 = vector.load %arg6[%c0_69, %c0_70, %c0_71] : memref<2x8x128xf32, #tpu.memory_space<vmem>>, vector<2x8x128xf32>
    tpu.vector_store %arg6[%c0_69, %c0_70, %c0_71], %311 {strides = array<i32>} : memref<2x8x128xf32, #tpu.memory_space<vmem>>, vector<2x8x128xf32>,
    %c0_72 = arith.constant 0 : index
    %c0_73 = arith.constant 0 : index
    %c0_74 = arith.constant 0 : index
    %c0_75 = arith.constant 0 : index
    %313 = vector.load %arg7[%c0_72, %c0_73, %c0_74, %c0_75] : memref<2x8x8x128xf32, #tpu.memory_space<vmem>>, vector<2x8x8x128xf32>
    tpu.vector_store %arg7[%c0_72, %c0_73, %c0_74, %c0_75], %264 {strides = array<i32>} : memref<2x8x8x128xf32, #tpu.memory_space<vmem>>, vector<2x8x8x128xf32>,
    return
  }
}

</mosaic_0001>

<bundles_post_ra>
// kernel: gnn_forward.1
= control target key start
LH: loop header
LB: loop body
LE: loop exit
PB: predicated region body
PF: predicated region fallthrough
CT: control target
= control target key end

     0   :  { %13 = vsyncpa [#allocation3], 0  ;;  %s4290_s0 = inlined_call_operand.hbm [shape: f32[2,8,128], index: 0, kind: input, shape index: {}]   ;;  %s4291_s1 = inlined_call_operand.vmem [shape: f32[2,8,8,128], index: 1, kind: input, shape index: {}, may-alias: {1,7}]   ;;  %s4292_s2 = inlined_call_operand.hbm [shape: bf16[128,512], index: 2, kind: input, shape index: {}]   ;;  %s4293_s3 = inlined_call_operand.vmem [shape: bf16[128,128], index: 3, kind: input, shape index: {}]   ;;  %s4294_s4 = inlined_call_operand.hbm [shape: bf16[128,512], index: 4, kind: input, shape index: {}]   ;;  %s4295_s5 = inlined_call_operand.vmem [shape: bf16[128,128], index: 5, kind: input, shape index: {}]   ;;  %s4296_s6 = inlined_call_operand.hbm [shape: f32[2,8,128], index: 6, kind: output, shape index: {0}]   ;;  %s4297_s7 = inlined_call_operand.vmem [shape: f32[2,8,8,128], index: 7, kind: output, shape index: {1}, may-alias: {1,7}]  }
   0x1   :  { %14 = vsyncpa [#allocation6], 0 }
   0x2   :  { %15 = vsyncpa [#allocation4], 0  ;;  %s3276_s24 = smov [#allocation5]  }
   0x3   :  { %s35_s25 = sshll.u32 %s3276_s24, 4  ;;  %s36_s25 = int_to_ptr.vmem [resolvable:$true] %s35_s25 }
   0x4   :  { %s3198_s26 = scalar_lea.vmem %s36_s25, 4096  ;;  %p3203_p1 = scmp.lt.s32.totalorder %s36_s25, %s36_s25 }
   0x5   :  { %p3199_p0 = scmp.ne.s32.totalorder %s36_s25, %s3198_s26  ;;  %p3204_p2 = scmp.lt.s32.totalorder %s3198_s26, %s3198_s26 }
   0x7   :  { %p3205_p3 = por %p3204_p2, %p3203_p1 }
   0x9   :  { %p3206_p4 = pnand %p3205_p3, %p3199_p0 }
   0xb   :  { %3209 = shalt.err (!%p3206_p4)
}
   0xc   :  { %s3277_s27 = smov 256   ;;  %s3278_s28 = smov 16  }
   0xd   :  { %41 = dma.hbm_to_vmem [thread:$0]  %s4292_s2, 4096, %s36_s25, [#allocation6], %s3277_s27, %s3277_s27, %s3278_s28  }
   0xe   :  { %s3279_s8 = smov [#allocation2]  }
   0xf   :  { %s21_s9 = sshll.u32 %s3279_s8, 4  ;;  %s22_s9 = int_to_ptr.vmem [resolvable:$true] %s21_s9 }
  0x10   :  { %s3218_s10 = scalar_lea.vmem %s22_s9, 256  ;;  %p3223_p6 = scmp.lt.s32.totalorder %s22_s9, %s22_s9 }
  0x11   :  { %p3219_p5 = scmp.ne.s32.totalorder %s22_s9, %s3218_s10  ;;  %p3224_p7 = scmp.lt.s32.totalorder %s3218_s10, %s3218_s10 }
  0x13   :  { %p3225_p8 = por %p3224_p7, %p3223_p6 }
  0x15   :  { %p3226_p9 = pnand %p3225_p8, %p3219_p5 }
  0x17   :  { %3229 = shalt.err (!%p3226_p9)
}
  0x18   :  { %s3280_s11 = smov 128   ;;  %s3281_s12 = smov 8  }
  0x19   :  { %27 = dma.hbm_to_vmem [thread:$0]  %s4290_s0, 256, %s22_s9, [#allocation3], %s3280_s11, %s3280_s11, %s3281_s12  }
  0x1a   :  { %s3282_s2 = smov [#allocation7]  }
  0x1b   :  { %s49_s15 = sshll.u32 %s3282_s2, 4  ;;  %s50_s15 = int_to_ptr.vmem [resolvable:$true] %s49_s15 }
  0x1c   :  { %s3238_s16 = scalar_lea.vmem %s50_s15, 4096  ;;  %p3243_p11 = scmp.lt.s32.totalorder %s50_s15, %s50_s15 }
  0x1d   :  { %p3239_p10 = scmp.ne.s32.totalorder %s50_s15, %s3238_s16  ;;  %p3244_p12 = scmp.lt.s32.totalorder %s3238_s16, %s3238_s16 }
  0x1f   :  { %p3245_p13 = por %p3244_p12, %p3243_p11 }
  0x21   :  { %p3246_p0 = pnand %p3245_p13, %p3239_p10 }
  0x23   :  { %3249 = shalt.err (!%p3246_p0)
}
  0x24   :  { %55 = dma.hbm_to_vmem [thread:$0]  %s4294_s4, 4096, %s50_s15, [#allocation6], %s3277_s27, %s3277_s27, %s3278_s28  }
  0x25   :  { %3270 = dma.done.wait [#allocation3], 256  }
  0x26   :  { %3271 = vsyncadd [#allocation3], 4294967040 }
  0x27   :  { %3272 = dma.done.wait [#allocation6], 8192  }
  0x28   :  { %3273 = vsyncadd [#allocation6], 4294959104  ;;  %v3283_v0 = vmov 0   ;;  %v2784_v1 = vld [vmem:[#allocation5 + $0xe4] ss:$16 sps:$4 sm:$0xff]   ;;  %v69_v18 = vld [vmem:[#allocation2 + $0x8] sm:$0xff] }
  0x29   :  { %375 = vmatprep.mubr.bf16.mxu0 %v3283_v0  ;;  %418 = vmatprep.mubr.bf16.mxu1 %v3283_v0  ;;  %v2786_v2 = vld [vmem:[#allocation5 + $0xe0] ss:$16 sps:$4 sm:$0xff]   ;;  %v2787_v3 = vld [vmem:[#allocation5 + $0xc4] ss:$16 sps:$4 sm:$0xff]   ;;  %v2808_v19 = vld [vmem:[%s4293_s3 + $0x38] sm:$0xff]   ;;  %vm1320_vm0 = vcmask 1041409  }
  0x2a   :  { %343 = vmatprep.subr.bf16.mxu0 %v2784_v1  ;;  %v2789_v4 = vld [vmem:[#allocation5 + $0xc0] ss:$16 sps:$4 sm:$0xff]   ;;  %v2790_v5 = vld [vmem:[#allocation5 + $0xa4] ss:$16 sps:$4 sm:$0xff]   ;;  %v3350_v21 = vld [vmem:[%s4291_s1 + $0x8] sm:$0xff]  ;;  %vm1322_vm1 = vcmask 1042434  }
  0x2b   :  { %344 = vmatpush1.bf16.msra.mxu0 %v2786_v2  ;;  %v2792_v6 = vld [vmem:[#allocation5 + $0xa0] ss:$16 sps:$4 sm:$0xff]   ;;  %v2793_v7 = vld [vmem:[#allocation5 + $0x84] ss:$16 sps:$4 sm:$0xff]   ;;  %v2810_v25 = vld [vmem:[%s4293_s3 + $0x28] sm:$0xff]   ;;  %vm1324_vm2 = vcmask 1043459  }
  0x2c   :  { %345 = vmatprep.subr.bf16.mxu0 %v2787_v3  ;;  %v2795_v8 = vld [vmem:[#allocation5 + $0x80] ss:$16 sps:$4 sm:$0xff]   ;;  %v2796_v9 = vld [vmem:[#allocation5 + $0x64] ss:$16 sps:$4 sm:$0xff]   ;;  %v2812_v27 = vld [vmem:[%s4293_s3 + $0x18] sm:$0xff]   ;;  %vm1326_vm3 = vcmask 1044484  }
  0x2d   :  { %v2798_v10 = vld [vmem:[#allocation5 + $0x60] ss:$16 sps:$4 sm:$0xff]   ;;  %v2799_v11 = vld [vmem:[#allocation5 + $0x44] ss:$16 sps:$4 sm:$0xff]   ;;  %v2814_v29 = vld [vmem:[%s4293_s3 + $0x8] sm:$0xff]   ;;  %vm1328_vm4 = vcmask 1045509  }
  0x2e   :  { %v2801_v12 = vld [vmem:[#allocation5 + $0x40] ss:$16 sps:$4 sm:$0xff]   ;;  %v2802_v13 = vld [vmem:[#allocation5 + $0x24] ss:$16 sps:$4 sm:$0xff]   ;;  %v3386_v32 = vld [vmem:[%s4291_s1 + $0x18] sm:$0xff]  ;;  %vm1330_vm5 = vcmask 1046534  }
  0x2f   :  { %346 = vmatpush1.bf16.msra.mxu0 %v2789_v4  ;;  %v2804_v14 = vld [vmem:[#allocation5 + $0x20] ss:$16 sps:$4 sm:$0xff]   ;;  %v2805_v15 = vld [vmem:[#allocation5 + $0x4] ss:$16 sps:$4 sm:$0xff]   ;;  %v3396_v34 = vld [vmem:[%s4291_s1 + $0x28] sm:$0xff]  ;;  %vm1332_vm6 = vcmask 1047559  }
  0x30   :  { %347 = vmatprep.subr.bf16.mxu0 %v2790_v5  ;;  %v2807_v16 = vld [vmem:[#allocation5] ss:$16 sps:$4 sm:$0xff]   ;;  %v3410_v38 = vld [vmem:[%s4291_s1 + $0x38] sm:$0xff]  ;;  %v3420_v40 = vld [vmem:[%s4291_s1 + $0x48] sm:$0xff]  ;;  %v582_v5 = vlaneseq }
  0x31   :  { %v68_v17 = vld [vmem:[#allocation2] sm:$0xff]  ;;  %v2809_v23 = vld [vmem:[%s4293_s3 + $0x30] sm:$0xff]   ;;  %v3434_v44 = vld [vmem:[%s4291_s1 + $0x58] sm:$0xff] }
  0x32   :  { %v3345_v20 = vld [vmem:[%s4291_s1] sm:$0xff]  ;;  %v3352_v22 = vpack.c.bf16 %v69_v18, %v68_v17  ;;  %v2813_v28 = vld [vmem:[%s4293_s3 + $0x10] sm:$0xff]   ;;  %v3444_v46 = vld [vmem:[%s4291_s1 + $0x68] sm:$0xff] }
  0x33   :  { %348 = vmatpush1.bf16.msra.mxu0 %v2792_v6  ;;  %v429_v24 = vpack.c.bf16 %v3350_v21, %v3345_v20  ;;  %v2811_v26 = vld [vmem:[%s4293_s3 + $0x20] sm:$0xff]   ;;  %v3381_v31 = vld [vmem:[%s4291_s1 + $0x10] sm:$0xff]  ;;  %v3458_v50 = vld [vmem:[%s4291_s1 + $0x78] sm:$0xff] }
  0x34   :  { %349 = vmatprep.subr.bf16.mxu0 %v2793_v7  ;;  %v2815_v30 = vld [vmem:[%s4293_s3] sm:$0xff]   ;;  %v430_v35 = vpack.c.bf16 %v3386_v32, %v3381_v31  ;;  %v3405_v37 = vld [vmem:[%s4291_s1 + $0x30] sm:$0xff]  ;;  %v2816_v52 = vld [vmem:[#allocation5 + $0xec] ss:$16 sps:$4 sm:$0xff]   ;;  %v3467_v7 = vshrl.u32 %v582_v5, 7 }
  0x35   :  { %v3391_v33 = vld [vmem:[%s4291_s1 + $0x20] sm:$0xff]  ;;  %v432_v41 = vpack.c.bf16 %v3410_v38, %v3405_v37  ;;  %v3429_v43 = vld [vmem:[%s4291_s1 + $0x50] sm:$0xff]  ;;  %v2818_v53 = vld [vmem:[#allocation5 + $0xe8] ss:$16 sps:$4 sm:$0xff]   ;;  %386 = vmatprep.subr.bf16.mxu1 %v2816_v52 }
  0x36   :  { %v431_v36 = vpack.c.bf16 %v3396_v34, %v3391_v33  ;;  %v3415_v39 = vld [vmem:[%s4291_s1 + $0x40] sm:$0xff]  ;;  %v434_v47 = vpack.c.bf16 %v3434_v44, %v3429_v43  ;;  %v3453_v49 = vld [vmem:[%s4291_s1 + $0x70] sm:$0xff]  ;;  %387 = vmatpush1.bf16.msra.mxu1 %v2818_v53  ;;  %v2819_v54 = vld [vmem:[#allocation5 + $0xcc] ss:$16 sps:$4 sm:$0xff]  }
  0x37   :  { %350 = vmatpush1.bf16.msra.mxu0 %v2795_v8  ;;  %v433_v42 = vpack.c.bf16 %v3420_v40, %v3415_v39  ;;  %v3439_v45 = vld [vmem:[%s4291_s1 + $0x60] sm:$0xff]  ;;  %v436_v51 = vpack.c.bf16 %v3458_v50, %v3453_v49  ;;  %v2821_v55 = vld [vmem:[#allocation5 + $0xc8] ss:$16 sps:$4 sm:$0xff]   ;;  %388 = vmatprep.subr.bf16.mxu1 %v2819_v54  ;;  %v2822_v56 = vld [vmem:[#allocation5 + $0xac] ss:$16 sps:$4 sm:$0xff]  }
  0x38   :  { %351 = vmatprep.subr.bf16.mxu0 %v2796_v9  ;;  %v435_v48 = vpack.c.bf16 %v3444_v46, %v3439_v45  ;;  %v2824_v57 = vld [vmem:[#allocation5 + $0xa8] ss:$16 sps:$4 sm:$0xff]   ;;  %v2825_v58 = vld [vmem:[#allocation5 + $0x8c] ss:$16 sps:$4 sm:$0xff]  }
  0x39   :  { %v2827_v59 = vld [vmem:[#allocation5 + $0x88] ss:$16 sps:$4 sm:$0xff]   ;;  %v2828_v60 = vld [vmem:[#allocation5 + $0x6c] ss:$16 sps:$4 sm:$0xff]  }
  0x3a   :  { %389 = vmatpush1.bf16.msra.mxu1 %v2821_v55  ;;  %v2830_v61 = vld [vmem:[#allocation5 + $0x68] ss:$16 sps:$4 sm:$0xff]   ;;  %v2831_v62 = vld [vmem:[#allocation5 + $0x4c] ss:$16 sps:$4 sm:$0xff]  }
  0x3b   :  { %352 = vmatpush1.bf16.msra.mxu0 %v2798_v10  ;;  %390 = vmatprep.subr.bf16.mxu1 %v2822_v56  ;;  %v2833_v63 = vld [vmem:[#allocation5 + $0x48] ss:$16 sps:$4 sm:$0xff]   ;;  %v2834_v1 = vld [vmem:[#allocation5 + $0x2c] ss:$16 sps:$4 sm:$0xff]   ;;  %v3474_v10 = vsub.s32 5, %v3467_v7 }
  0x3c   :  { %353 = vmatprep.subr.bf16.mxu0 %v2799_v11  ;;  %v2836_v2 = vld [vmem:[#allocation5 + $0x28] ss:$16 sps:$4 sm:$0xff]   ;;  %v2837_v3 = vld [vmem:[#allocation5 + $0xc] ss:$16 sps:$4 sm:$0xff]  }
  0x3d   :  { %v2839_v4 = vld [vmem:[#allocation5 + $0x8] ss:$16 sps:$4 sm:$0xff]   ;;  %4326 = vst [vmem:[#allocation12_spill] sm:$0xff] %v3474_v10 }
  0x3e   :  { %391 = vmatpush1.bf16.msra.mxu1 %v2824_v57 }
  0x3f   :  { %354 = vmatpush1.bf16.msra.mxu0 %v2801_v12  ;;  %392 = vmatprep.subr.bf16.mxu1 %v2825_v58 }
  0x40   :  { %355 = vmatprep.subr.bf16.mxu0 %v2802_v13 }
  0x42   :  { %393 = vmatpush1.bf16.msra.mxu1 %v2827_v59 }
  0x43   :  { %356 = vmatpush1.bf16.msra.mxu0 %v2804_v14  ;;  %394 = vmatprep.subr.bf16.mxu1 %v2828_v60 }
  0x44   :  { %357 = vmatprep.subr.bf16.mxu0 %v2805_v15  ;;  %v3489_v15 = vsub.s32 0, %v3467_v7 }
  0x46   :  { %395 = vmatpush1.bf16.msra.mxu1 %v2830_v61  ;;  %4328 = vst [vmem:[#allocation14_spill] sm:$0xff] %v3489_v15 }
  0x47   :  { %358 = vmatpush1.bf16.msra.mxu0 %v2807_v16  ;;  %396 = vmatprep.subr.bf16.mxu1 %v2831_v62  ;;  %v3492_v16 = vsub.s32 1, %v3467_v7  ;;  %v3532_v62 = vsub.s32 6, %v3467_v7 }
  0x48   :  { %2711 = vmatprep.subr.bf16.mxu0 %v2808_v19 }
  0x49   :  { %4329 = vst [vmem:[#allocation15_spill] sm:$0xff] %v3492_v16  ;;  %4331 = vst [vmem:[#allocation17_spill] sm:$0xff] %v3532_v62 }
  0x4a   :  { %376 = vmatmul.mubr.bf16.vlgmr.msra.gmra.mxu0 %v3352_v22  ;;  %397 = vmatpush1.bf16.msra.mxu1 %v2833_v63 }
  0x4b   :  { %2712 = vmatpush3.bf16.msra.mxu0 %v2808_v19  ;;  %2727 = vmatprep.mubr.bf16.mxu0 %v429_v24 }
  0x4c   :  { %2713 = vmatprep.subr.bf16.mxu0 %v2809_v23  ;;  %398 = vmatprep.subr.bf16.mxu1 %v2834_v1 }
  0x4e   :  { %399 = vmatpush1.bf16.msra.mxu1 %v2836_v2  ;;  %v3539_v2 = vsub.s32 4, %v3467_v7 }
  0x4f   :  { %2714 = vmatpush3.bf16.msra.mxu0 %v2809_v23  ;;  %400 = vmatprep.subr.bf16.mxu1 %v2837_v3 }
  0x50   :  { %2715 = vmatprep.subr.bf16.mxu0 %v2810_v25  ;;  %4332 = vst [vmem:[#allocation18_spill] sm:$0xff] %v3539_v2 }
  0x52   :  { %401 = vmatpush1.bf16.msra.mxu1 %v2839_v4 }
  0x53   :  { %2716 = vmatpush3.bf16.msra.mxu0 %v2810_v25 }
  0x54   :  { %2717 = vmatprep.subr.bf16.mxu0 %v2811_v26 }
  0x55   :  { %419 = vmatmul.mubr.bf16.vlgmr.msra.gmra.mxu1 %v3352_v22 }
  0x56   :  { %1568 = vmatprep.mubr.bf16.mxu1 %v3283_v0 }
  0x57   :  { %2718 = vmatpush3.bf16.msra.mxu0 %v2811_v26  ;;  %v3504_v26 = vsub.s32 3, %v3467_v7 }
  0x58   :  { %2719 = vmatprep.subr.bf16.mxu0 %v2812_v27 }
  0x59   :  { %4330 = vst [vmem:[#allocation16_spill] sm:$0xff] %v3504_v26 }
  0x5b   :  { %2720 = vmatpush3.bf16.msra.mxu0 %v2812_v27 }
  0x5c   :  { %2721 = vmatprep.subr.bf16.mxu0 %v2813_v28 }
  0x5f   :  { %2722 = vmatpush3.bf16.msra.mxu0 %v2813_v28 }
  0x60   :  { %2723 = vmatprep.subr.bf16.mxu0 %v2814_v29 }
  0x63   :  { %2724 = vmatpush3.bf16.msra.mxu0 %v2814_v29 }
  0x64   :  { %2725 = vmatprep.subr.bf16.mxu0 %v2815_v30 }
  0x67   :  { %2726 = vmatpush3.bf16.msra.mxu0 %v2815_v30 }
  0x6a   :  { %2728 = vmatmul.mubr.bf16.vlgmr.msra.gmra.mxu0 %v430_v35 }
  0x6b   :  { %2731 = vmatprep.mubr.bf16.mxu0 %v431_v36 }
  0x72   :  { %2732 = vmatmul.mubr.bf16.gmra.mxu0 %v432_v41 }
  0x73   :  { %2735 = vmatprep.mubr.bf16.mxu0 %v433_v42 }
  0x7a   :  { %2736 = vmatmul.mubr.bf16.gmra.mxu0 %v434_v47 }
  0x7b   :  { %2739 = vmatprep.mubr.bf16.mxu0 %v435_v48 }
  0x82   :  { %2740 = vmatmul.mubr.bf16.gmra.mxu0 %v436_v51 }
  0x83   :  { %1611 = vmatprep.mubr.bf16.mxu0 %v3283_v0  ;;  %v3484_v0 = vsub.s32 2, %v3467_v7 }
  0x85   :  { %4327 = vst [vmem:[#allocation13_spill] sm:$0xff] %v3484_v0 }
 0x10a   :  { %v3465_v6 = vpop.f32.mrf.mxu0 }
 0x10b   :  { %v609_v14 = vrot.slane %v3465_v6, %v3484_v0  ;;  %v585_v18 = vrot.slane %v3465_v6, %v3489_v15  ;;  %v597_v23 = vrot.slane %v3465_v6, %v3492_v16  ;;  %v621_v35 = vrot.slane %v3465_v6, %v3504_v26 }
 0x10c   :  { %v3469_v8 = vpop.f32.mrf.mxu0  ;;  %v657_v3 = vrot.slane %v3465_v6, %v3532_v62 }
 0x10d   :  { %v614_v17 = vadd.f32 %v609_v14, %v3469_v8  ;;  %v590_v25 = vadd.f32 %v585_v18, %v3469_v8  ;;  %v602_v29 = vadd.f32 %v597_v23, %v3469_v8  ;;  %v626_v51 = vadd.f32 %v621_v35, %v3469_v8 }
 0x10e   :  { %v3471_v9 = vpop.f32.mrf.mxu0  ;;  %v633_v14 = vrot.slane %v3465_v6, %v3539_v2  ;;  %v662_v18 = vadd.f32 %v657_v3, %v3469_v8 }
 0x10f   :  { %v649_v12 = vrot.slane %v3471_v9, %v3474_v10  ;;  %v613_v52 = vrot.slane %v3471_v9, %v3484_v0  ;;  %v589_v57 = vrot.slane %v3471_v9, %v3489_v15  ;;  %v625_v4 = vrot.slane %v3471_v9, %v3504_v26 }
 0x110   :  { %v3476_v11 = vpop.f32.mrf.mxu0  ;;  %v601_v23 = vrot.slane %v3471_v9, %v3492_v16  ;;  %v637_v3 = vrot.slane %v3471_v9, %v3539_v2 }
 0x111   :  { %v3481_v13 = vadd.f32 %v649_v12, %v3476_v11  ;;  %v615_v56 = vadd.f32 %v613_v52, %v3476_v11  ;;  %v591_v63 = vadd.f32 %v589_v57, %v3476_v11 }
 0x112   :  { %v603_v35 = vadd.f32 %v601_v23, %v3476_v11 }
 0x12a   :  { %v2729_v19 = vpop.f32.mrf.mxu0 }
 0x12b   :  { %v3497_v22 = vadd.f32 %v2729_v19, %v614_v17  ;;  %v627_v19 = vadd.f32 %v625_v4, %v3476_v11 }
 0x12c   :  { %v519_v24 = vpop.f32.mrf.mxu0 }
 0x12d   :  { %682 = vadd.xlane.f32.xlu0 %v3497_v22  ;;  %v3506_v28 = vadd.f32 %v590_v25, %v519_v24  ;;  %v746_v42 = vmul.f32 %v3497_v22, %v3497_v22 }
 0x12e   :  { %v2730_v27 = vpop.f32.mrf.mxu0 }
 0x12f   :  { %v3521_v54 = vadd.f32 %v2730_v27, %v626_v51  ;;  %v744_v60 = vmul.f32 %v3506_v28, %v3506_v28 }
 0x130   :  { %v522_v30 = vpop.f32.mrf.mxu0 }
 0x131   :  { %v3511_v36 = vadd.f32 %v602_v29, %v522_v30  ;;  %678 = vadd.xlane.f32.xlu0 %v3506_v28  ;;  %v747_v5 = vmul.f32 %v3521_v54, %v3521_v54  ;;  %v638_v29 = vadd.f32 %v633_v14, %v3469_v8  ;;  %v3563_v30 = vsub.s32 7, %v3467_v7 }
 0x132   :  { %v2733_v41 = vpop.f32.mrf.mxu0 }
 0x133   :  { %v745_v47 = vmul.f32 %v3511_v36, %v3511_v36  ;;  %v3557_v24 = vadd.f32 %v2733_v41, %v662_v18  ;;  %4333 = vst [vmem:[#allocation19_spill] sm:$0xff] %v3563_v30  ;;  %v669_v41 = vrot.slane %v3465_v6, %v3563_v30 }
 0x134   :  { %v535_v48 = vpop.f32.mrf.mxu0 }
 0x135   :  { %764 = vadd.xlane.f32.xlu0 %v746_v42  ;;  %762 = vadd.xlane.f32.xlu1 %v745_v47  ;;  %v3568_v42 = vadd.f32 %v638_v29, %v535_v48  ;;  %v674_v52 = vadd.f32 %v669_v41, %v3469_v8  ;;  %v645_v48 = vrot.slane %v3465_v6, %v3474_v10 }
 0x136   :  { %v2734_v53 = vpop.f32.mrf.mxu0  ;;  %v750_v18 = vmul.f32 %v3557_v24, %v3557_v24 }
 0x137   :  { %v748_v7 = vmul.f32 %v3568_v42, %v3568_v42  ;;  %v3585_v57 = vadd.f32 %v2734_v53, %v674_v52 }
 0x138   :  { %v538_v55 = vpop.f32.mrf.mxu0 }
 0x139   :  { %684 = vadd.xlane.f32.xlu0 %v3521_v54 }
 0x13a   :  { %v2737_v58 = vpop.f32.mrf.mxu0 }
 0x13b   :  { %v3527_v59 = vadd.f32 %v2737_v58, %v615_v56  ;;  %v661_v56 = vrot.slane %v3471_v9, %v3532_v62 }
 0x13c   :  { %v551_v61 = vpop.f32.mrf.mxu0 }
 0x13d   :  { %760 = vadd.xlane.f32.xlu0 %v744_v60  ;;  %698 = vadd.xlane.f32.xlu1 %v3527_v59  ;;  %v3536_v1 = vadd.f32 %v591_v63, %v551_v61  ;;  %v754_v12 = vmul.f32 %v3527_v59, %v3527_v59  ;;  %v650_v61 = vadd.f32 %v645_v48, %v3469_v8 }
 0x13e   :  { %v2738_v17 = vpop.f32.mrf.mxu0  ;;  %v663_v63 = vadd.f32 %v661_v56, %v3476_v11 }
 0x13f   :  { %v3559_v25 = vadd.f32 %v2738_v17, %v627_v19  ;;  %v3594_v6 = vadd.f32 %v650_v61, %v538_v55  ;;  %v752_v55 = vmul.f32 %v3536_v1, %v3536_v1  ;;  %v673_v17 = vrot.slane %v3471_v9, %v3563_v30 }
 0x140   :  { %v554_v27 = vpop.f32.mrf.mxu0 }
 0x141   :  { %680 = vadd.xlane.f32.xlu0 %v3511_v36  ;;  %694 = vadd.xlane.f32.xlu1 %v3536_v1  ;;  %v3570_v47 = vadd.f32 %v603_v35, %v554_v27  ;;  %v755_v51 = vmul.f32 %v3559_v25, %v3559_v25  ;;  %v675_v27 = vadd.f32 %v673_v17, %v3476_v11 }
 0x142   :  { %v2741_v60 = vpop.f32.mrf.mxu0  ;;  %v751_v35 = vmul.f32 %v3585_v57, %v3585_v57 }
 0x143   :  { %v753_v58 = vmul.f32 %v3570_v47, %v3570_v47  ;;  %v3596_v4 = vadd.f32 %v2741_v60, %v663_v63 }
 0x144   :  { %v567_v53 = vpop.f32.mrf.mxu0 }
 0x145   :  { %766 = vadd.xlane.f32.xlu0 %v747_v5  ;;  %780 = vadd.xlane.f32.xlu1 %v754_v12  ;;  %v639_v5 = vadd.f32 %v637_v3, %v3476_v11  ;;  %v749_v12 = vmul.f32 %v3594_v6, %v3594_v6  ;;  %v758_v14 = vmul.f32 %v3596_v4, %v3596_v4 }
 0x146   :  { %v2742_v23 = vpop.f32.mrf.mxu0 }
 0x147   :  { %v3601_v8 = vadd.f32 %v639_v5, %v567_v53  ;;  %v3617_v29 = vadd.f32 %v2742_v23, %v675_v27 }
 0x148   :  { %v570_v41 = vpop.f32.mrf.mxu0 }
 0x149   :  { %690 = vadd.xlane.f32.xlu0 %v3557_v24  ;;  %700 = vadd.xlane.f32.xlu1 %v3559_v25  ;;  %v756_v19 = vmul.f32 %v3601_v8, %v3601_v8  ;;  %v3623_v9 = vadd.f32 %v3481_v13, %v570_v41  ;;  %v759_v11 = vmul.f32 %v3617_v29, %v3617_v29 }
 0x14d   :  { %686 = vadd.xlane.f32.xlu0 %v3568_v42  ;;  %696 = vadd.xlane.f32.xlu1 %v3570_v47 }
 0x151   :  { %768 = vadd.xlane.f32.xlu0 %v748_v7  ;;  %782 = vadd.xlane.f32.xlu1 %v755_v51  ;;  %v757_v7 = vmul.f32 %v3623_v9, %v3623_v9 }
 0x155   :  { %692 = vadd.xlane.f32.xlu0 %v3585_v57  ;;  %778 = vadd.xlane.f32.xlu1 %v753_v58 }
 0x159   :  { %688 = vadd.xlane.f32.xlu0 %v3594_v6  ;;  %706 = vadd.xlane.f32.xlu1 %v3596_v4 }
 0x15d   :  { %770 = vadd.xlane.f32.xlu0 %v749_v12  ;;  %702 = vadd.xlane.f32.xlu1 %v3601_v8 }
 0x161   :  { %776 = vadd.xlane.f32.xlu0 %v752_v55  ;;  %788 = vadd.xlane.f32.xlu1 %v758_v14 }
 0x165   :  { %772 = vadd.xlane.f32.xlu0 %v750_v18  ;;  %784 = vadd.xlane.f32.xlu1 %v756_v19 }
 0x169   :  { %774 = vadd.xlane.f32.xlu0 %v751_v35  ;;  %708 = vadd.xlane.f32.xlu1 %v3617_v29 }
 0x16d   :  { %704 = vadd.xlane.f32.xlu1 %v3623_v9 }
 0x171   :  { %786 = vadd.xlane.f32.xlu1 %v757_v7 }
 0x175   :  { %790 = vadd.xlane.f32.xlu1 %v759_v11 }
 0x1b6   :  { %v683_v51 = vpop.xlane.xlu0 %682 }
 0x1b7   :  { %v713_v63 = vmul.f32 0.0078125, %v683_v51 }
 0x1ba   :  { %v679_v52 = vpop.xlane.xlu0 %678 }
 0x1be   :  { %v765_v48 = vpop.xlane.xlu0 %764  ;;  %v763_v56 = vpop.xlane.xlu1 %762 }
 0x1bf   :  { %v794_v14 = vmul.f32 0.0078125, %v765_v48  ;;  %v793_v16 = vmul.f32 0.0078125, %v763_v56 }
 0x1c2   :  { %v685_v58 = vpop.xlane.xlu0 %684 }
 0x1c3   :  { %v714_v11 = vmul.f32 0.0078125, %v685_v58 }
 0x1c6   :  { %v3630_v60 = vpop.xlane.xlu0 %760  ;;  %v699_v61 = vpop.xlane.xlu1 %698 }
 0x1c7   :  { %v721_v13 = vmul.f32 0.0078125, %v699_v61 }
 0x1c9   :  { %v729_v5 = vadd.f32 %v721_v13, %v713_v63 }
 0x1ca   :  { %v681_v3 = vpop.xlane.xlu0 %680  ;;  %v695_v53 = vpop.xlane.xlu1 %694 }
 0x1cb   :  { %v738_v17 = vmul.f32 0.5, %v729_v5  ;;  %v712_v26 = vmul.f32 0.0078125, %v681_v3 }
 0x1cd   :  { %v826_v35 = vmul.f32 %v738_v17, %v738_v17 }
 0x1ce   :  { %v767_v12 = vpop.xlane.xlu0 %766  ;;  %v781_v55 = vpop.xlane.xlu1 %780 }
 0x1cf   :  { %v802_v18 = vmul.f32 0.0078125, %v781_v55  ;;  %v795_v48 = vmul.f32 0.0078125, %v767_v12 }
 0x1d1   :  { %v810_v19 = vadd.f32 %v802_v18, %v794_v14 }
 0x1d2   :  { %v691_v23 = vpop.xlane.xlu0 %690  ;;  %v701_v27 = vpop.xlane.xlu1 %700 }
 0x1d3   :  { %v818_v41 = vmul.f32 0.5, %v810_v19  ;;  %v722_v7 = vmul.f32 0.0078125, %v701_v27 }
 0x1d5   :  { %v834_v10 = vsub.f32 %v818_v41, %v826_v35  ;;  %v730_v51 = vadd.f32 %v722_v7, %v714_v11  ;;  %v719_v7 = vmul.f32 0.0078125, %v695_v53 }
 0x1d6   :  { %v687_v30 = vpop.xlane.xlu0 %686  ;;  %v697_v2 = vpop.xlane.xlu1 %696 }
 0x1d7   :  { %v858_v61 = vadd.f32 1e-05, %v834_v10  ;;  %v720_v62 = vmul.f32 0.0078125, %v697_v2  ;;  %v3632_v5 = vmul.f32 0.5, %v730_v51  ;;  %v842_v51 = vsub.f32 %v3497_v22, %v738_v17 }
 0x1d8   :  { %v715_v22 = vmul.f32 0.0078125, %v687_v30 }
 0x1d9   :  { %2896 = vrsqrt.f32 %v858_v61  ;;  %v728_v55 = vadd.f32 %v720_v62, %v712_v26  ;;  %v827_v10 = vmul.f32 %v3632_v5, %v3632_v5  ;;  %v711_v61 = vmul.f32 0.0078125, %v679_v52 }
 0x1da   :  { %v769_v13 = vpop.xlane.xlu0 %768  ;;  %v783_v63 = vpop.xlane.xlu1 %782  ;;  %v843_v30 = vsub.f32 %v3521_v54, %v3632_v5  ;;  %v851_v54 = vsub.f32 %v3559_v25, %v3632_v5 }
 0x1db   :  { %v803_v14 = vmul.f32 0.0078125, %v783_v63  ;;  %v3636_v27 = vmul.f32 0.5, %v728_v55  ;;  %v850_v63 = vsub.f32 %v3527_v59, %v738_v17 }
 0x1dd   :  { %v811_v18 = vadd.f32 %v803_v14, %v795_v48  ;;  %v825_v62 = vmul.f32 %v3636_v27, %v3636_v27  ;;  %v727_v14 = vadd.f32 %v719_v7, %v711_v61  ;;  %v792_v7 = vmul.f32 0.0078125, %v3630_v60 }
 0x1de   :  { %v3634_v19 = vpop.xlane.xlu0 %692  ;;  %v779_v58 = vpop.xlane.xlu1 %778 }
 0x1df   :  { %v819_v2 = vmul.f32 0.5, %v811_v18  ;;  %v801_v3 = vmul.f32 0.0078125, %v779_v58  ;;  %v3648_v52 = vmul.f32 0.5, %v727_v14 }
 0x1e1   :  { %v835_v35 = vsub.f32 %v819_v2, %v827_v10  ;;  %v809_v41 = vadd.f32 %v801_v3, %v793_v16  ;;  %v717_v3 = vmul.f32 0.0078125, %v691_v23  ;;  %v824_v60 = vmul.f32 %v3648_v52, %v3648_v52 }
 0x1e2   :  { %v3640_v12 = vpop.xlane.xlu0 %688  ;;  %v707_v11 = vpop.xlane.xlu1 %706 }
 0x1e3   :  { %v859_v26 = vadd.f32 1e-05, %v835_v35  ;;  %v817_v56 = vmul.f32 0.5, %v809_v41  ;;  %v725_v18 = vmul.f32 0.0078125, %v707_v11 }
 0x1e5   :  { %2898 = vrsqrt.f32 %v859_v26  ;;  %v833_v48 = vsub.f32 %v817_v56, %v825_v62  ;;  %v733_v59 = vadd.f32 %v725_v18, %v717_v3 }
 0x1e6   :  { %v2897_v55 = vpop.eup %2896  ;;  %v3646_v16 = vpop.xlane.xlu0 %770 }
 0x1e7   :  { %v703_v53 = vpop.xlane.xlu1 %702  ;;  %v874_v58 = vmul.f32 %v2897_v55, %v842_v51  ;;  %v882_v10 = vmul.f32 %v2897_v55, %v850_v63  ;;  %v857_v2 = vadd.f32 1e-05, %v833_v48  ;;  %v3661_v48 = vmul.f32 0.5, %v733_v59 }
 0x1e8   :  { %v723_v35 = vmul.f32 0.0078125, %v703_v53 }
 0x1e9   :  { %v890_v15 = vmax.f32 %v874_v58, 0.0  ;;  %v898_v41 = vmax.f32 %v882_v10, 0.0  ;;  %2900 = vrsqrt.f32 %v857_v2  ;;  %v796_v58 = vmul.f32 0.0078125, %v769_v13 }
 0x1ea   :  { %v777_v17 = vpop.xlane.xlu0 %776  ;;  %v731_v23 = vadd.f32 %v723_v35, %v715_v22  ;;  %v841_v22 = vsub.f32 %v3511_v36, %v3636_v27  ;;  %v830_v59 = vmul.f32 %v3661_v48, %v3661_v48 }
 0x1eb   :  { %v789_v26 = vpop.xlane.xlu1 %788  ;;  %v3652_v11 = vadd.f32 %v890_v15, %v3381_v31  ;;  %v3655_v62 = vadd.f32 %v898_v41, %v3429_v43  ;;  %v800_v56 = vmul.f32 0.0078125, %v777_v17 }
 0x1ec   :  { %v806_v14 = vmul.f32 0.0078125, %v789_v26  ;;  %v3665_v10 = vmul.f32 0.5, %v731_v23 }
 0x1ed   :  { %v922_v61 = vsub.f32 0.0, %v3652_v11  ;;  %v930_v51 = vsub.f32 0.0, %v3655_v62  ;;  %v808_v63 = vadd.f32 %v800_v56, %v792_v7 }
 0x1ee   :  { %v773_v31 = vpop.xlane.xlu0 %772  ;;  %v828_v25 = vmul.f32 %v3665_v10, %v3665_v10 }
 0x1ef   :  { %v785_v15 = vpop.xlane.xlu1 %784  ;;  %v940_v55 = vmul.f32 1.442695, %v922_v61  ;;  %v816_v43 = vmul.f32 0.5, %v808_v63  ;;  %v798_v18 = vmul.f32 0.0078125, %v773_v31  ;;  %v956_v53 = vmul.f32 1.442695, %v930_v51 }
 0x1f0   :  { %v804_v2 = vmul.f32 0.0078125, %v785_v15  ;;  %v849_v61 = vsub.f32 %v3570_v47, %v3636_v27  ;;  %v716_v31 = vmul.f32 0.0078125, %v3640_v12 }
 0x1f1   :  { %2902 = vpow2.f32 %v940_v55  ;;  %v832_v3 = vsub.f32 %v816_v43, %v824_v60  ;;  %v814_v35 = vadd.f32 %v806_v14, %v798_v18 }
 0x1f2   :  { %v2899_v41 = vpop.eup %2898  ;;  %v812_v17 = vadd.f32 %v804_v2, %v796_v58  ;;  %2904 = vpow2.f32 %v956_v53 }
 0x1f3   :  { %v709_v26 = vpop.xlane.xlu1 %708  ;;  %v875_v7 = vmul.f32 %v2899_v41, %v843_v30  ;;  %v883_v13 = vmul.f32 %v2899_v41, %v851_v54  ;;  %v856_v56 = vadd.f32 1e-05, %v832_v3  ;;  %v822_v23 = vmul.f32 0.5, %v814_v35 }
 0x1f4   :  { %v820_v5 = vmul.f32 0.5, %v812_v17  ;;  %v726_v53 = vmul.f32 0.0078125, %v709_v26  ;;  %v718_v35 = vmul.f32 0.0078125, %v3634_v19  ;;  %v797_v26 = vmul.f32 0.0078125, %v3646_v16 }
 0x1f5   :  { %v891_v51 = vmax.f32 %v875_v7, 0.0  ;;  %v899_v63 = vmax.f32 %v883_v13, 0.0  ;;  %2906 = vrsqrt.f32 %v856_v56  ;;  %v838_v36 = vsub.f32 %v822_v23, %v830_v59  ;;  %v775_v23 = vpop.xlane.xlu0 %774 }
 0x1f6   :  { %v2901_v60 = vpop.eup %2900  ;;  %v836_v15 = vsub.f32 %v820_v5, %v828_v25  ;;  %v734_v7 = vadd.f32 %v726_v53, %v718_v35 }
 0x1f7   :  { %v705_v30 = vpop.xlane.xlu1 %704  ;;  %v3679_v55 = vadd.f32 %v891_v51, %v3386_v32  ;;  %v3682_v43 = vadd.f32 %v899_v63, %v3434_v44  ;;  %v873_v47 = vmul.f32 %v2901_v60, %v841_v22  ;;  %v881_v27 = vmul.f32 %v2901_v60, %v849_v61 }
 0x1f8   :  { %v862_v14 = vadd.f32 1e-05, %v838_v36  ;;  %v860_v18 = vadd.f32 1e-05, %v836_v15  ;;  %v724_v58 = vmul.f32 0.0078125, %v705_v30  ;;  %v799_v36 = vmul.f32 0.0078125, %v775_v23 }
 0x1f9   :  { %4334 = vst [vmem:[#allocation20_spill] sm:$0xff] %v3682_v43  ;;  %v923_v2 = vsub.f32 0.0, %v3679_v55  ;;  %v931_v54 = vsub.f32 0.0, %v3682_v43  ;;  %v889_v3 = vmax.f32 %v873_v47, 0.0  ;;  %v897_v12 = vmax.f32 %v881_v27, 0.0 }
 0x1fa   :  { %2908 = vrsqrt.f32 %v862_v14  ;;  %v732_v32 = vadd.f32 %v724_v58, %v716_v31  ;;  %v3700_v60 = vmul.f32 0.5, %v734_v7  ;;  %v848_v30 = vsub.f32 %v3536_v1, %v3648_v52 }
 0x1fb   :  { %v787_v41 = vpop.xlane.xlu1 %786  ;;  %v942_v59 = vmul.f32 1.442695, %v923_v2  ;;  %v958_v44 = vmul.f32 1.442695, %v931_v54  ;;  %v3688_v22 = vadd.f32 %v889_v3, %v3350_v21  ;;  %v3691_v17 = vadd.f32 %v897_v12, %v3420_v40 }
 0x1fc   :  { %2910 = vrsqrt.f32 %v860_v18  ;;  %v805_v13 = vmul.f32 0.0078125, %v787_v41  ;;  %v3696_v61 = vmul.f32 0.5, %v732_v32  ;;  %v840_v40 = vsub.f32 %v3506_v28, %v3648_v52 }
 0x1fd   :  { %2912 = vpow2.f32 %v942_v59  ;;  %v921_v56 = vsub.f32 0.0, %v3688_v22  ;;  %v929_v19 = vsub.f32 0.0, %v3691_v17  ;;  %v831_v54 = vmul.f32 %v3700_v60, %v3700_v60 }
 0x1fe   :  { %v2903_v25 = vpop.eup %2902  ;;  %2914 = vpow2.f32 %v958_v44  ;;  %v813_v16 = vadd.f32 %v805_v13, %v797_v26  ;;  %v829_v47 = vmul.f32 %v3696_v61, %v3696_v61  ;;  %v846_v52 = vsub.f32 %v3557_v24, %v3661_v48 }
 0x1ff   :  { %v791_v21 = vpop.xlane.xlu1 %790  ;;  %v970_v5 = vadd.f32 1.0, %v2903_v25  ;;  %v938_v51 = vmul.f32 1.442695, %v921_v56  ;;  %v954_v63 = vmul.f32 1.442695, %v929_v19  ;;  %v2905_v15 = vpop.eup %2904  ;;  %v854_v32 = vsub.f32 %v3596_v4, %v3661_v48 }
 0x200   :  { %v807_v31 = vmul.f32 0.0078125, %v791_v21  ;;  %v821_v27 = vmul.f32 0.5, %v813_v16  ;;  %v978_v2 = vadd.f32 1.0, %v2905_v15  ;;  %v844_v41 = vsub.f32 %v3568_v42, %v3665_v10 }
 0x201   :  { %2916 = vrcp.f32 %v970_v5  ;;  %v852_v26 = vsub.f32 %v3601_v8, %v3665_v10 }
 0x202   :  { %v2907_v14 = vpop.eup %2906  ;;  %v815_v18 = vadd.f32 %v807_v31, %v799_v36  ;;  %2918 = vpow2.f32 %v938_v51  ;;  %v837_v58 = vsub.f32 %v821_v27, %v829_v47 }
 0x203   :  { %v872_v28 = vmul.f32 %v2907_v14, %v840_v40  ;;  %v880_v53 = vmul.f32 %v2907_v14, %v848_v30  ;;  %2920 = vpow2.f32 %v954_v63 }
 0x204   :  { %v823_v3 = vmul.f32 0.5, %v815_v18  ;;  %v861_v1 = vadd.f32 1e-05, %v837_v58 }
 0x205   :  { %v888_v12 = vmax.f32 %v872_v28, 0.0  ;;  %v896_v35 = vmax.f32 %v880_v53, 0.0 }
 0x206   :  { %v839_v59 = vsub.f32 %v823_v3, %v831_v54  ;;  %2922 = vrsqrt.f32 %v861_v1 }
 0x207   :  { %v2909_v44 = vpop.eup %2908  ;;  %v3717_v7 = vadd.f32 %v888_v12, %v3345_v20  ;;  %v3720_v13 = vadd.f32 %v896_v35, %v3415_v39  ;;  %2924 = vrcp.f32 %v978_v2  ;;  %v845_v12 = vsub.f32 %v3594_v6, %v3696_v61 }
 0x208   :  { %v878_v24 = vmul.f32 %v2909_v44, %v846_v52  ;;  %v886_v56 = vmul.f32 %v2909_v44, %v854_v32  ;;  %v863_v19 = vadd.f32 1e-05, %v839_v59  ;;  %v847_v59 = vsub.f32 %v3585_v57, %v3700_v60 }
 0x209   :  { %v2911_v4 = vpop.eup %2910  ;;  %v920_v48 = vsub.f32 0.0, %v3717_v7  ;;  %v928_v42 = vsub.f32 0.0, %v3720_v13  ;;  %v855_v44 = vsub.f32 %v3617_v29, %v3700_v60 }
 0x20a   :  { %v2913_v23 = vpop.eup %2912  ;;  %v894_v25 = vmax.f32 %v878_v24, 0.0  ;;  %v902_v21 = vmax.f32 %v886_v56, 0.0  ;;  %v876_v8 = vmul.f32 %v2911_v4, %v844_v41  ;;  %v884_v10 = vmul.f32 %v2911_v4, %v852_v26 }
 0x20b   :  { %v2915_v20 = vpop.eup %2914  ;;  %v971_v40 = vadd.f32 1.0, %v2913_v23  ;;  %v936_v5 = vmul.f32 1.442695, %v920_v48  ;;  %2926 = vrsqrt.f32 %v863_v19  ;;  %v952_v39 = vmul.f32 1.442695, %v928_v42 }
 0x20c   :  { %v3725_v51 = vadd.f32 %v894_v25, %v3405_v37  ;;  %v3728_v16 = vadd.f32 %v902_v21, %v3453_v49  ;;  %v892_v63 = vmax.f32 %v876_v8, 0.0  ;;  %v900_v36 = vmax.f32 %v884_v10, 0.0 }
 0x20d   :  { %2928 = vrcp.f32 %v971_v40  ;;  %v979_v15 = vadd.f32 1.0, %v2915_v20 }
 0x20e   :  { %4335 = vst [vmem:[#allocation21_spill] sm:$0xff] %v3728_v16  ;;  %v2917_v31 = vpop.eup %2916  ;;  %v926_v30 = vsub.f32 0.0, %v3725_v51  ;;  %v934_v47 = vsub.f32 0.0, %v3728_v16  ;;  %v3733_v27 = vadd.f32 %v892_v63, %v3391_v33  ;;  %2930 = vpow2.f32 %v936_v5 }
 0x20f   :  { %v1020_v14 = vmul.f32 1.442695, %v2917_v31  ;;  %v3736_v37 = vadd.f32 %v900_v36, %v3439_v45  ;;  %v2919_v18 = vpop.eup %2918  ;;  %2932 = vpow2.f32 %v952_v39  ;;  %v853_v45 = vsub.f32 %v3623_v9, %v3696_v61 }
 0x210   :  { %v948_v49 = vmul.f32 1.442695, %v926_v30  ;;  %v2921_v28 = vpop.eup %2920  ;;  %v969_v53 = vadd.f32 1.0, %v2919_v18  ;;  %v924_v58 = vsub.f32 0.0, %v3733_v27  ;;  %v964_v3 = vmul.f32 1.442695, %v934_v47 }
 0x211   :  { %4336 = vst [vmem:[#allocation22_spill] sm:$0xff] %v3736_v37  ;;  %2934 = vpow2.f32 %v1020_v14  ;;  %v932_v2 = vsub.f32 0.0, %v3736_v37  ;;  %v977_v54 = vadd.f32 1.0, %v2921_v28 }
 0x212   :  { %2936 = vrcp.f32 %v979_v15  ;;  %v944_v33 = vmul.f32 1.442695, %v924_v58 }
 0x213   :  { %2938 = vrcp.f32 %v969_v53  ;;  %v2923_v35 = vpop.eup %2922  ;;  %v960_v1 = vmul.f32 1.442695, %v932_v2  ;;  %v3764_v53 = vpop.f32.mrf.mxu1 }
 0x214   :  { %2940 = vrcp.f32 %v977_v54  ;;  %v2925_v52 = vpop.eup %2924  ;;  %v877_v32 = vmul.f32 %v2923_v35, %v845_v12  ;;  %v885_v41 = vmul.f32 %v2923_v35, %v853_v45 }
 0x215   :  { %2942 = vpow2.f32 %v948_v49  ;;  %v1036_v56 = vmul.f32 1.442695, %v2925_v52 }
 0x216   :  { %2944 = vpow2.f32 %v964_v3  ;;  %v893_v26 = vmax.f32 %v877_v32, 0.0  ;;  %v901_v6 = vmax.f32 %v885_v41, 0.0 }
 0x217   :  { %2946 = vpow2.f32 %v944_v33 }
 0x218   :  { %v2927_v24 = vpop.eup %2926  ;;  %2948 = vpow2.f32 %v960_v1  ;;  %v3749_v9 = vadd.f32 %v893_v26, %v3396_v34  ;;  %v3752_v61 = vadd.f32 %v901_v6, %v3444_v46  ;;  %v3767_v1 = vpop.f32.mrf.mxu1 }
 0x219   :  { %v879_v19 = vmul.f32 %v2927_v24, %v847_v59  ;;  %v887_v4 = vmul.f32 %v2927_v24, %v855_v44  ;;  %2950 = vpow2.f32 %v1036_v56 }
 0x21a   :  { %4337 = vst [vmem:[#allocation23_spill] sm:$0xff] %v3752_v61  ;;  %v2929_v48 = vpop.eup %2928  ;;  %v925_v57 = vsub.f32 0.0, %v3749_v9  ;;  %v933_v23 = vsub.f32 0.0, %v3752_v61  ;;  %v3769_v6 = vpop.f32.mrf.mxu1 }
 0x21b   :  { %v1022_v42 = vmul.f32 1.442695, %v2929_v48  ;;  %v895_v29 = vmax.f32 %v879_v19, 0.0  ;;  %v2931_v60 = vpop.eup %2930  ;;  %v903_v25 = vmax.f32 %v887_v4, 0.0 }
 0x21c   :  { %v2933_v21 = vpop.eup %2932  ;;  %v968_v8 = vadd.f32 1.0, %v2931_v60  ;;  %v946_v34 = vmul.f32 1.442695, %v925_v57  ;;  %v962_v46 = vmul.f32 1.442695, %v933_v23 }
 0x21d   :  { %2952 = vpow2.f32 %v1022_v42  ;;  %v976_v20 = vadd.f32 1.0, %v2933_v21  ;;  %v3757_v40 = vadd.f32 %v895_v29, %v3410_v38  ;;  %v3760_v5 = vadd.f32 %v903_v25, %v3458_v50 }
 0x21e   :  { %v2935_v10 = vpop.eup %2934  ;;  %2954 = vrcp.f32 %v968_v8 }
 0x21f   :  { %4338 = vst [vmem:[#allocation24_spill] sm:$0xff] %v3760_v5  ;;  %v2937_v39 = vpop.eup %2936  ;;  %2956 = vrcp.f32 %v976_v20  ;;  %v1060_v36 = vrot.slane %v2935_v10, 4  ;;  %v927_v30 = vsub.f32 0.0, %v3757_v40  ;;  %v935_v18 = vsub.f32 0.0, %v3760_v5 }
 0x220   :  { %v2939_v63 = vpop.eup %2938  ;;  %2958 = vpow2.f32 %v946_v34  ;;  %v1038_v14 = vmul.f32 1.442695, %v2937_v39  ;;  %v1146_v35 = vmul.f32 %v2935_v10, %v3764_v53 }
 0x221   :  { %v2941_v31 = vpop.eup %2940  ;;  %v1018_v15 = vmul.f32 1.442695, %v2939_v63  ;;  %2960 = vpow2.f32 %v962_v46  ;;  %v1061_v58 = vadd.f32 %v2935_v10, %v1060_v36  ;;  %v950_v3 = vmul.f32 1.442695, %v927_v30 }
 0x222   :  { %v2943_v47 = vpop.eup %2942  ;;  %v1034_v28 = vmul.f32 1.442695, %v2941_v31  ;;  %v966_v33 = vmul.f32 1.442695, %v935_v18  ;;  %v1172_v44 = vrot.slane %v1146_v35, 4 }
 0x223   :  { %v2945_v38 = vpop.eup %2944  ;;  %2962 = vpow2.f32 %v1018_v15  ;;  %v974_v49 = vadd.f32 1.0, %v2943_v47  ;;  %v1062_v52 = vrot.slane %v1061_v58, 2 }
 0x224   :  { %v2947_v50 = vpop.eup %2946  ;;  %v982_v12 = vadd.f32 1.0, %v2945_v38  ;;  %v1173_v21 = vadd.f32 %v1172_v44, %v1146_v35 }
 0x225   :  { %v2949_v2 = vpop.eup %2948  ;;  %2964 = vrcp.f32 %v974_v49  ;;  %v972_v54 = vadd.f32 1.0, %v2947_v50  ;;  %v1063_v26 = vadd.f32 %v1062_v52, %v1061_v58 }
 0x226   :  { %2966 = vpow2.f32 %v1038_v14  ;;  %v980_v45 = vadd.f32 1.0, %v2949_v2  ;;  %v2951_v32 = vpop.eup %2950  ;;  %v1174_v14 = vrot.slane %v1173_v21, 2 }
 0x227   :  { %2968 = vrcp.f32 %v972_v54  ;;  %v1108_v4 = vrot.slane %v2951_v32, 4  ;;  %v1154_v23 = vmul.f32 %v2951_v32, %v3769_v6  ;;  %v1064_v8 = vrot.slane %v1063_v26, 1 }
 0x228   :  { %2970 = vpow2.f32 %v1034_v28  ;;  %v1175_v35 = vadd.f32 %v1174_v14, %v1173_v21 }
 0x229   :  { %2972 = vpow2.f32 %v950_v3  ;;  %v1109_v46 = vadd.f32 %v2951_v32, %v1108_v4  ;;  %v1220_v31 = vrot.slane %v1154_v23, 4  ;;  %v1065_v47 = vadd.f32 %v1064_v8, %v1063_v26 }
 0x22a   :  { %v2953_v41 = vpop.eup %2952  ;;  %2974 = vpow2.f32 %v966_v33 }
 0x22b   :  { %2976 = vrcp.f32 %v982_v12  ;;  %v2955_v59 = vpop.eup %2954  ;;  %v1066_v57 = vrot.slane %v2953_v41, 4  ;;  %v1147_v25 = vmul.f32 %v2953_v41, %v3764_v53  ;;  %v1110_v58 = vrot.slane %v1109_v46, 2 }
 0x22c   :  { %2978 = vrcp.f32 %v980_v45  ;;  %v2957_v24 = vpop.eup %2956  ;;  %v1016_v56 = vmul.f32 1.442695, %v2955_v59  ;;  %v1221_v33 = vadd.f32 %v1220_v31, %v1154_v23 }
 0x22d   :  { %v2959_v19 = vpop.eup %2958  ;;  %v1032_v34 = vmul.f32 1.442695, %v2957_v24  ;;  %v1067_v36 = vadd.f32 %v2953_v41, %v1066_v57  ;;  %v1178_v30 = vrot.slane %v1147_v25, 4  ;;  %v1111_v26 = vadd.f32 %v1110_v58, %v1109_v46 }
 0x22e   :  { %v2961_v48 = vpop.eup %2960  ;;  %2980 = vpow2.f32 %v1016_v56  ;;  %v973_v42 = vadd.f32 1.0, %v2959_v19  ;;  %v1222_v19 = vrot.slane %v1221_v33, 2 }
 0x22f   :  { %v981_v60 = vadd.f32 1.0, %v2961_v48  ;;  %v1068_v3 = vrot.slane %v1067_v36, 2  ;;  %v1179_v52 = vadd.f32 %v1178_v30, %v1147_v25  ;;  %v1112_v46 = vrot.slane %v1111_v26, 1 }
 0x230   :  { %v2963_v29 = vpop.eup %2962  ;;  %2982 = vrcp.f32 %v973_v42  ;;  %v1176_v42 = vrot.slane %v1175_v35, 1 }
 0x231   :  { %2984 = vrcp.f32 %v981_v60  ;;  %v1054_v20 = vrot.slane %v2963_v29, 4  ;;  %v1145_v49 = vmul.f32 %v2963_v29, %v3764_v53  ;;  %v1069_v56 = vadd.f32 %v1068_v3, %v1067_v36 }
 0x232   :  { %v2965_v10 = vpop.eup %2964  ;;  %2986 = vpow2.f32 %v1032_v34  ;;  %v1180_v57 = vrot.slane %v1179_v52, 2 }
 0x233   :  { %v2967_v39 = vpop.eup %2966  ;;  %v1028_v63 = vmul.f32 1.442695, %v2965_v10  ;;  %v1055_v28 = vadd.f32 %v2963_v29, %v1054_v20  ;;  %v1166_v41 = vrot.slane %v1145_v49, 4 }
 0x234   :  { %v2969_v15 = vpop.eup %2968  ;;  %v1114_v59 = vrot.slane %v2967_v39, 4  ;;  %v3775_v25 = vmul.f32 %v2967_v39, %v3769_v6 }
 0x235   :  { %v2971_v18 = vpop.eup %2970  ;;  %v1024_v38 = vmul.f32 1.442695, %v2969_v15  ;;  %2988 = vpow2.f32 %v1028_v63  ;;  %v1056_v44 = vrot.slane %v1055_v28, 2  ;;  %v1167_v29 = vadd.f32 %v1166_v41, %v1145_v49 }
 0x236   :  { %v2973_v50 = vpop.eup %2972  ;;  %v1102_v23 = vrot.slane %v2971_v18, 4  ;;  %v1115_v21 = vadd.f32 %v2967_v39, %v1114_v59  ;;  %v1153_v20 = vmul.f32 %v2971_v18, %v3769_v6  ;;  %v1070_v15 = vrot.slane %v1069_v56, 1 }
 0x237   :  { %v2975_v2 = vpop.eup %2974  ;;  %2990 = vpow2.f32 %v1024_v38  ;;  %v975_v54 = vadd.f32 1.0, %v2973_v50  ;;  %v1057_v10 = vadd.f32 %v1056_v44, %v1055_v28  ;;  %v1168_v38 = vrot.slane %v1167_v29, 2 }
 0x238   :  { %v2977_v12 = vpop.eup %2976  ;;  %v983_v45 = vadd.f32 1.0, %v2975_v2  ;;  %2992 = vrcp.f32 %v1065_v47  ;;  %v1181_v47 = vadd.f32 %v1180_v57, %v1179_v52  ;;  %v1103_v14 = vadd.f32 %v2971_v18, %v1102_v23 }
 0x239   :  { %v2979_v32 = vpop.eup %2978  ;;  %2994 = vrcp.f32 %v975_v54  ;;  %v1044_v24 = vmul.f32 1.442695, %v2977_v12  ;;  %v1116_v39 = vrot.slane %v1115_v21, 2  ;;  %v1058_v28 = vrot.slane %v1057_v10, 1 }
 0x23a   :  { %2996 = vrcp.f32 %v983_v45  ;;  %v1040_v48 = vmul.f32 1.442695, %v2979_v32  ;;  %v3779_v2 = vadd.f32 %v1222_v19, %v1221_v33  ;;  %v1071_v12 = vadd.f32 %v1070_v15, %v1069_v56 }
 0x23b   :  { %v2981_v4 = vpop.eup %2980  ;;  %2998 = vpow2.f32 %v1044_v24  ;;  %v1177_v45 = vadd.f32 %v1176_v42, %v1175_v35  ;;  %v1226_v32 = vrot.slane %v3775_v25, 4  ;;  %v1182_v59 = vrot.slane %v1181_v47, 1 }
 0x23c   :  { %v1048_v60 = vrot.slane %v2981_v4, 4  ;;  %v1144_v34 = vmul.f32 %v2981_v4, %v3764_v53  ;;  %3000 = vpow2.f32 %v1040_v48  ;;  %v1214_v52 = vrot.slane %v1153_v20, 4 }
 0x23d   :  { %v2983_v8 = vpop.eup %2982  ;;  %v1104_v18 = vrot.slane %v1103_v14, 2  ;;  %v3782_v44 = vadd.f32 %v1112_v46, %v1111_v26  ;;  %v1117_v23 = vadd.f32 %v1116_v39, %v1115_v21 }
 0x23e   :  { %v2985_v63 = vpop.eup %2984  ;;  %v1026_v36 = vmul.f32 1.442695, %v2983_v8  ;;  %v1049_v31 = vadd.f32 %v2981_v4, %v1048_v60  ;;  %v1160_v58 = vrot.slane %v1144_v34, 4  ;;  %v1169_v4 = vadd.f32 %v1168_v38, %v1167_v29 }
 0x23f   :  { %v1042_v30 = vmul.f32 1.442695, %v2985_v63  ;;  %v2987_v50 = vpop.eup %2986  ;;  %v1059_v8 = vadd.f32 %v1058_v28, %v1057_v10  ;;  %v3785_v26 = vadd.f32 %v1214_v52, %v1153_v20  ;;  %v1105_v46 = vadd.f32 %v1104_v18, %v1103_v14 }
 0x240   :  { %3002 = vpow2.f32 %v1026_v36  ;;  %v1050_v49 = vrot.slane %v1049_v31, 2  ;;  %v1152_v57 = vmul.f32 %v2987_v50, %v3769_v6  ;;  %v1161_v19 = vadd.f32 %v1160_v58, %v1144_v34 }
 0x241   :  { %3004 = vpow2.f32 %v1042_v30  ;;  %v1096_v36 = vrot.slane %v2987_v50, 4  ;;  %v1170_v30 = vrot.slane %v1169_v4, 1  ;;  %v1183_v10 = vadd.f32 %v1182_v59, %v1181_v47 }
 0x242   :  { %v2989_v54 = vpop.eup %2988  ;;  %v1051_v3 = vadd.f32 %v1050_v49, %v1049_v31  ;;  %3006 = vrcp.f32 %v1071_v12  ;;  %v1208_v38 = vrot.slane %v1152_v57, 4  ;;  %v1162_v21 = vrot.slane %v1161_v19, 2 }
 0x243   :  { %v1084_v56 = vrot.slane %v2989_v54, 4  ;;  %v1097_v39 = vadd.f32 %v2987_v50, %v1096_v36  ;;  %v1118_v58 = vrot.slane %v1117_v23, 1  ;;  %v3789_v52 = vadd.f32 %v1170_v30, %v1169_v4 }
 0x244   :  { %v2991_v41 = vpop.eup %2990  ;;  %v1052_v60 = vrot.slane %v1051_v3, 1  ;;  %v1163_v59 = vadd.f32 %v1162_v21, %v1161_v19 }
 0x245   :  { %v2993_v24 = vpop.eup %2992  ;;  %v1072_v48 = vrot.slane %v2991_v41, 4  ;;  %v1085_v49 = vadd.f32 %v2989_v54, %v1084_v56  ;;  %v1148_v12 = vmul.f32 %v2991_v41, %v3764_v53  ;;  %v1098_v56 = vrot.slane %v1097_v39, 2 }
 0x246   :  { %v2995_v33 = vpop.eup %2994  ;;  %v1274_v15 = vmul.f32 %v2993_v24, %v1177_v45  ;;  %v1053_v34 = vadd.f32 %v1052_v60, %v1051_v3  ;;  %v1106_v45 = vrot.slane %v1105_v46, 1  ;;  %v1209_v24 = vadd.f32 %v1208_v38, %v1152_v57 }
 0x247   :  { %v2997_v35 = vpop.eup %2996  ;;  %v1030_v42 = vmul.f32 1.442695, %v2995_v33  ;;  %v1073_v63 = vadd.f32 %v2991_v41, %v1072_v48  ;;  %v3794_v3 = vadd.f32 %v1226_v32, %v3775_v25  ;;  %v1086_v50 = vrot.slane %v1085_v49, 2 }
 0x248   :  { %v1046_v31 = vmul.f32 1.442695, %v2997_v35  ;;  %v2999_v28 = vpop.eup %2998  ;;  %v3791_v18 = vmul.f32 0.125, %v1274_v15  ;;  %v1150_v33 = vmul.f32 %v2989_v54, %v3764_v53  ;;  %v3800_v4 = vadd.f32 %v1118_v58, %v1117_v23 }
 0x249   :  { %3008 = vpow2.f32 %v1030_v42  ;;  %v1074_v29 = vrot.slane %v1073_v63, 2  ;;  %v3001_v14 = vpop.eup %3000  ;;  %v1184_v42 = vrot.slane %v1148_v12, 4  ;;  %v3802_v57 = vadd.f32 %v1106_v45, %v1105_v46 }
 0x24a   :  { %3010 = vpow2.f32 %v1046_v31  ;;  %v1120_v25 = vrot.slane %v3001_v14, 4  ;;  %v1132_v36 = vrot.slane %v2999_v28, 4  ;;  %v1087_v54 = vadd.f32 %v1086_v50, %v1085_v49 }
 0x24b   :  { %3012 = vrcp.f32 %v1059_v8  ;;  %v1075_v48 = vadd.f32 %v1074_v29, %v1073_v63  ;;  %v1210_v63 = vrot.slane %v1209_v24, 2  ;;  %v1164_v31 = vrot.slane %v1163_v59, 1 }
 0x24c   :  { %3014 = vrcp.f32 %v1053_v34  ;;  %v1196_v29 = vrot.slane %v1150_v33, 4  ;;  %v1099_v38 = vadd.f32 %v1098_v56, %v1097_v39  ;;  %v3806_v21 = vmul.f32 %v2999_v28, %v3769_v6 }
 0x24d   :  { %v3003_v47 = vpop.eup %3002  ;;  %v1076_v35 = vrot.slane %v1075_v48, 1  ;;  %v1185_v58 = vadd.f32 %v1184_v42, %v1148_v12  ;;  %v3810_v45 = vmul.f32 %v3001_v14, %v3769_v6  ;;  %v3812_v20 = vadd.f32 %v1210_v63, %v1209_v24 }
 0x24e   :  { %v3797_v41 = vpop.eup %3004  ;;  %v1078_v60 = vrot.slane %v3003_v47, 4  ;;  %v1149_v8 = vmul.f32 %v3003_v47, %v3764_v53  ;;  %v1133_v50 = vadd.f32 %v2999_v28, %v1132_v36  ;;  %v1088_v39 = vrot.slane %v1087_v54, 1 }
 0x24f   :  { %v1126_v19 = vrot.slane %v3797_v41, 4  ;;  %v3007_v34 = vpop.eup %3006  ;;  %v1077_v46 = vadd.f32 %v1076_v35, %v1075_v48  ;;  %v1165_v56 = vadd.f32 %v1164_v31, %v1163_v59  ;;  %v1197_v16 = vadd.f32 %v1196_v29, %v1150_v33 }
 0x250   :  { %v1079_v32 = vadd.f32 %v3003_v47, %v1078_v60  ;;  %v1190_v15 = vrot.slane %v1149_v8, 4  ;;  %v1121_v47 = vadd.f32 %v3001_v14, %v1120_v25  ;;  %v3816_v48 = vmul.f32 %v3007_v34, %v1183_v10 }
 0x251   :  { %v1127_v49 = vadd.f32 %v3797_v41, %v1126_v19  ;;  %v1186_v14 = vrot.slane %v1185_v58, 2  ;;  %3016 = vrcp.f32 %v1077_v46  ;;  %v1134_v63 = vrot.slane %v1133_v50, 2 }
 0x252   :  { %v1080_v30 = vrot.slane %v1079_v32, 2  ;;  %v1191_v5 = vadd.f32 %v1190_v15, %v1149_v8  ;;  %v1122_v24 = vrot.slane %v1121_v47, 2  ;;  %v1089_v19 = vadd.f32 %v1088_v39, %v1087_v54 }
 0x253   :  { %v1128_v28 = vrot.slane %v1127_v49, 2  ;;  %v1198_v8 = vrot.slane %v1197_v16, 2  ;;  %v1187_v10 = vadd.f32 %v1186_v14, %v1185_v58  ;;  %v1100_v29 = vrot.slane %v1099_v38, 1 }
 0x254   :  { %v1081_v60 = vadd.f32 %v1080_v30, %v1079_v32  ;;  %v1192_v59 = vrot.slane %v1191_v5, 2  ;;  %v1123_v30 = vadd.f32 %v1122_v24, %v1121_v47  ;;  %v1232_v14 = vrot.slane %v3810_v45, 4 }
 0x255   :  { %v1188_v58 = vrot.slane %v1187_v10, 1 }
 0x256   :  { %v3009_v0 = vpop.eup %3008  ;;  %v1082_v23 = vrot.slane %v1081_v60, 1  ;;  %v1193_v54 = vadd.f32 %v1192_v59, %v1191_v5  ;;  %v1124_v47 = vrot.slane %v1123_v30, 1 }
 0x257   :  { %v3011_v61 = vpop.eup %3010  ;;  %v1090_v37 = vrot.slane %v3009_v0, 4  ;;  %v1151_v12 = vmul.f32 %v3009_v0, %v3764_v53 }
 0x258   :  { %v3013_v35 = vpop.eup %3012  ;;  %v1138_v42 = vrot.slane %v3011_v61, 4  ;;  %v1083_v25 = vadd.f32 %v1082_v23, %v1081_v60  ;;  %v1129_v23 = vadd.f32 %v1128_v28, %v1127_v49  ;;  %v1199_v60 = vadd.f32 %v1198_v8, %v1197_v16 }
 0x259   :  { %v1091_v32 = vadd.f32 %v3009_v0, %v1090_v37  ;;  %v3015_v36 = vpop.eup %3014  ;;  %v1202_v15 = vrot.slane %v1151_v12, 4  ;;  %v1273_v53 = vmul.f32 %v3013_v35, %v3789_v52  ;;  %v1135_v0 = vadd.f32 %v1134_v63, %v1133_v50 }
 0x25a   :  { %v1139_v33 = vadd.f32 %v3011_v61, %v1138_v42  ;;  %3018 = vrcp.f32 %v1083_v25  ;;  %v1157_v37 = vmul.f32 %v3797_v41, %v3769_v6  ;;  %v1272_v39 = vmul.f32 %v3015_v36, %v1165_v56 }
 0x25b   :  { %v1092_v31 = vrot.slane %v1091_v32, 2  ;;  %3020 = vrcp.f32 %v1089_v19  ;;  %v1203_v43 = vadd.f32 %v1202_v15, %v1151_v12  ;;  %v1159_v52 = vmul.f32 %v3011_v61, %v3769_v6 }
 0x25c   :  { %v1140_v34 = vrot.slane %v1139_v33, 2  ;;  %v1101_v35 = vadd.f32 %v1100_v29, %v1099_v38  ;;  %v1130_v50 = vrot.slane %v1129_v23, 1  ;;  %v1136_v24 = vrot.slane %v1135_v0, 1 }
 0x25d   :  { %v1093_v46 = vadd.f32 %v1092_v31, %v1091_v32  ;;  %v1238_v32 = vrot.slane %v1157_v37, 4  ;;  %v1194_v41 = vrot.slane %v1193_v54, 1  ;;  %v1288_v5 = vmul.f32 0.125, %v1272_v39 }
 0x25e   :  { %v1141_v25 = vadd.f32 %v1140_v34, %v1139_v33  ;;  %v1289_v16 = vmul.f32 0.125, %v1273_v53  ;;  %v1244_v56 = vrot.slane %v3806_v21, 4  ;;  %v1204_v12 = vrot.slane %v1203_v43, 2  ;;  %v3017_v19 = vpop.eup %3016 }
 0x25f   :  { %v1094_v42 = vrot.slane %v1093_v46, 1  ;;  %v1250_v63 = vrot.slane %v1159_v52, 4  ;;  %v1189_v61 = vadd.f32 %v1188_v58, %v1187_v10  ;;  %v1125_v6 = vadd.f32 %v1124_v47, %v1123_v30 }
 0x260   :  { %v1142_v28 = vrot.slane %v1141_v25, 1  ;;  %v1233_v38 = vadd.f32 %v1232_v14, %v3810_v45  ;;  %v1131_v59 = vadd.f32 %v1130_v50, %v1129_v23  ;;  %v1137_v8 = vadd.f32 %v1136_v24, %v1135_v0 }
 0x261   :  { %v1095_v49 = vadd.f32 %v1094_v42, %v1093_v46  ;;  %v1239_v33 = vadd.f32 %v1238_v32, %v1157_v37  ;;  %v1195_v36 = vadd.f32 %v1194_v41, %v1193_v54  ;;  %v1321_v31 = vsel %vm1320_vm0, %v1289_v16, %v1288_v5 }
 0x262   :  { %v1245_v15 = vadd.f32 %v1244_v56, %v3806_v21  ;;  %v1205_v53 = vadd.f32 %v1204_v12, %v1203_v43  ;;  %v1143_v10 = vadd.f32 %v1142_v28, %v1141_v25  ;;  %v1251_v29 = vadd.f32 %v1250_v63, %v1159_v52 }
 0x263   :  { %3022 = vrcp.f32 %v1095_v49  ;;  %v1200_v30 = vrot.slane %v1199_v60, 1  ;;  %v1276_v34 = vmul.f32 %v3017_v19, %v1189_v61  ;;  %v1234_v46 = vrot.slane %v1233_v38, 2 }
 0x264   :  { %3024 = vrcp.f32 %v1101_v35  ;;  %v1240_v37 = vrot.slane %v1239_v33, 2  ;;  %v1291_v21 = vmul.f32 0.125, %v3816_v48  ;;  %v1323_v43 = vsel %vm1322_vm1, %v3791_v18, %v1321_v31 }
 0x265   :  { %3026 = vrcp.f32 %v3802_v57  ;;  %v4339_v57 = vrot.slane %v3785_v26, 2  ;;  %v1206_v54 = vrot.slane %v1205_v53, 1  ;;  %v4340_v39 = vrot.slane %v3794_v3, 2 }
 0x266   :  { %3028 = vrcp.f32 %v3782_v44  ;;  %v1246_v44 = vrot.slane %v1245_v15, 2  ;;  %v1252_v25 = vrot.slane %v1251_v29, 2  ;;  %v1201_v52 = vadd.f32 %v1200_v30, %v1199_v60 }
 0x267   :  { %3030 = vrcp.f32 %v3800_v4  ;;  %v3019_v45 = vpop.eup %3018  ;;  %v1217_v0 = vadd.f32 %v4339_v57, %v3785_v26  ;;  %v1229_v42 = vadd.f32 %v4340_v39, %v3794_v3  ;;  %v1292_v58 = vmul.f32 0.125, %v1276_v34 }
 0x268   :  { %3032 = vrcp.f32 %v1125_v6  ;;  %v1277_v23 = vmul.f32 %v3019_v45, %v1195_v36  ;;  %v3021_v4 = vpop.eup %3020  ;;  %v1212_v26 = vrot.slane %v3812_v20, 1  ;;  %v1235_v35 = vadd.f32 %v1234_v46, %v1233_v38 }
 0x269   :  { %3034 = vrcp.f32 %v1131_v59  ;;  %v1325_v48 = vsel %vm1324_vm2, %v1291_v21, %v1323_v43  ;;  %v1218_v14 = vrot.slane %v1217_v0, 1  ;;  %v1241_v18 = vadd.f32 %v1240_v37, %v1239_v33 }
 0x26a   :  { %3036 = vrcp.f32 %v1137_v8  ;;  %v1293_v47 = vmul.f32 0.125, %v1277_v23  ;;  %v1278_v49 = vmul.f32 %v3021_v4, %v1201_v52  ;;  %v1224_v50 = vrot.slane %v3779_v2, 1 }
 0x26b   :  { %3038 = vrcp.f32 %v1143_v10  ;;  %v1247_v24 = vadd.f32 %v1246_v44, %v1245_v15  ;;  %v1207_v32 = vadd.f32 %v1206_v54, %v1205_v53  ;;  %v1230_v3 = vrot.slane %v1229_v42, 1 }
 0x26c   :  { %v1253_v41 = vadd.f32 %v1252_v25, %v1251_v29  ;;  %v1327_v60 = vsel %vm1326_vm3, %v1292_v58, %v1325_v48  ;;  %v1213_v16 = vadd.f32 %v1212_v26, %v3812_v20  ;;  %v1236_v56 = vrot.slane %v1235_v35, 1 }
 0x26d   :  { %v1329_v63 = vsel %vm1328_vm4, %v1293_v47, %v1327_v60  ;;  %v1219_v61 = vadd.f32 %v1218_v14, %v1217_v0  ;;  %v1242_v6 = vrot.slane %v1241_v18, 1  ;;  %v1294_v19 = vmul.f32 0.125, %v1278_v49 }
 0x26e   :  { %v1225_v59 = vadd.f32 %v1224_v50, %v3779_v2  ;;  %v1248_v8 = vrot.slane %v1247_v24, 1  ;;  %v1231_v15 = vadd.f32 %v1230_v3, %v1229_v42  ;;  %v1254_v53 = vrot.slane %v1253_v41, 1 }
 0x26f   :  { %v1331_v20 = vsel %vm1330_vm5, %v1294_v19, %v1329_v63  ;;  %v1237_v45 = vadd.f32 %v1236_v56, %v1235_v35  ;;  %v1243_v57 = vadd.f32 %v1242_v6, %v1241_v18  ;;  %v2840_v56 = vld [vmem:[#allocation7 + $0xe0] ss:$16 sps:$4 sm:$0xff]   ;;  %v2845_v63 = vld [vmem:[#allocation7 + $0xec] ss:$16 sps:$4 sm:$0xff]   ;;  %v2848_v6 = vld [vmem:[#allocation7 + $0xc4] ss:$16 sps:$4 sm:$0xff]  }
 0x270   :  { %v3023_v5 = vpop.eup %3022  ;;  %v1249_v43 = vadd.f32 %v1248_v8, %v1247_v24  ;;  %v1255_v39 = vadd.f32 %v1254_v53, %v1253_v41  ;;  %v426_v41 = vpop.f32.mrf.mxu1  ;;  %1579 = vmatprep.subr.bf16.mxu0 %v2845_v63  ;;  %v2854_v19 = vld [vmem:[#allocation7 + $0xa4] ss:$16 sps:$4 sm:$0xff]   ;;  %v2852_v8 = vld [vmem:[#allocation7 + $0xa0] ss:$16 sps:$4 sm:$0xff]   ;;  %v2863_v53 = vld [vmem:[#allocation7 + $0x8c] ss:$16 sps:$4 sm:$0xff]  }
 0x271   :  { %v3025_v12 = vpop.eup %3024  ;;  %v1279_v28 = vmul.f32 %v3023_v5, %v1207_v32 }
 0x272   :  { %v3027_v38 = vpop.eup %3026  ;;  %v1280_v33 = vmul.f32 %v3025_v12, %v1213_v16  ;;  %v2842_v12 = vld [vmem:[#allocation7 + $0xe4] ss:$16 sps:$4 sm:$0xff]  }
 0x273   :  { %v3029_v36 = vpop.eup %3028  ;;  %v1295_v31 = vmul.f32 0.125, %v1279_v28  ;;  %v1281_v10 = vmul.f32 %v3027_v38, %v1219_v61  ;;  %1536 = vmatprep.subr.bf16.mxu1 %v2842_v12  ;;  %v2843_v28 = vld [vmem:[#allocation7 + $0xe8] ss:$16 sps:$4 sm:$0xff]   ;;  %v2846_v61 = vld [vmem:[#allocation7 + $0xc0] ss:$16 sps:$4 sm:$0xff]  }
 0x274   :  { %v3031_v29 = vpop.eup %3030  ;;  %v1282_v30 = vmul.f32 %v3029_v36, %v1225_v59  ;;  %v1296_v34 = vmul.f32 0.125, %v1280_v33  ;;  %1537 = vmatpush1.bf16.msra.mxu1 %v2840_v56  ;;  %v2851_v38 = vld [vmem:[#allocation7 + $0xcc] ss:$16 sps:$4 sm:$0xff]   ;;  %1580 = vmatpush1.bf16.msra.mxu0 %v2843_v28  ;;  %v2849_v59 = vld [vmem:[#allocation7 + $0xc8] ss:$16 sps:$4 sm:$0xff]   ;;  %v3188_v28 = vld [vmem:[#allocation2] sm:$0xff] }
 0x275   :  { %v3033_v46 = vpop.eup %3032  ;;  %v1333_v23 = vsel %vm1332_vm6, %v1295_v31, %v1331_v20  ;;  %v1283_v0 = vmul.f32 %v3031_v29, %v1231_v15  ;;  %v1297_v37 = vmul.f32 0.125, %v1281_v10  ;;  %1538 = vmatprep.subr.bf16.mxu1 %v2848_v6  ;;  %1581 = vmatprep.subr.bf16.mxu0 %v2851_v38  ;;  %v2857_v33 = vld [vmem:[#allocation7 + $0xac] ss:$16 sps:$4 sm:$0xff]   ;;  %v2860_v36 = vld [vmem:[#allocation7 + $0x84] ss:$16 sps:$4 sm:$0xff]  }
 0x276   :  { %v3035_v2 = vpop.eup %3034  ;;  %v3849_v21 = vadd.f32 %v1333_v23, %v3767_v1  ;;  %v1284_v44 = vmul.f32 %v3033_v46, %v1237_v45  ;;  %v1298_v4 = vmul.f32 0.125, %v1282_v30  ;;  %v2855_v31 = vld [vmem:[#allocation7 + $0xa8] ss:$16 sps:$4 sm:$0xff]   ;;  %v2858_v15 = vld [vmem:[#allocation7 + $0x80] ss:$16 sps:$4 sm:$0xff]  }
 0x277   :  { %v3037_v54 = vpop.eup %3036  ;;  %v1285_v42 = vmul.f32 %v3035_v2, %v1243_v57  ;;  %v1299_v25 = vmul.f32 0.125, %v1283_v0  ;;  %v1334_v52 = vsel %vm1320_vm0, %v1297_v37, %v1296_v34  ;;  %v2866_v10 = vld [vmem:[#allocation7 + $0x64] ss:$16 sps:$4 sm:$0xff]   ;;  %v2861_v29 = vld [vmem:[#allocation7 + $0x88] ss:$16 sps:$4 sm:$0xff]  }
 0x278   :  { %v3039_v58 = vpop.eup %3038  ;;  %v1286_v26 = vmul.f32 %v3037_v54, %v1249_v43  ;;  %v1300_v35 = vmul.f32 0.125, %v1284_v44  ;;  %v1335_v47 = vsel %vm1322_vm1, %v1298_v4, %v1334_v52  ;;  %1345 = vadd.xlane.f32.xlu0 %v3849_v21  ;;  %v1353_v50 = vmul.f32 %v3849_v21, %v3849_v21  ;;  %1539 = vmatpush1.bf16.msra.mxu1 %v2846_v61  ;;  %v2864_v20 = vld [vmem:[#allocation7 + $0x60] ss:$16 sps:$4 sm:$0xff]   ;;  %v2869_v45 = vld [vmem:[#allocation7 + $0x6c] ss:$16 sps:$4 sm:$0xff]  }
 0x279   :  { %v1287_v48 = vmul.f32 %v3039_v58, %v1255_v39  ;;  %v1301_v14 = vmul.f32 0.125, %v1285_v42  ;;  %v1336_v1 = vsel %vm1324_vm2, %v1299_v25, %v1335_v47  ;;  %1540 = vmatprep.subr.bf16.mxu1 %v2854_v19  ;;  %1582 = vmatpush1.bf16.msra.mxu0 %v2849_v59  ;;  %v2872_v30 = vld [vmem:[#allocation7 + $0x44] ss:$16 sps:$4 sm:$0xff]   ;;  %v2867_v34 = vld [vmem:[#allocation7 + $0x68] ss:$16 sps:$4 sm:$0xff]   ;;  %v1622_v59 = vpack.c.bf16 %v3688_v22, %v3717_v7 }
 0x27a   :  { %v1302_v18 = vmul.f32 0.125, %v1286_v26  ;;  %v1337_v49 = vsel %vm1326_vm3, %v1300_v35, %v1336_v1  ;;  %1583 = vmatprep.subr.bf16.mxu0 %v2857_v33  ;;  %v2870_v46 = vld [vmem:[#allocation7 + $0x40] ss:$16 sps:$4 sm:$0xff]   ;;  %v2875_v23 = vld [vmem:[#allocation7 + $0x4c] ss:$16 sps:$4 sm:$0xff]  }
 0x27b   :  { %v1303_v24 = vmul.f32 0.125, %v1287_v48  ;;  %v1338_v32 = vsel %vm1328_vm4, %v1301_v14, %v1337_v49  ;;  %v2878_v57 = vld [vmem:[#allocation7 + $0x24] ss:$16 sps:$4 sm:$0xff]   ;;  %v2873_v0 = vld [vmem:[#allocation7 + $0x48] ss:$16 sps:$4 sm:$0xff]  }
 0x27c   :  { %v1339_v3 = vsel %vm1330_vm5, %v1302_v18, %v1338_v32  ;;  %1355 = vadd.xlane.f32.xlu0 %v1353_v50  ;;  %1541 = vmatpush1.bf16.msra.mxu1 %v2852_v8  ;;  %v2876_v37 = vld [vmem:[#allocation7 + $0x20] ss:$16 sps:$4 sm:$0xff]   ;;  %v2881_v2 = vld [vmem:[#allocation7 + $0x2c] ss:$16 sps:$4 sm:$0xff]   ;;  %v2884_v43 = vld [vmem:[#allocation7 + $0x4] ss:$16 sps:$4 sm:$0xff]  }
 0x27d   :  { %v1340_v5 = vsel %vm1332_vm6, %v1303_v24, %v1339_v3  ;;  %1542 = vmatprep.subr.bf16.mxu1 %v2860_v36  ;;  %1584 = vmatpush1.bf16.msra.mxu0 %v2855_v31  ;;  %v2879_v44 = vld [vmem:[#allocation7 + $0x28] ss:$16 sps:$4 sm:$0xff]   ;;  %v2882_v4 = vld [vmem:[#allocation7] ss:$16 sps:$4 sm:$0xff]   ;;  %v2887_v54 = vld [vmem:[#allocation7 + $0xc] ss:$16 sps:$4 sm:$0xff]  }
 0x27e   :  { %v3861_v60 = vadd.f32 %v1340_v5, %v426_v41  ;;  %1585 = vmatprep.subr.bf16.mxu0 %v2863_v53  ;;  %v2888_v39 = vld [vmem:[%s4295_s5 + $0x38] sm:$0xff]   ;;  %v3189_v61 = vld [vmem:[#allocation2 + $0x8] sm:$0xff]  ;;  %v2891_v33 = vld [vmem:[%s4295_s5 + $0x20] sm:$0xff]  }
 0x27f   :  { %v2885_v42 = vld [vmem:[#allocation7 + $0x8] ss:$16 sps:$4 sm:$0xff]   ;;  %v2893_v31 = vld [vmem:[%s4295_s5 + $0x10] sm:$0xff]   ;;  %v2895_v53 = vld [vmem:[%s4295_s5] sm:$0xff]  }
 0x280   :  { %1347 = vadd.xlane.f32.xlu1 %v3861_v60  ;;  %v1354_v16 = vmul.f32 %v3861_v60, %v3861_v60  ;;  %1543 = vmatpush1.bf16.msra.mxu1 %v2858_v15  ;;  %v2890_v8 = vld [vmem:[%s4295_s5 + $0x28] sm:$0xff]   ;;  %v2892_v36 = vld [vmem:[%s4295_s5 + $0x18] sm:$0xff]  }
 0x281   :  { %1544 = vmatprep.subr.bf16.mxu1 %v2866_v10  ;;  %1586 = vmatpush1.bf16.msra.mxu0 %v2861_v29  ;;  %v2894_v15 = vld [vmem:[%s4295_s5 + $0x8] sm:$0xff]   ;;  %v1623_v10 = vpack.c.bf16 %v3679_v55, %v3652_v11  ;;  %v1624_v29 = vpack.c.bf16 %v3749_v9, %v3733_v27 }
 0x282   :  { %1587 = vmatprep.subr.bf16.mxu0 %v2869_v45  ;;  %v1626_v45 = vpack.c.bf16 %v3691_v17, %v3720_v13 }
 0x284   :  { %1357 = vadd.xlane.f32.xlu1 %v1354_v16  ;;  %1545 = vmatpush1.bf16.msra.mxu1 %v2864_v20  ;;  %v1625_v20 = vpack.c.bf16 %v3757_v40, %v3725_v51 }
 0x285   :  { %1546 = vmatprep.subr.bf16.mxu1 %v2872_v30  ;;  %1588 = vmatpush1.bf16.msra.mxu0 %v2867_v34  ;;  %v4341_v30 = vld [vmem:[#allocation20_spill] sm:$0xff] }
 0x286   :  { %1589 = vmatprep.subr.bf16.mxu0 %v2875_v23  ;;  %v1627_v34 = vpack.c.bf16 %v4341_v30, %v3655_v62  ;;  %v4343_v23 = vld [vmem:[#allocation23_spill] sm:$0xff] }
 0x288   :  { %1547 = vmatpush1.bf16.msra.mxu1 %v2870_v46  ;;  %v4342_v46 = vld [vmem:[#allocation22_spill] sm:$0xff] }
 0x289   :  { %1548 = vmatprep.subr.bf16.mxu1 %v2878_v57  ;;  %1590 = vmatpush1.bf16.msra.mxu0 %v2873_v0  ;;  %v1628_v57 = vpack.c.bf16 %v4343_v23, %v4342_v46  ;;  %v4344_v0 = vld [vmem:[#allocation21_spill] sm:$0xff] }
 0x28a   :  { %1591 = vmatprep.subr.bf16.mxu0 %v2881_v2 }
 0x28c   :  { %1549 = vmatpush1.bf16.msra.mxu1 %v2876_v37  ;;  %v4345_v37 = vld [vmem:[#allocation24_spill] sm:$0xff] }
 0x28d   :  { %1550 = vmatprep.subr.bf16.mxu1 %v2884_v43  ;;  %1592 = vmatpush1.bf16.msra.mxu0 %v2879_v44  ;;  %v1629_v2 = vpack.c.bf16 %v4345_v37, %v4344_v0 }
 0x28e   :  { %1593 = vmatprep.subr.bf16.mxu0 %v2887_v54  ;;  %v4346_v54 = vld [vmem:[#allocation13_spill] sm:$0xff] }
 0x290   :  { %1551 = vmatpush1.bf16.msra.mxu1 %v2882_v4 }
 0x291   :  { %2743 = vmatprep.subr.bf16.mxu1 %v2888_v39  ;;  %1594 = vmatpush1.bf16.msra.mxu0 %v2885_v42 }
 0x301   :  { %v1346_v25 = vpop.xlane.xlu0 %1345 }
 0x302   :  { %v1349_v52 = vmul.f32 0.0078125, %v1346_v25 }
 0x305   :  { %v1356_v26 = vpop.xlane.xlu0 %1355 }
 0x306   :  { %v1359_v48 = vmul.f32 0.0078125, %v1356_v26 }
 0x309   :  { %v1348_v58 = vpop.xlane.xlu1 %1347 }
 0x30a   :  { %v1350_v35 = vmul.f32 0.0078125, %v1348_v58 }
 0x30c   :  { %v1351_v47 = vadd.f32 %v1350_v35, %v1349_v52  ;;  %v4347_v52 = vld [vmem:[#allocation14_spill] sm:$0xff] }
 0x30d   :  { %v1358_v14 = vpop.xlane.xlu1 %1357 }
 0x30e   :  { %v1352_v1 = vmul.f32 0.5, %v1351_v47  ;;  %v1360_v18 = vmul.f32 0.0078125, %v1358_v14  ;;  %v4348_v47 = vld [vmem:[#allocation15_spill] sm:$0xff] }
 0x310   :  { %v1361_v49 = vadd.f32 %v1360_v18, %v1359_v48  ;;  %v1363_v50 = vmul.f32 %v1352_v1, %v1352_v1  ;;  %v1365_v41 = vsub.f32 %v3849_v21, %v1352_v1  ;;  %v1366_v5 = vsub.f32 %v3861_v60, %v1352_v1  ;;  %v2889_v60 = vld [vmem:[%s4295_s5 + $0x30] sm:$0xff]  }
 0x312   :  { %v1362_v24 = vmul.f32 0.5, %v1361_v49 }
 0x314   :  { %v1364_v32 = vsub.f32 %v1362_v24, %v1363_v50 }
 0x316   :  { %v1367_v3 = vadd.f32 1e-05, %v1364_v32  ;;  %v4349_v32 = vld [vmem:[#allocation16_spill] sm:$0xff] }
 0x318   :  { %3040 = vrsqrt.f32 %v1367_v3 }
 0x325   :  { %v3041_v16 = vpop.eup %3040 }
 0x326   :  { %v1369_v56 = vmul.f32 %v3041_v16, %v1365_v41  ;;  %v1370_v12 = vmul.f32 %v3041_v16, %v1366_v5 }
 0x328   :  { %v3871_v63 = vadd.f32 %v3188_v28, %v1369_v56  ;;  %v3873_v6 = vadd.f32 %v3189_v61, %v1370_v12 }
 0x32a   :  { %v4325_v38 = vmax.f32 %v3871_v63, 0.0  ;;  %v4324_v19 = vmax.f32 %v3873_v6, 0.0 }
 0x32c   :  { %v1375_v21 = vpack.c.bf16 %v4324_v19, %v4325_v38 }
 0x32e   :  { %1569 = vmatmul.mubr.bf16.vlgmr.msra.gmra.mxu1 %v1375_v21  ;;  %1612 = vmatmul.mubr.bf16.vlgmr.msra.gmra.mxu0 %v1375_v21 }
 0x32f   :  { %2744 = vmatpush3.bf16.msra.mxu1 %v2888_v39  ;;  %2759 = vmatprep.mubr.bf16.mxu1 %v1622_v59 }
 0x330   :  { %2745 = vmatprep.subr.bf16.mxu1 %v2889_v60 }
 0x333   :  { %2746 = vmatpush3.bf16.msra.mxu1 %v2889_v60 }
 0x334   :  { %2747 = vmatprep.subr.bf16.mxu1 %v2890_v8 }
 0x337   :  { %2748 = vmatpush3.bf16.msra.mxu1 %v2890_v8 }
 0x338   :  { %2749 = vmatprep.subr.bf16.mxu1 %v2891_v33 }
 0x33b   :  { %2750 = vmatpush3.bf16.msra.mxu1 %v2891_v33 }
 0x33c   :  { %2751 = vmatprep.subr.bf16.mxu1 %v2892_v36 }
 0x33f   :  { %2752 = vmatpush3.bf16.msra.mxu1 %v2892_v36 }
 0x340   :  { %2753 = vmatprep.subr.bf16.mxu1 %v2893_v31 }
 0x343   :  { %2754 = vmatpush3.bf16.msra.mxu1 %v2893_v31 }
 0x344   :  { %2755 = vmatprep.subr.bf16.mxu1 %v2894_v15 }
 0x347   :  { %2756 = vmatpush3.bf16.msra.mxu1 %v2894_v15 }
 0x348   :  { %2757 = vmatprep.subr.bf16.mxu1 %v2895_v53 }
 0x34b   :  { %2758 = vmatpush3.bf16.msra.mxu1 %v2895_v53  ;;  %v4350_v53 = vld [vmem:[#allocation17_spill] sm:$0xff] }
 0x34e   :  { %2760 = vmatmul.mubr.bf16.vlgmr.msra.gmra.mxu1 %v1623_v10 }
 0x34f   :  { %2763 = vmatprep.mubr.bf16.mxu1 %v1624_v29 }
 0x356   :  { %2764 = vmatmul.mubr.bf16.gmra.mxu1 %v1625_v20 }
 0x357   :  { %2767 = vmatprep.mubr.bf16.mxu1 %v1626_v45 }
 0x35e   :  { %2768 = vmatmul.mubr.bf16.gmra.mxu1 %v1627_v34  ;;  %v4351_v34 = vld [vmem:[#allocation18_spill] sm:$0xff] }
 0x35f   :  { %2771 = vmatprep.mubr.bf16.mxu1 %v1628_v57 }
 0x366   :  { %2772 = vmatmul.mubr.bf16.gmra.mxu1 %v1629_v2 }
 0x3ee   :  { %v3918_v43 = vpop.f32.mrf.mxu1 }
 0x3ef   :  { %v1802_v39 = vrot.slane %v3918_v43, %v4346_v54  ;;  %v1778_v58 = vrot.slane %v3918_v43, %v4347_v52  ;;  %v1790_v48 = vrot.slane %v3918_v43, %v4348_v47  ;;  %v1814_v3 = vrot.slane %v3918_v43, %v4349_v32 }
 0x3f0   :  { %v3920_v44 = vpop.f32.mrf.mxu1  ;;  %v1850_v10 = vrot.slane %v3918_v43, %v4350_v53  ;;  %v1826_v57 = vrot.slane %v3918_v43, %v4351_v34 }
 0x3f1   :  { %v1807_v25 = vadd.f32 %v1802_v39, %v3920_v44  ;;  %v1783_v1 = vadd.f32 %v1778_v58, %v3920_v44  ;;  %v1795_v50 = vadd.f32 %v1790_v48, %v3920_v44  ;;  %v1819_v12 = vadd.f32 %v1814_v3, %v3920_v44 }
 0x3f2   :  { %v3922_v4 = vpop.f32.mrf.mxu1 }
 0x3f3   :  { %v1806_v61 = vrot.slane %v3922_v4, %v4346_v54  ;;  %v1818_v29 = vrot.slane %v3922_v4, %v4349_v32  ;;  %v1855_v54 = vadd.f32 %v1850_v10, %v3920_v44  ;;  %v1830_v10 = vrot.slane %v3922_v4, %v4351_v34 }
 0x3f4   :  { %v3926_v42 = vpop.f32.mrf.mxu1 }
 0x3f5   :  { %v1808_v8 = vadd.f32 %v1806_v61, %v3926_v42  ;;  %v1820_v39 = vadd.f32 %v1818_v29, %v3926_v42  ;;  %v1782_v29 = vrot.slane %v3922_v4, %v4347_v52 }
 0x40e   :  { %v2761_v26 = vpop.f32.mrf.mxu1 }
 0x40f   :  { %v3931_v35 = vadd.f32 %v2761_v26, %v1807_v25  ;;  %v1794_v25 = vrot.slane %v3922_v4, %v4348_v47  ;;  %v4352_v47 = vld [vmem:[#allocation19_spill] sm:$0xff] }
 0x410   :  { %v1712_v14 = vpop.f32.mrf.mxu1 }
 0x411   :  { %1875 = vadd.xlane.f32.xlu0 %v3931_v35  ;;  %v3937_v49 = vadd.f32 %v1783_v1, %v1712_v14  ;;  %v1937_v16 = vmul.f32 %v3931_v35, %v3931_v35  ;;  %v1831_v14 = vadd.f32 %v1826_v57, %v3920_v44  ;;  %v1796_v1 = vadd.f32 %v1794_v25, %v3926_v42 }
 0x412   :  { %v2762_v18 = vpop.f32.mrf.mxu1  ;;  %v1866_v57 = vrot.slane %v3922_v4, %v4352_v47 }
 0x413   :  { %v3953_v60 = vadd.f32 %v2762_v18, %v1819_v12  ;;  %v1935_v31 = vmul.f32 %v3937_v49, %v3937_v49  ;;  %v1854_v12 = vrot.slane %v3922_v4, %v4350_v53 }
 0x414   :  { %v1715_v24 = vpop.f32.mrf.mxu1  ;;  %v1868_v25 = vadd.f32 %v1866_v57, %v3926_v42 }
 0x415   :  { %v3942_v41 = vadd.f32 %v1795_v50, %v1715_v24  ;;  %1871 = vadd.xlane.f32.xlu0 %v3937_v49  ;;  %v1938_v20 = vmul.f32 %v3953_v60, %v3953_v60  ;;  %v1862_v24 = vrot.slane %v3918_v43, %v4352_v47 }
 0x416   :  { %v2765_v5 = vpop.f32.mrf.mxu1 }
 0x417   :  { %1873 = vadd.xlane.f32.xlu1 %v3942_v41  ;;  %v1936_v28 = vmul.f32 %v3942_v41, %v3942_v41  ;;  %v3976_v58 = vadd.f32 %v2765_v5, %v1855_v54  ;;  %v1867_v5 = vadd.f32 %v1862_v24, %v3920_v44 }
 0x418   :  { %v1728_v56 = vpop.f32.mrf.mxu1 }
 0x419   :  { %1955 = vadd.xlane.f32.xlu0 %v1937_v16  ;;  %v3984_v18 = vadd.f32 %v1831_v14, %v1728_v56  ;;  %v4353_v16 = vld [vmem:[#allocation12_spill] sm:$0xff]  ;;  %v1941_v14 = vmul.f32 %v3976_v58, %v3976_v58 }
 0x41a   :  { %v2766_v21 = vpop.f32.mrf.mxu1  ;;  %v1838_v56 = vrot.slane %v3918_v43, %v4353_v16 }
 0x41b   :  { %1953 = vadd.xlane.f32.xlu1 %v1936_v28  ;;  %v1939_v32 = vmul.f32 %v3984_v18, %v3984_v18  ;;  %v4001_v28 = vadd.f32 %v2766_v21, %v1867_v5 }
 0x41c   :  { %v1731_v59 = vpop.f32.mrf.mxu1 }
 0x41d   :  { %1877 = vadd.xlane.f32.xlu0 %v3953_v60 }
 0x41e   :  { %v2769_v33 = vpop.f32.mrf.mxu1 }
 0x41f   :  { %v3957_v36 = vadd.f32 %v2769_v33, %v1808_v8  ;;  %v1843_v33 = vadd.f32 %v1838_v56, %v3920_v44 }
 0x420   :  { %v1744_v15 = vpop.f32.mrf.mxu1 }
 0x421   :  { %1951 = vadd.xlane.f32.xlu0 %v1935_v31  ;;  %1891 = vadd.xlane.f32.xlu1 %v3957_v36  ;;  %v1945_v45 = vmul.f32 %v3957_v36, %v3957_v36  ;;  %v1856_v31 = vadd.f32 %v1854_v12, %v3926_v42  ;;  %v4010_v43 = vadd.f32 %v1843_v33, %v1731_v59 }
 0x422   :  { %v2770_v2 = vpop.f32.mrf.mxu1  ;;  %v1784_v59 = vadd.f32 %v1782_v29, %v3926_v42 }
 0x423   :  { %v3978_v26 = vadd.f32 %v2770_v2, %v1820_v39 }
 0x424   :  { %v1747_v48 = vpop.f32.mrf.mxu1  ;;  %v4025_v34 = vadd.f32 %v1784_v59, %v1744_v15  ;;  %v1842_v15 = vrot.slane %v3922_v4, %v4353_v16 }
 0x425   :  { %1957 = vadd.xlane.f32.xlu0 %v1938_v20  ;;  %1971 = vadd.xlane.f32.xlu1 %v1945_v45  ;;  %v3986_v50 = vadd.f32 %v1796_v1, %v1747_v48  ;;  %v1946_v3 = vmul.f32 %v3978_v26, %v3978_v26  ;;  %v1832_v20 = vadd.f32 %v1830_v10, %v3926_v42 }
 0x426   :  { %v2773_v8 = vpop.f32.mrf.mxu1  ;;  %v1940_v45 = vmul.f32 %v4010_v43, %v4010_v43  ;;  %v1943_v2 = vmul.f32 %v4025_v34, %v4025_v34  ;;  %v1844_v47 = vadd.f32 %v1842_v15, %v3926_v42 }
 0x427   :  { %v1944_v61 = vmul.f32 %v3986_v50, %v3986_v50  ;;  %v4012_v53 = vadd.f32 %v2773_v8, %v1856_v31 }
 0x428   :  { %v1760_v21 = vpop.f32.mrf.mxu1 }
 0x429   :  { %1883 = vadd.xlane.f32.xlu0 %v3976_v58  ;;  %1893 = vadd.xlane.f32.xlu1 %v3978_v26  ;;  %v4019_v44 = vadd.f32 %v1832_v20, %v1760_v21  ;;  %v1949_v52 = vmul.f32 %v4012_v53, %v4012_v53 }
 0x42a   :  { %v2774_v39 = vpop.f32.mrf.mxu1 }
 0x42b   :  { %v1947_v54 = vmul.f32 %v4019_v44, %v4019_v44  ;;  %v4039_v48 = vadd.f32 %v2774_v39, %v1868_v25 }
 0x42c   :  { %v1763_v1 = vpop.f32.mrf.mxu1 }
 0x42d   :  { %1879 = vadd.xlane.f32.xlu0 %v3984_v18  ;;  %1889 = vadd.xlane.f32.xlu1 %v3986_v50  ;;  %v4045_v24 = vadd.f32 %v1844_v47, %v1763_v1 }
 0x42f   :  { %v1948_v4 = vmul.f32 %v4045_v24, %v4045_v24 }
 0x431   :  { %1959 = vadd.xlane.f32.xlu0 %v1939_v32  ;;  %1973 = vadd.xlane.f32.xlu1 %v1946_v3  ;;  %v1942_v32 = vmul.f32 %v4001_v28, %v4001_v28  ;;  %v1950_v3 = vmul.f32 %v4039_v48, %v4039_v48 }
 0x435   :  { %1885 = vadd.xlane.f32.xlu0 %v4001_v28  ;;  %1969 = vadd.xlane.f32.xlu1 %v1944_v61 }
 0x439   :  { %1881 = vadd.xlane.f32.xlu0 %v4010_v43  ;;  %1899 = vadd.xlane.f32.xlu1 %v4012_v53 }
 0x43d   :  { %1961 = vadd.xlane.f32.xlu0 %v1940_v45  ;;  %1895 = vadd.xlane.f32.xlu1 %v4019_v44 }
 0x441   :  { %1887 = vadd.xlane.f32.xlu0 %v4025_v34  ;;  %1979 = vadd.xlane.f32.xlu1 %v1949_v52 }
 0x445   :  { %1967 = vadd.xlane.f32.xlu0 %v1943_v2  ;;  %1975 = vadd.xlane.f32.xlu1 %v1947_v54 }
 0x449   :  { %1963 = vadd.xlane.f32.xlu0 %v1941_v14  ;;  %1901 = vadd.xlane.f32.xlu1 %v4039_v48 }
 0x44d   :  { %1965 = vadd.xlane.f32.xlu0 %v1942_v32  ;;  %1897 = vadd.xlane.f32.xlu1 %v4045_v24 }
 0x451   :  { %1977 = vadd.xlane.f32.xlu1 %v1948_v4 }
 0x455   :  { %1981 = vadd.xlane.f32.xlu1 %v1950_v3 }
 0x49a   :  { %v1876_v42 = vpop.xlane.xlu0 %1875 }
 0x49b   :  { %v1905_v31 = vmul.f32 0.0078125, %v1876_v42 }
 0x49e   :  { %v4054_v5 = vpop.xlane.xlu0 %1871 }
 0x4a0   :  { %v1874_v16 = vpop.xlane.xlu1 %1873 }
 0x4a2   :  { %v1956_v56 = vpop.xlane.xlu0 %1955 }
 0x4a3   :  { %v1985_v45 = vmul.f32 0.0078125, %v1956_v56 }
 0x4a4   :  { %v1954_v12 = vpop.xlane.xlu1 %1953 }
 0x4a5   :  { %v1984_v19 = vmul.f32 0.0078125, %v1954_v12 }
 0x4a6   :  { %v1878_v61 = vpop.xlane.xlu0 %1877 }
 0x4a7   :  { %v1906_v14 = vmul.f32 0.0078125, %v1878_v61 }
 0x4aa   :  { %v4056_v8 = vpop.xlane.xlu0 %1951  ;;  %v1892_v33 = vpop.xlane.xlu1 %1891 }
 0x4ab   :  { %v1913_v10 = vmul.f32 0.0078125, %v1892_v33  ;;  %v1904_v33 = vmul.f32 0.0078125, %v1874_v16 }
 0x4ad   :  { %v1921_v21 = vadd.f32 %v1913_v10, %v1905_v31 }
 0x4ae   :  { %v1958_v29 = vpop.xlane.xlu0 %1957  ;;  %v1972_v20 = vpop.xlane.xlu1 %1971 }
 0x4af   :  { %v1929_v59 = vmul.f32 0.5, %v1921_v21  ;;  %v1993_v52 = vmul.f32 0.0078125, %v1972_v20  ;;  %v1986_v56 = vmul.f32 0.0078125, %v1958_v29 }
 0x4b1   :  { %v2001_v57 = vadd.f32 %v1993_v52, %v1985_v45  ;;  %v2017_v39 = vmul.f32 %v1929_v59, %v1929_v59 }
 0x4b2   :  { %v1884_v2 = vpop.xlane.xlu0 %1883  ;;  %v1894_v54 = vpop.xlane.xlu1 %1893 }
 0x4b3   :  { %v2009_v25 = vmul.f32 0.5, %v2001_v57  ;;  %v1914_v15 = vmul.f32 0.0078125, %v1894_v54 }
 0x4b5   :  { %v2025_v1 = vsub.f32 %v2009_v25, %v2017_v39  ;;  %v1922_v3 = vadd.f32 %v1914_v15, %v1906_v14 }
 0x4b6   :  { %v1880_v47 = vpop.xlane.xlu0 %1879  ;;  %v1890_v32 = vpop.xlane.xlu1 %1889 }
 0x4b7   :  { %v2049_v4 = vadd.f32 1e-05, %v2025_v1  ;;  %v1912_v42 = vmul.f32 0.0078125, %v1890_v32  ;;  %v4058_v21 = vmul.f32 0.5, %v1922_v3  ;;  %v2033_v3 = vsub.f32 %v3931_v35, %v1929_v59 }
 0x4b8   :  { %v1903_v35 = vmul.f32 0.0078125, %v4054_v5 }
 0x4b9   :  { %3042 = vrsqrt.f32 %v2049_v4  ;;  %v1920_v20 = vadd.f32 %v1912_v42, %v1904_v33  ;;  %v2018_v39 = vmul.f32 %v4058_v21, %v4058_v21  ;;  %v2041_v42 = vsub.f32 %v3957_v36, %v1929_v59 }
 0x4ba   :  { %v1960_v31 = vpop.xlane.xlu0 %1959  ;;  %v1974_v10 = vpop.xlane.xlu1 %1973 }
 0x4bb   :  { %v1994_v45 = vmul.f32 0.0078125, %v1974_v10  ;;  %v4062_v54 = vmul.f32 0.5, %v1920_v20 }
 0x4bd   :  { %v2002_v52 = vadd.f32 %v1994_v45, %v1986_v56  ;;  %v2016_v4 = vmul.f32 %v4062_v54, %v4062_v54 }
 0x4be   :  { %v4060_v57 = vpop.xlane.xlu0 %1885  ;;  %v1970_v61 = vpop.xlane.xlu1 %1969 }
 0x4bf   :  { %v2010_v25 = vmul.f32 0.5, %v2002_v52  ;;  %v1992_v16 = vmul.f32 0.0078125, %v1970_v61 }
 0x4c1   :  { %v2026_v15 = vsub.f32 %v2010_v25, %v2018_v39  ;;  %v2000_v14 = vadd.f32 %v1992_v16, %v1984_v19  ;;  %v1907_v16 = vmul.f32 0.0078125, %v1880_v47 }
 0x4c2   :  { %v4066_v1 = vpop.xlane.xlu0 %1881  ;;  %v1900_v29 = vpop.xlane.xlu1 %1899 }
 0x4c3   :  { %v2050_v32 = vadd.f32 1e-05, %v2026_v15  ;;  %v2008_v12 = vmul.f32 0.5, %v2000_v14  ;;  %v1917_v15 = vmul.f32 0.0078125, %v1900_v29 }
 0x4c5   :  { %3044 = vrsqrt.f32 %v2050_v32  ;;  %v2024_v33 = vsub.f32 %v2008_v12, %v2016_v4  ;;  %v1909_v4 = vmul.f32 0.0078125, %v1884_v2 }
 0x4c6   :  { %v3043_v10 = vpop.eup %3042  ;;  %v4072_v56 = vpop.xlane.xlu0 %1961 }
 0x4c7   :  { %v1896_v20 = vpop.xlane.xlu1 %1895  ;;  %v2065_v45 = vmul.f32 %v3043_v10, %v2033_v3  ;;  %v2073_v19 = vmul.f32 %v3043_v10, %v2041_v42  ;;  %v2048_v52 = vadd.f32 1e-05, %v2024_v33  ;;  %v1925_v29 = vadd.f32 %v1917_v15, %v1909_v4 }
 0x4c8   :  { %v1915_v61 = vmul.f32 0.0078125, %v1896_v20  ;;  %v1987_v20 = vmul.f32 0.0078125, %v1960_v31 }
 0x4c9   :  { %v2081_v39 = vmax.f32 %v2065_v45, 0.0  ;;  %v2089_v25 = vmax.f32 %v2073_v19, 0.0  ;;  %3046 = vrsqrt.f32 %v2048_v52 }
 0x4ca   :  { %v1888_v14 = vpop.xlane.xlu0 %1887  ;;  %v1923_v12 = vadd.f32 %v1915_v61, %v1907_v16  ;;  %v2034_v61 = vsub.f32 %v3953_v60, %v4058_v21  ;;  %v4094_v16 = vmul.f32 0.5, %v1925_v29 }
 0x4cb   :  { %v1980_v38 = vpop.xlane.xlu1 %1979  ;;  %v2097_v36 = vadd.f32 %v2081_v39, %v3652_v11  ;;  %v2105_v59 = vadd.f32 %v2089_v25, %v3655_v62  ;;  %v1911_v32 = vmul.f32 0.0078125, %v1888_v14  ;;  %v1983_v11 = vmul.f32 0.0078125, %v4056_v8 }
 0x4cc   :  { %v4084_v45 = vmul.f32 0.5, %v1923_v12  ;;  %v2042_v39 = vsub.f32 %v3978_v26, %v4058_v21  ;;  %v2032_v25 = vsub.f32 %v3942_v41, %v4062_v54  ;;  %v2040_v21 = vsub.f32 %v3986_v50, %v4062_v54 }
 0x4cd   :  { %v2113_v3 = vsub.f32 0.0, %v2097_v36  ;;  %v2121_v42 = vsub.f32 0.0, %v2105_v59  ;;  %2563 = vst [vmem:[%s4297_s7 + $0x10] sm:$0xff] %v2097_v36  ;;  %2571 = vst [vmem:[%s4297_s7 + $0x50] sm:$0xff] %v2105_v59  ;;  %v1919_v47 = vadd.f32 %v1911_v32, %v1903_v35  ;;  %v1997_v32 = vmul.f32 0.0078125, %v1980_v38 }
 0x4ce   :  { %v1968_v5 = vpop.xlane.xlu0 %1967  ;;  %v2019_v26 = vmul.f32 %v4084_v45, %v4084_v45  ;;  %v2021_v38 = vmul.f32 %v4094_v16, %v4094_v16 }
 0x4cf   :  { %v1976_v33 = vpop.xlane.xlu1 %1975  ;;  %v2131_v62 = vmul.f32 1.442695, %v2113_v3  ;;  %v2147_v10 = vmul.f32 1.442695, %v2121_v42  ;;  %v1991_v2 = vmul.f32 0.0078125, %v1968_v5  ;;  %v4086_v19 = vmul.f32 0.5, %v1919_v47 }
 0x4d0   :  { %v1995_v52 = vmul.f32 0.0078125, %v1976_v33 }
 0x4d1   :  { %3048 = vpow2.f32 %v2131_v62  ;;  %v1999_v31 = vadd.f32 %v1991_v2, %v1983_v11  ;;  %v2015_v60 = vmul.f32 %v4086_v19, %v4086_v19 }
 0x4d2   :  { %v3045_v8 = vpop.eup %3044  ;;  %3050 = vpow2.f32 %v2147_v10  ;;  %v2003_v15 = vadd.f32 %v1995_v52, %v1987_v20  ;;  %v1964_v14 = vpop.xlane.xlu0 %1963 }
 0x4d3   :  { %v1902_v35 = vpop.xlane.xlu1 %1901  ;;  %v2066_v36 = vmul.f32 %v3045_v8, %v2034_v61  ;;  %v2074_v59 = vmul.f32 %v3045_v8, %v2042_v39  ;;  %v1989_v4 = vmul.f32 0.0078125, %v1964_v14  ;;  %v2007_v12 = vmul.f32 0.5, %v1999_v31 }
 0x4d4   :  { %v2011_v41 = vmul.f32 0.5, %v2003_v15  ;;  %v1918_v50 = vmul.f32 0.0078125, %v1902_v35 }
 0x4d5   :  { %v2082_v3 = vmax.f32 %v2066_v36, 0.0  ;;  %v2090_v42 = vmax.f32 %v2074_v59, 0.0  ;;  %v2005_v47 = vadd.f32 %v1997_v32, %v1989_v4  ;;  %v2023_v5 = vsub.f32 %v2007_v12, %v2015_v60 }
 0x4d6   :  { %v3047_v29 = vpop.eup %3046  ;;  %v2027_v33 = vsub.f32 %v2011_v41, %v2019_v26 }
 0x4d7   :  { %v1898_v11 = vpop.xlane.xlu1 %1897  ;;  %v2098_v62 = vadd.f32 %v2082_v3, %v3679_v55  ;;  %v2106_v10 = vadd.f32 %v2090_v42, %v4341_v30  ;;  %v2064_v2 = vmul.f32 %v3047_v29, %v2032_v25  ;;  %v2072_v20 = vmul.f32 %v3047_v29, %v2040_v21 }
 0x4d8   :  { %v2047_v52 = vadd.f32 1e-05, %v2023_v5  ;;  %v2051_v61 = vadd.f32 1e-05, %v2027_v33  ;;  %v2013_v39 = vmul.f32 0.5, %v2005_v47  ;;  %v1910_v30 = vmul.f32 0.0078125, %v4060_v57 }
 0x4d9   :  { %v2114_v54 = vsub.f32 0.0, %v2098_v62  ;;  %v2122_v8 = vsub.f32 0.0, %v2106_v10  ;;  %2564 = vst [vmem:[%s4297_s7 + $0x18] sm:$0xff] %v2098_v62  ;;  %2572 = vst [vmem:[%s4297_s7 + $0x58] sm:$0xff] %v2106_v10  ;;  %v2080_v31 = vmax.f32 %v2064_v2, 0.0  ;;  %v2088_v55 = vmax.f32 %v2072_v20, 0.0 }
 0x4da   :  { %v1908_v25 = vmul.f32 0.0078125, %v4066_v1  ;;  %3052 = vrsqrt.f32 %v2047_v52  ;;  %v2029_v15 = vsub.f32 %v2013_v39, %v2021_v38  ;;  %v1926_v60 = vadd.f32 %v1918_v50, %v1910_v30 }
 0x4db   :  { %v1978_v14 = vpop.xlane.xlu1 %1977  ;;  %v2133_v35 = vmul.f32 1.442695, %v2114_v54  ;;  %v2149_v36 = vmul.f32 1.442695, %v2122_v8  ;;  %v2096_v59 = vadd.f32 %v2080_v31, %v3688_v22  ;;  %v2104_v32 = vadd.f32 %v2088_v55, %v3691_v17  ;;  %v1966_v17 = vpop.xlane.xlu0 %1965 }
 0x4dc   :  { %3054 = vrsqrt.f32 %v2051_v61  ;;  %v2053_v4 = vadd.f32 1e-05, %v2029_v15  ;;  %v1916_v12 = vmul.f32 0.0078125, %v1898_v11  ;;  %v1996_v57 = vmul.f32 0.0078125, %v1978_v14 }
 0x4dd   :  { %3056 = vpow2.f32 %v2133_v35  ;;  %v2112_v26 = vsub.f32 0.0, %v2096_v59  ;;  %v2120_v41 = vsub.f32 0.0, %v2104_v32  ;;  %2562 = vst [vmem:[%s4297_s7 + $0x8] sm:$0xff] %v2096_v59  ;;  %2570 = vst [vmem:[%s4297_s7 + $0x48] sm:$0xff] %v2104_v32  ;;  %v1988_v22 = vmul.f32 0.0078125, %v4072_v56 }
 0x4de   :  { %v3049_v1 = vpop.eup %3048  ;;  %3058 = vpow2.f32 %v2149_v36  ;;  %v1924_v21 = vadd.f32 %v1916_v12, %v1908_v25  ;;  %v4125_v10 = vmul.f32 0.5, %v1926_v60  ;;  %v1990_v2 = vmul.f32 0.0078125, %v1966_v17 }
 0x4df   :  { %v1982_v3 = vpop.xlane.xlu1 %1981  ;;  %v3051_v42 = vpop.eup %3050  ;;  %v2161_v47 = vadd.f32 1.0, %v3049_v1  ;;  %v2129_v29 = vmul.f32 1.442695, %v2112_v26  ;;  %v2145_v5 = vmul.f32 1.442695, %v2120_v41  ;;  %3060 = vrsqrt.f32 %v2053_v4 }
 0x4e0   :  { %v2169_v33 = vadd.f32 1.0, %v3051_v42  ;;  %v4123_v38 = vmul.f32 0.5, %v1924_v21  ;;  %v2004_v11 = vadd.f32 %v1996_v57, %v1988_v22  ;;  %v1998_v62 = vmul.f32 0.0078125, %v1982_v3 }
 0x4e1   :  { %3062 = vrcp.f32 %v2161_v47  ;;  %v2022_v39 = vmul.f32 %v4125_v10, %v4125_v10  ;;  %v2031_v54 = vsub.f32 %v3937_v49, %v4086_v19  ;;  %v2039_v8 = vsub.f32 %v4025_v34, %v4086_v19 }
 0x4e2   :  { %3064 = vrcp.f32 %v2169_v33  ;;  %v2020_v56 = vmul.f32 %v4123_v38, %v4123_v38  ;;  %v2012_v20 = vmul.f32 0.5, %v2004_v11  ;;  %v2006_v52 = vadd.f32 %v1998_v62, %v1990_v2 }
 0x4e3   :  { %3066 = vpow2.f32 %v2129_v29  ;;  %v2035_v25 = vsub.f32 %v3984_v18, %v4084_v45  ;;  %v2043_v15 = vsub.f32 %v4019_v44, %v4084_v45  ;;  %v2037_v26 = vsub.f32 %v3976_v58, %v4094_v16 }
 0x4e4   :  { %3068 = vpow2.f32 %v2145_v5  ;;  %v2028_v61 = vsub.f32 %v2012_v20, %v2020_v56  ;;  %v2014_v50 = vmul.f32 0.5, %v2006_v52  ;;  %v2045_v18 = vsub.f32 %v4012_v53, %v4094_v16 }
 0x4e6   :  { %v2052_v55 = vadd.f32 1e-05, %v2028_v61  ;;  %v2030_v30 = vsub.f32 %v2014_v50, %v2022_v39 }
 0x4e7   :  { %v3053_v31 = vpop.eup %3052 }
 0x4e8   :  { %v2063_v14 = vmul.f32 %v3053_v31, %v2031_v54  ;;  %v2071_v35 = vmul.f32 %v3053_v31, %v2039_v8  ;;  %3070 = vrsqrt.f32 %v2052_v55  ;;  %v2054_v59 = vadd.f32 1e-05, %v2030_v30 }
 0x4e9   :  { %v3055_v36 = vpop.eup %3054 }
 0x4ea   :  { %v3057_v32 = vpop.eup %3056  ;;  %v2079_v4 = vmax.f32 %v2063_v14, 0.0  ;;  %v2087_v49 = vmax.f32 %v2071_v35, 0.0  ;;  %v2067_v60 = vmul.f32 %v3055_v36, %v2035_v25  ;;  %v2075_v12 = vmul.f32 %v3055_v36, %v2043_v15 }
 0x4eb   :  { %v3059_v34 = vpop.eup %3058  ;;  %v2162_v19 = vadd.f32 1.0, %v3057_v32  ;;  %3072 = vrsqrt.f32 %v2054_v59  ;;  %v2038_v25 = vsub.f32 %v4001_v28, %v4125_v10  ;;  %v2046_v36 = vsub.f32 %v4039_v48, %v4125_v10 }
 0x4ec   :  { %v3061_v44 = vpop.eup %3060  ;;  %v2170_v45 = vadd.f32 1.0, %v3059_v34  ;;  %v2095_v41 = vadd.f32 %v2079_v4, %v3717_v7  ;;  %v2103_v57 = vadd.f32 %v2087_v49, %v3720_v13  ;;  %v2083_v1 = vmax.f32 %v2067_v60, 0.0 }
 0x4ed   :  { %v2091_v22 = vmax.f32 %v2075_v12, 0.0  ;;  %v2069_v17 = vmul.f32 %v3061_v44, %v2037_v26  ;;  %v2077_v21 = vmul.f32 %v3061_v44, %v2045_v18 }
 0x4ee   :  { %v3063_v3 = vpop.eup %3062  ;;  %3074 = vrcp.f32 %v2170_v45  ;;  %v2111_v42 = vsub.f32 0.0, %v2095_v41  ;;  %v2119_v47 = vsub.f32 0.0, %v2103_v57  ;;  %2561 = vst [vmem:[%s4297_s7] sm:$0xff] %v2095_v41  ;;  %2569 = vst [vmem:[%s4297_s7 + $0x40] sm:$0xff] %v2103_v57  ;;  %v2099_v7 = vadd.f32 %v2083_v1, %v3733_v27  ;;  %v4191_v1 = vpop.f32.mrf.mxu0 }
 0x4ef   :  { %v3065_v58 = vpop.eup %3064  ;;  %v2211_v13 = vmul.f32 1.442695, %v3063_v3  ;;  %v2107_v53 = vadd.f32 %v2091_v22, %v4342_v46  ;;  %v2085_v16 = vmax.f32 %v2069_v17, 0.0  ;;  %v2093_v29 = vmax.f32 %v2077_v21, 0.0 }
 0x4f0   :  { %v3067_v5 = vpop.eup %3066  ;;  %v2227_v33 = vmul.f32 1.442695, %v3065_v58  ;;  %3076 = vrcp.f32 %v2162_v19  ;;  %v2127_v11 = vmul.f32 1.442695, %v2111_v42  ;;  %v2143_v62 = vmul.f32 1.442695, %v2119_v47 }
 0x4f1   :  { %2565 = vst [vmem:[%s4297_s7 + $0x20] sm:$0xff] %v2099_v7  ;;  %v3069_v2 = vpop.eup %3068  ;;  %3078 = vpow2.f32 %v2211_v13  ;;  %v2160_v56 = vadd.f32 1.0, %v3067_v5  ;;  %v2115_v20 = vsub.f32 0.0, %v2099_v7  ;;  %v2123_v27 = vsub.f32 0.0, %v2107_v53  ;;  %2573 = vst [vmem:[%s4297_s7 + $0x60] sm:$0xff] %v2107_v53 }
 0x4f2   :  { %3080 = vpow2.f32 %v2227_v33  ;;  %v2168_v46 = vadd.f32 1.0, %v3069_v2  ;;  %v2101_v52 = vadd.f32 %v2085_v16, %v3725_v51  ;;  %v2109_v61 = vadd.f32 %v2093_v29, %v4344_v0  ;;  %v4193_v16 = vpop.f32.mrf.mxu0 }
 0x4f3   :  { %3082 = vrcp.f32 %v2160_v56  ;;  %v2135_v39 = vmul.f32 1.442695, %v2115_v20  ;;  %v2151_v50 = vmul.f32 1.442695, %v2123_v27  ;;  %v2036_v51 = vsub.f32 %v4010_v43, %v4123_v38 }
 0x4f4   :  { %3084 = vrcp.f32 %v2168_v46  ;;  %v2117_v54 = vsub.f32 0.0, %v2101_v52  ;;  %v2125_v8 = vsub.f32 0.0, %v2109_v61  ;;  %2567 = vst [vmem:[%s4297_s7 + $0x30] sm:$0xff] %v2101_v52  ;;  %2575 = vst [vmem:[%s4297_s7 + $0x70] sm:$0xff] %v2109_v61  ;;  %v2044_v0 = vsub.f32 %v4045_v24, %v4123_v38  ;;  %v4195_v27 = vpop.f32.mrf.mxu0 }
 0x4f5   :  { %3086 = vpow2.f32 %v2127_v11  ;;  %v3071_v31 = vpop.eup %3070 }
 0x4f6   :  { %3088 = vpow2.f32 %v2143_v62  ;;  %v2139_v55 = vmul.f32 1.442695, %v2117_v54  ;;  %v2155_v30 = vmul.f32 1.442695, %v2125_v8  ;;  %v2068_v15 = vmul.f32 %v3071_v31, %v2036_v51 }
 0x4f7   :  { %3090 = vpow2.f32 %v2135_v39  ;;  %v2076_v14 = vmul.f32 %v3071_v31, %v2044_v0 }
 0x4f8   :  { %v3073_v35 = vpop.eup %3072  ;;  %3092 = vpow2.f32 %v2151_v50  ;;  %v2084_v43 = vmax.f32 %v2068_v15, 0.0 }
 0x4f9   :  { %3094 = vpow2.f32 %v2139_v55  ;;  %v2092_v59 = vmax.f32 %v2076_v14, 0.0  ;;  %v2070_v32 = vmul.f32 %v3073_v35, %v2038_v25  ;;  %v2078_v24 = vmul.f32 %v3073_v35, %v2046_v36 }
 0x4fa   :  { %3096 = vpow2.f32 %v2155_v30  ;;  %v2100_v4 = vadd.f32 %v2084_v43, %v3749_v9 }
 0x4fb   :  { %v3075_v38 = vpop.eup %3074  ;;  %v2108_v49 = vadd.f32 %v2092_v59, %v4343_v23  ;;  %v2086_v60 = vmax.f32 %v2070_v32, 0.0  ;;  %v2094_v12 = vmax.f32 %v2078_v24, 0.0 }
 0x4fc   :  { %v2229_v28 = vmul.f32 1.442695, %v3075_v38  ;;  %v2116_v19 = vsub.f32 0.0, %v2100_v4  ;;  %2566 = vst [vmem:[%s4297_s7 + $0x28] sm:$0xff] %v2100_v4 }
 0x4fd   :  { %v3077_v34 = vpop.eup %3076  ;;  %v2124_v26 = vsub.f32 0.0, %v2108_v49  ;;  %2574 = vst [vmem:[%s4297_s7 + $0x68] sm:$0xff] %v2108_v49  ;;  %v2102_v48 = vadd.f32 %v2086_v60, %v3757_v40  ;;  %v2110_v9 = vadd.f32 %v2094_v12, %v4345_v37 }
 0x4fe   :  { %v3079_v10 = vpop.eup %3078  ;;  %v2137_v18 = vmul.f32 1.442695, %v2116_v19  ;;  %3098 = vpow2.f32 %v2229_v28  ;;  %v2213_v22 = vmul.f32 1.442695, %v3077_v34 }
 0x4ff   :  { %v3081_v23 = vpop.eup %3080  ;;  %v2153_v44 = vmul.f32 1.442695, %v2124_v26  ;;  %2568 = vst [vmem:[%s4297_s7 + $0x38] sm:$0xff] %v2102_v48  ;;  %2576 = vst [vmem:[%s4297_s7 + $0x78] sm:$0xff] %v2110_v9  ;;  %v2118_v42 = vsub.f32 0.0, %v2102_v48  ;;  %v2126_v13 = vsub.f32 0.0, %v2110_v9  ;;  %v2337_v15 = vmul.f32 %v3079_v10, %v4191_v1 }
 0x500   :  { %v3083_v45 = vpop.eup %3082  ;;  %v2299_v41 = vrot.slane %v3081_v23, 4  ;;  %3100 = vpow2.f32 %v2137_v18  ;;  %v2345_v52 = vmul.f32 %v3081_v23, %v4195_v27  ;;  %v2251_v61 = vrot.slane %v3079_v10, 4  ;;  %s3284_s7 = smov [#allocation8]  }
 0x501   :  { %v3085_v57 = vpop.eup %3084  ;;  %v2209_v40 = vmul.f32 1.442695, %v3083_v45  ;;  %3102 = vpow2.f32 %v2153_v44  ;;  %v2141_v62 = vmul.f32 1.442695, %v2118_v42  ;;  %v2157_v20 = vmul.f32 1.442695, %v2126_v13 }
 0x502   :  { %v3087_v37 = vpop.eup %3086  ;;  %v2225_v17 = vmul.f32 1.442695, %v3085_v57  ;;  %v2300_v47 = vadd.f32 %v3081_v23, %v2299_v41  ;;  %v2411_v8 = vrot.slane %v2345_v52, 4  ;;  %v2252_v51 = vadd.f32 %v3079_v10, %v2251_v61  ;;  %s2582_s13 = sshll.u32 %s3284_s7, 4  ;;  %s2583_s13 = int_to_ptr.vmem [resolvable:$true] %s2582_s13 }
 0x503   :  { %v3089_v21 = vpop.eup %3088  ;;  %3104 = vpow2.f32 %v2209_v40  ;;  %v2159_v3 = vadd.f32 1.0, %v3087_v37  ;;  %v2363_v12 = vrot.slane %v2337_v15, 4  ;;  %s3250_s14 = scalar_lea.vmem %s2583_s13, 256  ;;  %p3255_p2 = scmp.lt.s32.totalorder %s2583_s13, %s2583_s13 }
 0x504   :  { %v3091_v7 = vpop.eup %3090  ;;  %3106 = vpow2.f32 %v2225_v17  ;;  %v2167_v58 = vadd.f32 1.0, %v3089_v21  ;;  %v2301_v2 = vrot.slane %v2300_v47, 2  ;;  %v2412_v43 = vadd.f32 %v2411_v8, %v2345_v52  ;;  %p3251_p1 = scmp.ne.s32.totalorder %s2583_s13, %s3250_s14  ;;  %p3256_p3 = scmp.lt.s32.totalorder %s3250_s14, %s3250_s14 }
 0x505   :  { %v3093_v53 = vpop.eup %3092  ;;  %3108 = vrcp.f32 %v2159_v3  ;;  %v2163_v29 = vadd.f32 1.0, %v3091_v7  ;;  %v2253_v59 = vrot.slane %v2252_v51, 2  ;;  %v2364_v17 = vadd.f32 %v2363_v12, %v2337_v15 }
 0x506   :  { %v3095_v5 = vpop.eup %3094  ;;  %3110 = vrcp.f32 %v2167_v58  ;;  %v2171_v33 = vadd.f32 1.0, %v3093_v53  ;;  %v2302_v39 = vadd.f32 %v2301_v2, %v2300_v47  ;;  %v2413_v23 = vrot.slane %v2412_v43, 2  ;;  %p3257_p4 = por %p3256_p3, %p3255_p2 }
 0x507   :  { %v3097_v11 = vpop.eup %3096  ;;  %3112 = vpow2.f32 %v2213_v22  ;;  %v2165_v46 = vadd.f32 1.0, %v3095_v5  ;;  %v2254_v18 = vadd.f32 %v2253_v59, %v2252_v51 }
 0x508   :  { %3114 = vrcp.f32 %v2171_v33  ;;  %v2173_v56 = vadd.f32 1.0, %v3097_v11  ;;  %v2303_v55 = vrot.slane %v2302_v39, 1  ;;  %v2414_v13 = vadd.f32 %v2413_v23, %v2412_v43  ;;  %p3258_p5 = pnand %p3257_p4, %p3251_p1 }
 0x509   :  { %3116 = vrcp.f32 %v2163_v29  ;;  %v2255_v53 = vrot.slane %v2254_v18, 1 }
 0x50a   :  { %3118 = vrcp.f32 %v2173_v56  ;;  %v2304_v24 = vadd.f32 %v2303_v55, %v2302_v39  ;;  %v2365_v39 = vrot.slane %v2364_v17, 2  ;;  %v2415_v8 = vrot.slane %v2414_v13, 1 }
 0x50b   :  { %3120 = vpow2.f32 %v2141_v62  ;;  %v3099_v50 = vpop.eup %3098  ;;  %v2256_v52 = vadd.f32 %v2255_v53, %v2254_v18 }
 0x50c   :  { %3122 = vpow2.f32 %v2157_v20  ;;  %v2305_v38 = vrot.slane %v3099_v50, 4  ;;  %v2346_v4 = vmul.f32 %v3099_v50, %v4195_v27 }
 0x50d   :  { %3124 = vrcp.f32 %v2165_v46  ;;  %v3101_v54 = vpop.eup %3100 }
 0x50e   :  { %v3103_v0 = vpop.eup %3102  ;;  %v2164_v31 = vadd.f32 1.0, %v3101_v54  ;;  %v2306_v45 = vadd.f32 %v3099_v50, %v2305_v38  ;;  %v2417_v41 = vrot.slane %v2346_v4, 4  ;;  %v4208_v38 = vadd.f32 %v2365_v39, %v2364_v17 }
 0x50f   :  { %v2172_v25 = vadd.f32 1.0, %v3103_v0 }
 0x510   :  { %v4198_v30 = vpop.eup %3104  ;;  %3126 = vrcp.f32 %v2164_v31  ;;  %v2307_v29 = vrot.slane %v2306_v45, 2  ;;  %v2418_v5 = vadd.f32 %v2417_v41, %v2346_v4 }
 0x511   :  { %v3107_v14 = vpop.eup %3106  ;;  %3128 = vrcp.f32 %v2172_v25  ;;  %v2245_v28 = vrot.slane %v4198_v30, 4  ;;  %v2336_v25 = vmul.f32 %v4198_v30, %v4191_v1 }
 0x512   :  { %v3109_v35 = vpop.eup %3108  ;;  %v2293_v36 = vrot.slane %v3107_v14, 4  ;;  %v2344_v48 = vmul.f32 %v3107_v14, %v4195_v27  ;;  %v2308_v54 = vadd.f32 %v2307_v29, %v2306_v45  ;;  %v2419_v51 = vrot.slane %v2418_v5, 2 }
 0x513   :  { %v3111_v32 = vpop.eup %3110  ;;  %v2207_v19 = vmul.f32 1.442695, %v3109_v35  ;;  %v2246_v22 = vadd.f32 %v4198_v30, %v2245_v28 }
 0x514   :  { %v3113_v49 = vpop.eup %3112  ;;  %v2223_v60 = vmul.f32 1.442695, %v3111_v32  ;;  %v2294_v26 = vadd.f32 %v3107_v14, %v2293_v36  ;;  %v2405_v47 = vrot.slane %v2344_v48, 4  ;;  %v2309_v59 = vrot.slane %v2308_v54, 1 }
 0x515   :  { %v3115_v34 = vpop.eup %3114  ;;  %v2257_v57 = vrot.slane %v3113_v49, 4  ;;  %v2247_v62 = vrot.slane %v2246_v22, 2  ;;  %v2338_v61 = vmul.f32 %v3113_v49, %v4191_v1  ;;  %v2420_v32 = vadd.f32 %v2419_v51, %v2418_v5 }
 0x516   :  { %v3117_v10 = vpop.eup %3116  ;;  %3130 = vpow2.f32 %v2223_v60  ;;  %v2231_v9 = vmul.f32 1.442695, %v3115_v34  ;;  %v2295_v42 = vrot.slane %v2294_v26, 2  ;;  %v2406_v20 = vadd.f32 %v2405_v47, %v2344_v48 }
 0x517   :  { %v3119_v44 = vpop.eup %3118  ;;  %3132 = vrcp.f32 %v2304_v24  ;;  %v2258_v33 = vadd.f32 %v3113_v49, %v2257_v57  ;;  %v2215_v11 = vmul.f32 1.442695, %v3117_v10  ;;  %v2248_v55 = vadd.f32 %v2247_v62, %v2246_v22 }
 0x518   :  { %v3121_v40 = vpop.eup %3120  ;;  %3134 = vpow2.f32 %v2231_v9  ;;  %v2235_v37 = vmul.f32 1.442695, %v3119_v44  ;;  %v2296_v56 = vadd.f32 %v2295_v42, %v2294_v26  ;;  %v2407_v35 = vrot.slane %v2406_v20, 2 }
 0x519   :  { %v3123_v21 = vpop.eup %3122  ;;  %3136 = vpow2.f32 %v2207_v19  ;;  %v2166_v3 = vadd.f32 1.0, %v3121_v40  ;;  %v2259_v0 = vrot.slane %v2258_v33, 2  ;;  %v2369_v36 = vrot.slane %v2338_v61, 4 }
 0x51a   :  { %v3125_v7 = vpop.eup %3124  ;;  %3138 = vpow2.f32 %v2235_v37  ;;  %v2174_v58 = vadd.f32 1.0, %v3123_v21  ;;  %v2297_v14 = vrot.slane %v2296_v56, 1  ;;  %v2416_v60 = vadd.f32 %v2415_v8, %v2414_v13 }
 0x51b   :  { %3140 = vrcp.f32 %v2166_v3  ;;  %v2219_v2 = vmul.f32 1.442695, %v3125_v7  ;;  %v2260_v24 = vadd.f32 %v2259_v0, %v2258_v33  ;;  %v2249_v28 = vrot.slane %v2248_v55, 1 }
 0x51c   :  { %3142 = vrcp.f32 %v2174_v58  ;;  %v2298_v30 = vadd.f32 %v2297_v14, %v2296_v56  ;;  %v2408_v34 = vadd.f32 %v2407_v35, %v2406_v20  ;;  %v2357_v19 = vrot.slane %v2336_v25, 4 }
 0x51d   :  { %v3127_v46 = vpop.eup %3126  ;;  %3144 = vpow2.f32 %v2215_v11  ;;  %v2370_v23 = vadd.f32 %v2369_v36, %v2338_v61  ;;  %v2310_v44 = vadd.f32 %v2309_v59, %v2308_v54  ;;  %v2421_v45 = vrot.slane %v2420_v32, 1 }
 0x51e   :  { %v3129_v50 = vpop.eup %3128  ;;  %3146 = vpow2.f32 %v2219_v2  ;;  %v2217_v15 = vmul.f32 1.442695, %v3127_v46  ;;  %v2261_v57 = vrot.slane %v2260_v24, 1  ;;  %v2250_v21 = vadd.f32 %v2249_v28, %v2248_v55 }
 0x51f   :  { %v2233_v31 = vmul.f32 1.442695, %v3129_v50  ;;  %v2409_v47 = vrot.slane %v2408_v34, 1  ;;  %v2358_v7 = vadd.f32 %v2357_v19, %v2336_v25  ;;  %v4212_v2 = vadd.f32 %v2421_v45, %v2420_v32 }
 0x520   :  { %v2262_v56 = vadd.f32 %v2261_v57, %v2260_v24  ;;  %v2371_v61 = vrot.slane %v2370_v23, 2 }
 0x521   :  { %3148 = vpow2.f32 %v2233_v31  ;;  %v2410_v46 = vadd.f32 %v2409_v47, %v2408_v34  ;;  %v2359_v25 = vrot.slane %v2358_v7, 2 }
 0x522   :  { %3150 = vrcp.f32 %v2256_v52  ;;  %v4223_v24 = vadd.f32 %v2371_v61, %v2370_v23 }
 0x523   :  { %v3131_v43 = vpop.eup %3130  ;;  %3152 = vpow2.f32 %v2217_v15  ;;  %v4225_v19 = vadd.f32 %v2359_v25, %v2358_v7 }
 0x524   :  { %v3133_v4 = vpop.eup %3132  ;;  %v2287_v49 = vrot.slane %v3131_v43, 4  ;;  %v2343_v9 = vmul.f32 %v3131_v43, %v4195_v27  ;;  %3154 = vrcp.f32 %v2298_v30 }
 0x525   :  { %v3135_v12 = vpop.eup %3134  ;;  %v2473_v41 = vmul.f32 %v3133_v4, %v2416_v60 }
 0x526   :  { %v3137_v26 = vpop.eup %3136  ;;  %v2288_v48 = vadd.f32 %v3131_v43, %v2287_v49  ;;  %v2311_v10 = vrot.slane %v3135_v12, 4  ;;  %v2399_v53 = vrot.slane %v2343_v9, 4  ;;  %v2347_v11 = vmul.f32 %v3135_v12, %v4195_v27 }
 0x527   :  { %v3139_v18 = vpop.eup %3138  ;;  %v2239_v29 = vrot.slane %v3137_v26, 4  ;;  %v4214_v52 = vmul.f32 0.125, %v2473_v41  ;;  %v4221_v32 = vmul.f32 %v3137_v26, %v4191_v1 }
 0x528   :  { %v3141_v40 = vpop.eup %3140  ;;  %v2289_v37 = vrot.slane %v2288_v48, 2  ;;  %v2312_v22 = vadd.f32 %v3135_v12, %v2311_v10  ;;  %v2323_v17 = vrot.slane %v3139_v18, 4  ;;  %v2400_v54 = vadd.f32 %v2399_v53, %v2343_v9 }
 0x529   :  { %v3143_v3 = vpop.eup %3142  ;;  %v2221_v42 = vmul.f32 1.442695, %v3141_v40  ;;  %v2240_v8 = vadd.f32 %v3137_v26, %v2239_v29  ;;  %v2423_v55 = vrot.slane %v2347_v11, 4  ;;  %v2349_v35 = vmul.f32 %v3139_v18, %v4195_v27 }
 0x52a   :  { %v2237_v58 = vmul.f32 1.442695, %v3143_v3  ;;  %v2290_v13 = vadd.f32 %v2289_v37, %v2288_v48  ;;  %v2313_v5 = vrot.slane %v2312_v22, 2  ;;  %v2324_v33 = vadd.f32 %v3139_v18, %v2323_v17  ;;  %v3145_v20 = vpop.eup %3144 }
 0x52b   :  { %3156 = vpow2.f32 %v2221_v42  ;;  %v3147_v39 = vpop.eup %3146  ;;  %v2263_v36 = vrot.slane %v3145_v20, 4  ;;  %v2401_v60 = vrot.slane %v2400_v54, 2  ;;  %v2241_v28 = vrot.slane %v2240_v8, 2 }
 0x52c   :  { %3158 = vpow2.f32 %v2237_v58  ;;  %v2291_v62 = vrot.slane %v2290_v13, 1  ;;  %v2314_v0 = vadd.f32 %v2313_v5, %v2312_v22  ;;  %v2325_v31 = vrot.slane %v2324_v33, 2 }
 0x52d   :  { %3160 = vrcp.f32 %v2310_v44  ;;  %v2275_v59 = vrot.slane %v3147_v39, 4  ;;  %v2424_v34 = vadd.f32 %v2423_v55, %v2347_v11  ;;  %v2435_v9 = vrot.slane %v2349_v35, 4 }
 0x52e   :  { %v2292_v50 = vadd.f32 %v2291_v62, %v2290_v13  ;;  %3162 = vrcp.f32 %v2250_v21  ;;  %v3149_v51 = vpop.eup %3148  ;;  %v2315_v12 = vrot.slane %v2314_v0, 1  ;;  %v2326_v30 = vadd.f32 %v2325_v31, %v2324_v33 }
 0x52f   :  { %v2317_v15 = vrot.slane %v3149_v51, 4  ;;  %v2348_v14 = vmul.f32 %v3149_v51, %v4195_v27  ;;  %v4218_v43 = vpop.eup %3150  ;;  %3164 = vrcp.f32 %v2262_v56  ;;  %v2264_v18 = vadd.f32 %v3145_v20, %v2263_v36 }
 0x530   :  { %v3153_v4 = vpop.eup %3152  ;;  %3166 = vrcp.f32 %v2292_v50  ;;  %v2276_v26 = vadd.f32 %v3147_v39, %v2275_v59  ;;  %v4228_v23 = vmul.f32 %v3145_v20, %v4191_v1  ;;  %v2351_v45 = vrot.slane %v4221_v32, 4 }
 0x531   :  { %v2318_v49 = vadd.f32 %v3149_v51, %v2317_v15  ;;  %v2429_v10 = vrot.slane %v2348_v14, 4  ;;  %v2269_v44 = vrot.slane %v3153_v4, 4  ;;  %v3155_v41 = vpop.eup %3154  ;;  %v2402_v40 = vadd.f32 %v2401_v60, %v2400_v54 }
 0x532   :  { %v2242_v37 = vadd.f32 %v2241_v28, %v2240_v8  ;;  %v4232_v22 = vmul.f32 %v3147_v39, %v4191_v1  ;;  %v2316_v17 = vadd.f32 %v2315_v12, %v2314_v0  ;;  %v2327_v21 = vrot.slane %v2326_v30, 1 }
 0x533   :  { %v2319_v48 = vrot.slane %v2318_v49, 2  ;;  %v2425_v3 = vrot.slane %v2424_v34, 2  ;;  %v2270_v42 = vadd.f32 %v3153_v4, %v2269_v44  ;;  %v2430_v58 = vadd.f32 %v2429_v10, %v2348_v14 }
 0x534   :  { %v2436_v13 = vadd.f32 %v2435_v9, %v2349_v35  ;;  %v2265_v53 = vrot.slane %v2264_v18, 2  ;;  %v4234_v5 = vmul.f32 %v3155_v41, %v2410_v46  ;;  %v2277_v11 = vrot.slane %v2276_v26, 2 }
 0x535   :  { %v2320_v57 = vadd.f32 %v2319_v48, %v2318_v49  ;;  %v2271_v33 = vrot.slane %v2270_v42, 2  ;;  %v2403_v50 = vrot.slane %v2402_v40, 1  ;;  %v2328_v8 = vadd.f32 %v2327_v21, %v2326_v30 }
 0x536   :  { %v2426_v51 = vadd.f32 %v2425_v3, %v2424_v34  ;;  %3168 = vrcp.f32 %v2316_v17  ;;  %v2431_v55 = vrot.slane %v2430_v58, 2  ;;  %v2266_v46 = vadd.f32 %v2265_v53, %v2264_v18 }
 0x537   :  { %v2321_v7 = vrot.slane %v2320_v57, 1  ;;  %v2272_v25 = vadd.f32 %v2271_v33, %v2270_v42  ;;  %v2278_v15 = vadd.f32 %v2277_v11, %v2276_v26  ;;  %v2340_v35 = vmul.f32 %v3153_v4, %v4191_v1 }
 0x538   :  { %v3157_v47 = vpop.eup %3156  ;;  %v2404_v12 = vadd.f32 %v2403_v50, %v2402_v40  ;;  %v2427_v30 = vrot.slane %v2426_v51, 1  ;;  %v2243_v34 = vrot.slane %v2242_v37, 1  ;;  %v2432_v9 = vadd.f32 %v2431_v55, %v2430_v58 }
 0x539   :  { %v3159_v29 = vpop.eup %3158  ;;  %v2281_v62 = vrot.slane %v3157_v47, 4  ;;  %v2322_v20 = vadd.f32 %v2321_v7, %v2320_v57  ;;  %v2267_v18 = vrot.slane %v2266_v46, 1  ;;  %v2375_v44 = vrot.slane %v4228_v23, 4 }
 0x53a   :  { %v3161_v56 = vpop.eup %3160  ;;  %v2329_v61 = vrot.slane %v3159_v29, 4  ;;  %v2350_v39 = vmul.f32 %v3159_v29, %v4195_v27  ;;  %v2437_v27 = vrot.slane %v2436_v13, 2  ;;  %v2273_v4 = vrot.slane %v2272_v25, 1 }
 0x53b   :  { %v4237_v54 = vpop.eup %3162  ;;  %v2282_v0 = vadd.f32 %v3157_v47, %v2281_v62  ;;  %3170 = vrcp.f32 %v2322_v20  ;;  %v4243_v60 = vmul.f32 %v3161_v56, %v4212_v2  ;;  %v2279_v26 = vrot.slane %v2278_v15, 1 }
 0x53c   :  { %v2330_v31 = vadd.f32 %v3159_v29, %v2329_v61  ;;  %v4240_v36 = vpop.eup %3164  ;;  %v2441_v49 = vrot.slane %v2350_v39, 4  ;;  %3172 = vrcp.f32 %v2328_v8  ;;  %v2381_v41 = vrot.slane %v2340_v35, 4 }
 0x53d   :  { %v2283_v14 = vrot.slane %v2282_v0, 2  ;;  %v3167_v28 = vpop.eup %3166  ;;  %v2342_v2 = vmul.f32 %v3157_v47, %v4191_v1  ;;  %v2438_v3 = vadd.f32 %v2437_v27, %v2436_v13  ;;  %v2244_v42 = vadd.f32 %v2243_v34, %v2242_v37 }
 0x53e   :  { %v2331_v59 = vrot.slane %v2330_v31, 2  ;;  %v2442_v17 = vadd.f32 %v2441_v49, %v2350_v39  ;;  %v2471_v21 = vmul.f32 %v3167_v28, %v2404_v12  ;;  %v2352_v7 = vadd.f32 %v2351_v45, %v4221_v32 }
 0x53f   :  { %v2284_v48 = vadd.f32 %v2283_v14, %v2282_v0  ;;  %v2433_v53 = vrot.slane %v2432_v9, 1  ;;  %v2268_v29 = vadd.f32 %v2267_v18, %v2266_v46  ;;  %v2376_v33 = vadd.f32 %v2375_v44, %v4228_v23 }
 0x540   :  { %v2332_v10 = vadd.f32 %v2331_v59, %v2330_v31  ;;  %v2274_v11 = vadd.f32 %v2273_v4, %v2272_v25  ;;  %v2280_v62 = vadd.f32 %v2279_v26, %v2278_v15  ;;  %v2382_v56 = vadd.f32 %v2381_v41, %v2340_v35 }
 0x541   :  { %v2285_v40 = vrot.slane %v2284_v48, 1  ;;  %v2387_v20 = vrot.slane %v4232_v22, 4  ;;  %v2443_v61 = vrot.slane %v2442_v17, 2  ;;  %v2487_v1 = vmul.f32 0.125, %v2471_v21 }
 0x542   :  { %v2333_v57 = vrot.slane %v2332_v10, 1  ;;  %v2393_v47 = vrot.slane %v2342_v2, 4  ;;  %v2353_v13 = vrot.slane %v2352_v7, 2  ;;  %v2488_v45 = vmul.f32 0.125, %v4234_v5 }
 0x543   :  { %v2286_v37 = vadd.f32 %v2285_v40, %v2284_v48  ;;  %v2388_v39 = vadd.f32 %v2387_v20, %v4232_v22  ;;  %v3169_v32 = vpop.eup %3168  ;;  %v2377_v50 = vrot.slane %v2376_v33, 2  ;;  %v2428_v0 = vadd.f32 %v2427_v30, %v2426_v51 }
 0x544   :  { %v2334_v58 = vadd.f32 %v2333_v57, %v2332_v10  ;;  %v2394_v8 = vadd.f32 %v2393_v47, %v2342_v2  ;;  %v2434_v31 = vadd.f32 %v2433_v53, %v2432_v9  ;;  %v2383_v55 = vrot.slane %v2382_v56, 2 }
 0x545   :  { %v2444_v46 = vadd.f32 %v2443_v61, %v2442_v17  ;;  %v2518_v25 = vsel %vm1320_vm0, %v2488_v45, %v2487_v1  ;;  %v2389_v15 = vrot.slane %v2388_v39, 2  ;;  %v2439_v14 = vrot.slane %v2438_v3, 1 }
 0x546   :  { %3174 = vrcp.f32 %v2334_v58  ;;  %v2354_v35 = vadd.f32 %v2353_v13, %v2352_v7  ;;  %v2395_v22 = vrot.slane %v2394_v8, 2  ;;  %v2361_v5 = vrot.slane %v4225_v19, 1 }
 0x547   :  { %3176 = vrcp.f32 %v2244_v42  ;;  %v2378_v27 = vadd.f32 %v2377_v50, %v2376_v33  ;;  %v2475_v49 = vmul.f32 %v3169_v32, %v2428_v0  ;;  %v2519_v51 = vsel %vm1322_vm1, %v4214_v52, %v2518_v25 }
 0x548   :  { %3178 = vrcp.f32 %v2268_v29  ;;  %v3171_v23 = vpop.eup %3170  ;;  %v2367_v28 = vrot.slane %v4208_v38, 1  ;;  %v2384_v12 = vadd.f32 %v2383_v55, %v2382_v56  ;;  %v2445_v34 = vrot.slane %v2444_v46, 1 }
 0x549   :  { %3180 = vrcp.f32 %v2274_v11  ;;  %v2476_v59 = vmul.f32 %v3171_v23, %v2434_v31  ;;  %v3173_v30 = vpop.eup %3172  ;;  %v2490_v48 = vmul.f32 0.125, %v4243_v60  ;;  %v2373_v10 = vrot.slane %v4223_v24, 1  ;;  %v1619_v31 = vpop.f32.mrf.mxu0 }
 0x54a   :  { %3182 = vrcp.f32 %v2280_v62  ;;  %v2390_v9 = vadd.f32 %v2389_v15, %v2388_v39  ;;  %v2440_v18 = vadd.f32 %v2439_v14, %v2438_v3  ;;  %v2355_v44 = vrot.slane %v2354_v35, 1 }
 0x54b   :  { %3184 = vrcp.f32 %v2286_v37  ;;  %v2396_v4 = vadd.f32 %v2395_v22, %v2394_v8  ;;  %v2492_v26 = vmul.f32 0.125, %v2476_v59  ;;  %v2520_v41 = vsel %vm1324_vm2, %v2490_v48, %v2519_v51 }
 0x54c   :  { %v2362_v57 = vadd.f32 %v2361_v5, %v4225_v19  ;;  %v2379_v17 = vrot.slane %v2378_v27, 1  ;;  %v2477_v52 = vmul.f32 %v3173_v30, %v2440_v18  ;;  %v2491_v21 = vmul.f32 0.125, %v2475_v49 }
 0x54d   :  { %v2368_v2 = vadd.f32 %v2367_v28, %v4208_v38  ;;  %v2385_v42 = vrot.slane %v2384_v12, 1  ;;  %v2446_v40 = vadd.f32 %v2445_v34, %v2444_v46  ;;  %v2374_v60 = vadd.f32 %v2373_v10, %v4223_v24 }
 0x54e   :  { %v2391_v7 = vrot.slane %v2390_v9, 1  ;;  %v2464_v58 = vmul.f32 %v4237_v54, %v2362_v57  ;;  %v2521_v53 = vsel %vm1326_vm3, %v2491_v21, %v2520_v41  ;;  %v2356_v29 = vadd.f32 %v2355_v44, %v2354_v35 }
 0x54f   :  { %v2397_v33 = vrot.slane %v2396_v4, 1  ;;  %v2465_v11 = vmul.f32 %v4218_v43, %v2368_v2  ;;  %v2522_v56 = vsel %vm1328_vm4, %v2492_v26, %v2521_v53  ;;  %v2380_v20 = vadd.f32 %v2379_v17, %v2378_v27 }
 0x550   :  { %v2466_v38 = vmul.f32 %v4240_v36, %v2374_v60  ;;  %v2493_v1 = vmul.f32 0.125, %v2477_v52  ;;  %v2386_v24 = vadd.f32 %v2385_v42, %v2384_v12  ;;  %v2392_v13 = vadd.f32 %v2391_v7, %v2390_v9 }
 0x551   :  { %v2480_v32 = vmul.f32 0.125, %v2464_v58  ;;  %v2398_v43 = vadd.f32 %v2397_v33, %v2396_v4  ;;  %v2481_v46 = vmul.f32 0.125, %v2465_v11  ;;  %v4354_v11 = vmax.f32 %v3871_v63, 0.0 }
 0x552   :  { %v2523_v50 = vsel %vm1330_vm5, %v2493_v1, %v2522_v56  ;;  %v2482_v25 = vmul.f32 0.125, %v2466_v38 }
 0x553   :  { %v3175_v3 = vpop.eup %3174 }
 0x554   :  { %v3177_v19 = vpop.eup %3176  ;;  %v2478_v62 = vmul.f32 %v3175_v3, %v2446_v40 }
 0x555   :  { %v3179_v61 = vpop.eup %3178  ;;  %v2463_v47 = vmul.f32 %v3177_v19, %v2356_v29 }
 0x556   :  { %v3181_v37 = vpop.eup %3180  ;;  %v2494_v54 = vmul.f32 0.125, %v2478_v62  ;;  %v2467_v39 = vmul.f32 %v3179_v61, %v2380_v20  ;;  %v4355_v62 = vmax.f32 %v3873_v6, 0.0 }
 0x557   :  { %v3183_v45 = vpop.eup %3182  ;;  %v2468_v8 = vmul.f32 %v3181_v37, %v2386_v24  ;;  %v2479_v23 = vmul.f32 0.125, %v2463_v47 }
 0x558   :  { %v3185_v0 = vpop.eup %3184  ;;  %v2524_v55 = vsel %vm1332_vm6, %v2494_v54, %v2523_v50  ;;  %v2469_v36 = vmul.f32 %v3183_v45, %v2392_v13  ;;  %v2483_v59 = vmul.f32 0.125, %v2467_v39 }
 0x559   :  { %v2528_v15 = vadd.f32 %v2524_v55, %v1619_v31  ;;  %v2470_v14 = vmul.f32 %v3185_v0, %v2398_v43  ;;  %v2484_v35 = vmul.f32 0.125, %v2468_v8  ;;  %v2511_v22 = vsel %vm1320_vm0, %v2480_v32, %v2479_v23 }
 0x55a   :  { %v2512_v5 = vsel %vm1322_vm1, %v2481_v46, %v2511_v22  ;;  %v2485_v51 = vmul.f32 0.125, %v2469_v36 }
 0x55b   :  { %2531 = vadd.xlane.f32.xlu1 %v2528_v15  ;;  %v2486_v27 = vmul.f32 0.125, %v2470_v14  ;;  %v2513_v49 = vsel %vm1324_vm2, %v2482_v25, %v2512_v5  ;;  %v2538_v30 = vmul.f32 %v2528_v15, %v2528_v15 }
 0x55c   :  { %v2514_v28 = vsel %vm1326_vm3, %v2483_v59, %v2513_v49 }
 0x55d   :  { %v2515_v12 = vsel %vm1328_vm4, %v2484_v35, %v2514_v28 }
 0x55e   :  { %v2516_v34 = vsel %vm1330_vm5, %v2485_v51, %v2515_v12 }
 0x55f   :  { %v2517_v48 = vsel %vm1332_vm6, %v2486_v27, %v2516_v34  ;;  %2541 = vadd.xlane.f32.xlu1 %v2538_v30 }
 0x560   :  { %v2527_v10 = vadd.f32 %v2517_v48, %v4193_v16 }
 0x562   :  { %2529 = vadd.xlane.f32.xlu0 %v2527_v10  ;;  %v2537_v9 = vmul.f32 %v2527_v10, %v2527_v10 }
 0x566   :  { %2539 = vadd.xlane.f32.xlu0 %v2537_v9 }
 0x5e4   :  { %v2532_v18 = vpop.xlane.xlu1 %2531 }
 0x5e5   :  { %v2534_v44 = vmul.f32 0.0078125, %v2532_v18 }
 0x5e8   :  { %v2542_v26 = vpop.xlane.xlu1 %2541 }
 0x5e9   :  { %v2544_v17 = vmul.f32 0.0078125, %v2542_v26 }
 0x5eb   :  { %v2530_v4 = vpop.xlane.xlu0 %2529 }
 0x5ec   :  { %v2533_v41 = vmul.f32 0.0078125, %v2530_v4 }
 0x5ee   :  { %v2535_v57 = vadd.f32 %v2534_v44, %v2533_v41 }
 0x5ef   :  { %v2540_v52 = vpop.xlane.xlu0 %2539 }
 0x5f0   :  { %v2536_v21 = vmul.f32 0.5, %v2535_v57  ;;  %v2543_v2 = vmul.f32 0.0078125, %v2540_v52 }
 0x5f2   :  { %v2545_v42 = vadd.f32 %v2544_v17, %v2543_v2  ;;  %v2547_v40 = vmul.f32 %v2536_v21, %v2536_v21  ;;  %v2549_v16 = vsub.f32 %v2527_v10, %v2536_v21  ;;  %v2550_v3 = vsub.f32 %v2528_v15, %v2536_v21 }
 0x5f4   :  { %v2546_v60 = vmul.f32 0.5, %v2545_v42 }
 0x5f6   :  { %v2548_v7 = vsub.f32 %v2546_v60, %v2547_v40 }
 0x5f8   :  { %v2551_v58 = vadd.f32 1e-05, %v2548_v7 }
 0x5fa   :  { %3186 = vrsqrt.f32 %v2551_v58 }
 0x607   :  { %v3187_v53 = vpop.eup %3186 }
 0x608   :  { %v2553_v29 = vmul.f32 %v3187_v53, %v2549_v16  ;;  %v2554_v33 = vmul.f32 %v3187_v53, %v2550_v3 }
 0x60a   :  { %v2555_v19 = vadd.f32 %v2553_v29, %v4354_v11  ;;  %v2556_v56 = vadd.f32 %v2554_v33, %v4355_v62 }
 0x60c   :  { %v2557_v20 = vmax.f32 %v2555_v19, 0.0  ;;  %v2558_v38 = vmax.f32 %v2556_v56, 0.0 }
 0x60e   :  { %2559 = vst [vmem:[#allocation8] sm:$0xff] %v2557_v20  ;;  %2560 = vst [vmem:[#allocation8 + $0x8] sm:$0xff] %v2558_v38 }
 0x60f   :  { %3261 = shalt.err (!%p3258_p5)
}
 0x610   :  { %2588 = dma.vmem_to_hbm [thread:$0]  %s2583_s13, 256, %s4296_s6, [#allocation4], %s3280_s11, %s3280_s11, %s3281_s12  }
 0x611   :  { %3274 = dma.done.wait [#allocation4], 256  }
 0x612   :  { %3275 = vsyncadd [#allocation4], 4294967040 }
 0x613   :  { %2596 = vsyncpa [#allocation3], 1 }
 0x614   :  { %2597 = vsyncpa [#allocation6], 1 }
 0x615   :  { %2598 = vsyncpa [#allocation4], 1 }

</bundles_post_ra>
